<compile_context>
chip_gen: v7x
topology: tpu7x:2x2x1
jax: 0.10.0
libtpu: 0.0.40
codegen_flags: <defaults>
</compile_context>

<pallas_src>
import functools

import jax
import jax.numpy as jnp
from jax import lax
from jax.experimental import pallas as pl
from jax.experimental.pallas import tpu as pltpu


def _round_up(x: int, m: int) -> int:
    return ((x + m - 1) // m) * m


def knn_kernel(pos_col_ref, pos_row_ref, nrm_col_ref, nrm_row_ref,
               batch_col_ref, batch_row_ref, idx_ref, dist_ref,
               *, k: int, cutoff: float, n_valid: int, tm: int):
    np_pad = pos_row_ref.shape[1]
    cutoff2 = jnp.float32(cutoff * cutoff)
    big = jnp.float32(jnp.inf)

    pc = pos_col_ref[...]                       # [TM, 8]   (xyz zero-padded to 8)
    pr = pos_row_ref[...]                       # [8, Np]

    # Cross term on the MXU; norms were precomputed in the wrapper.
    gram = jnp.dot(pc, pr, preferred_element_type=jnp.float32)   # [TM, Np]
    d2 = nrm_col_ref[...] + nrm_row_ref[...] - 2.0 * gram        # [TM, Np]
    d2 = jnp.maximum(d2, 0.0)                   # guard FP cancellation -> no NaN sqrt

    col_id = lax.broadcasted_iota(jnp.int32, (tm, np_pad), 1)    # [TM, Np]
    row_ids = (pl.program_id(0) * tm
               + lax.broadcasted_iota(jnp.int32, (tm, 1), 0))    # [TM, 1]

    diag = col_id == row_ids                                     # self interaction
    cross = batch_col_ref[...] != batch_row_ref[...]             # different molecule
    outer = d2 > cutoff2                                         # beyond cutoff
    pad = col_id >= n_valid                                      # lane padding

    # masked_fill(mask, cutoff) in squared space; padded lanes can never win.
    work = jnp.where(diag | cross | outer, cutoff2, d2)
    work = jnp.where(pad, big, work)

    # k rounds of (min, first-argmin, knock-out) == topk(-pdist, k).
    vals = []
    idxs = []
    for _ in range(k):
        m = jnp.min(work, axis=1, keepdims=True)                            # [TM, 1]
        idx = jnp.min(jnp.where(work == m, col_id, np_pad),
                      axis=1, keepdims=True)                                # [TM, 1]
        vals.append(m)
        idxs.append(idx)
        work = jnp.where(col_id == idx, big, work)

    idx_ref[...] = jnp.concatenate(idxs, axis=1)                 # [TM, K] int32
    # sqrt only on the K selected columns (cutoff^2 -> cutoff exactly).
    dist_ref[...] = jnp.sqrt(jnp.concatenate(vals, axis=1))      # [TM, K] float32


def knn_interaction_graph(pos, batch, k: int, cutoff: float = 10.0):
    """Returns (edge_index [2, N*k] int32, edge_weight [N*k] float32)."""
    n = pos.shape[0]
    pos = pos.astype(jnp.float32)
    batch = batch.astype(jnp.int32)

    # Lane-pad atom count to a multiple of 128; pick a row tile that divides it.
    np_pad = _round_up(max(n, 128), 128)
    tm = 256 if np_pad % 256 == 0 else 128      # <=256 keeps v7x (64 MiB VMEM) safe
    grid = (np_pad // tm,)

    # Zero-pad coordinates (3 -> 8 contraction lanes, N -> Np rows); sentinel
    # batch id for padded atoms.
    pos_p = jnp.zeros((np_pad, 8), jnp.float32).at[:n, :3].set(pos)
    batch_p = jnp.full((np_pad,), -1, jnp.int32).at[:n].set(batch)
    sq_norm = jnp.sum(pos_p * pos_p, axis=1)                     # [Np]

    pos_row = pos_p.T                                            # [8, Np]
    nrm_col = sq_norm.reshape(np_pad, 1)
    nrm_row = sq_norm.reshape(1, np_pad)
    batch_col = batch_p.reshape(np_pad, 1)
    batch_row = batch_p.reshape(1, np_pad)

    kernel = functools.partial(knn_kernel, k=k, cutoff=float(cutoff),
                               n_valid=n, tm=tm)

    idx, dist = pl.pallas_call(
        kernel,
        grid=grid,
        in_specs=[
            pl.BlockSpec((tm, 8), lambda i: (i, 0)),        # pos (row block)
            pl.BlockSpec((8, np_pad), lambda i: (0, 0)),    # pos^T (resident)
            pl.BlockSpec((tm, 1), lambda i: (i, 0)),        # ||x||^2 (row block)
            pl.BlockSpec((1, np_pad), lambda i: (0, 0)),    # ||x||^2 (resident)
            pl.BlockSpec((tm, 1), lambda i: (i, 0)),        # batch (row block)
            pl.BlockSpec((1, np_pad), lambda i: (0, 0)),    # batch (resident)
        ],
        out_specs=[
            pl.BlockSpec((tm, k), lambda i: (i, 0)),
            pl.BlockSpec((tm, k), lambda i: (i, 0)),
        ],
        out_shape=[
            jax.ShapeDtypeStruct((np_pad, k), jnp.int32),
            jax.ShapeDtypeStruct((np_pad, k), jnp.float32),
        ],
        compiler_params=pltpu.CompilerParams(
            dimension_semantics=("parallel",),     # megacore sharding on v7x
            vmem_limit_bytes=48 * 1024 * 1024,     # safe on v5e/v6e/v7x; raise on 128 MiB parts for bigger TM
        ),
    )(pos_p, pos_row, nrm_col, nrm_row, batch_col, batch_row)

    idx = idx[:n]
    dist = dist[:n]

    rows = jnp.repeat(jnp.arange(n, dtype=jnp.int32), k)         # rows.expand_as(indices)
    edge_index = jnp.stack([idx.reshape(-1), rows], axis=0)      # vstack([indices, rows])
    edge_weight = dist.reshape(-1)                               # -(-pdist topk values)
    return edge_index, edge_weight


def _reference(pos, batch, k, cutoff):
    """Pure-JAX reference of the PyTorch forward, for a sanity check."""
    n = pos.shape[0]
    diff = pos[:, None, :] - pos[None, :, :]
    pdist = jnp.sqrt(jnp.sum(diff * diff, axis=-1))
    rows = jnp.arange(n)
    diag = rows[:, None] == rows[None, :]
    cross = batch[:, None] != batch[None, :]
    outer = pdist > cutoff
    mask = diag | cross | outer
    pdist = jnp.where(mask, cutoff, pdist)
    neg_w, idx = lax.top_k(-pdist, k)
    return idx, -neg_w


if __name__ == "__main__":
    key = jax.random.PRNGKey(0)
    N = 32          # atoms
    K = 4           # neighbors
    CUTOFF = 10.0
    NMOL = 4        # molecules, 8 atoms each

    kpos, _ = jax.random.split(key)
    pos = jax.random.normal(kpos, (N, 3), dtype=jnp.float32) * 3.0
    batch = jnp.repeat(jnp.arange(NMOL, dtype=jnp.int32), N // NMOL)

    edge_index, edge_weight = knn_interaction_graph(pos, batch, K, CUTOFF)
    jax.block_until_ready((edge_index, edge_weight))

    # Sanity check against pure-JAX reference (values; tie ordering may differ).
    ref_idx, ref_w = _reference(pos, batch, K, CUTOFF)
    assert edge_index.shape == (2, N * K)
    assert edge_weight.shape == (N * K,)
    assert jnp.allclose(
        jnp.sort(edge_weight.reshape(N, K), axis=1),
        jnp.sort(ref_w, axis=1),
        atol=1e-4,
    ), "distance values mismatch"

    print("KERNEL_OK")
</pallas_src>

<mosaic_0001>
module attributes {stable_mosaic.version = 11 : i64} {
  func.func @knn_kernel(%arg0: i32, %arg1: memref<128x8xf32, #tpu.memory_space<vmem>>, %arg2: memref<8x128xf32, #tpu.memory_space<vmem>>, %arg3: memref<128x1xf32, #tpu.memory_space<vmem>>, %arg4: memref<1x128xf32, #tpu.memory_space<vmem>>, %arg5: memref<128x1xi32, #tpu.memory_space<vmem>>, %arg6: memref<1x128xi32, #tpu.memory_space<vmem>>, %arg7: memref<128x4xi32, #tpu.memory_space<vmem>>, %arg8: memref<128x4xf32, #tpu.memory_space<vmem>>) attributes {dimension_semantics = [#tpu.dimension_semantics<parallel>], iteration_bounds = array<i64: 1>, scalar_prefetch = 0 : i64, scratch_operands = 0 : i64, tpu.core_type = #tpu.core_type<tc>, window_params = [{transform_indices = @transform_0, window_bounds = array<i64: 128, 8>}, {pipeline_mode = #tpu.pipeline_mode<synchronous>, transform_indices = @transform_1, window_bounds = array<i64: 8, 128>}, {transform_indices = @transform_2, window_bounds = array<i64: 128, 1>}, {pipeline_mode = #tpu.pipeline_mode<synchronous>, transform_indices = @transform_3, window_bounds = array<i64: 1, 128>}, {transform_indices = @transform_4, window_bounds = array<i64: 128, 1>}, {pipeline_mode = #tpu.pipeline_mode<synchronous>, transform_indices = @transform_5, window_bounds = array<i64: 1, 128>}, {transform_indices = @transform_6, window_bounds = array<i64: 128, 4>}, {transform_indices = @transform_7, window_bounds = array<i64: 128, 4>}]} {
    %c0 = arith.constant 0 : index
    %c0_0 = arith.constant 0 : index
    %0 = vector.load %arg1[%c0, %c0_0] : memref<128x8xf32, #tpu.memory_space<vmem>>, vector<128x8xf32>
    %c0_1 = arith.constant 0 : index
    %c0_2 = arith.constant 0 : index
    %1 = vector.load %arg2[%c0_1, %c0_2] : memref<8x128xf32, #tpu.memory_space<vmem>>, vector<8x128xf32>
    %cst = arith.constant dense<0.000000e+00> : vector<128x128xf32>
    %2 = tpu.matmul %0, %1, %cst {dimension_numbers = #tpu.dot_dimension_numbers<[1], [0], [0], [1], [0, 0, 1, 1], [], []>} : vector<128x8xf32>, vector<8x128xf32>, vector<128x128xf32> -> vector<128x128xf32>
    %c0_3 = arith.constant 0 : index
    %c0_4 = arith.constant 0 : index
    %3 = vector.load %arg3[%c0_3, %c0_4] : memref<128x1xf32, #tpu.memory_space<vmem>>, vector<128x1xf32>
    %c0_5 = arith.constant 0 : index
    %c0_6 = arith.constant 0 : index
    %4 = vector.load %arg4[%c0_5, %c0_6] : memref<1x128xf32, #tpu.memory_space<vmem>>, vector<1x128xf32>
    %5 = vector.broadcast %3 : vector<128x1xf32> to vector<128x128xf32>
    %6 = vector.broadcast %4 : vector<1x128xf32> to vector<128x128xf32>
    %7 = arith.addf %5, %6 : vector<128x128xf32>
    %cst_7 = arith.constant 2.000000e+00 : f32
    %8 = vector.broadcast %cst_7 : f32 to vector<128x128xf32>
    %9 = arith.mulf %8, %2 : vector<128x128xf32>
    %10 = arith.subf %7, %9 : vector<128x128xf32>
    %cst_8 = arith.constant 0.000000e+00 : f32
    %11 = vector.broadcast %cst_8 : f32 to vector<128x128xf32>
    %12 = arith.maximumf %10, %11 : vector<128x128xf32>
    %13 = tpu.iota {dimensions = array<i32: 1>} : vector<128x128xi32>
    %c128_i32 = arith.constant 128 : i32
    %14 = arith.muli %arg0, %c128_i32 : i32
    %15 = tpu.iota {dimensions = array<i32: 0>} : vector<128x1xi32>
    %16 = vector.broadcast %14 : i32 to vector<128x1xi32>
    %17 = arith.addi %16, %15 : vector<128x1xi32>
    %18 = vector.broadcast %17 : vector<128x1xi32> to vector<128x128xi32>
    %19 = arith.cmpi eq, %13, %18 : vector<128x128xi32>
    %c0_9 = arith.constant 0 : index
    %c0_10 = arith.constant 0 : index
    %20 = vector.load %arg5[%c0_9, %c0_10] : memref<128x1xi32, #tpu.memory_space<vmem>>, vector<128x1xi32>
    %c0_11 = arith.constant 0 : index
    %c0_12 = arith.constant 0 : index
    %21 = vector.load %arg6[%c0_11, %c0_12] : memref<1x128xi32, #tpu.memory_space<vmem>>, vector<1x128xi32>
    %22 = vector.broadcast %20 : vector<128x1xi32> to vector<128x128xi32>
    %23 = vector.broadcast %21 : vector<1x128xi32> to vector<128x128xi32>
    %24 = arith.cmpi ne, %22, %23 : vector<128x128xi32>
    %cst_13 = arith.constant 1.000000e+02 : f32
    %25 = vector.broadcast %cst_13 : f32 to vector<128x128xf32>
    %26 = arith.cmpf ogt, %12, %25 : vector<128x128xf32>
    %c32_i32 = arith.constant 32 : i32
    %27 = vector.broadcast %c32_i32 : i32 to vector<128x128xi32>
    %28 = arith.cmpi sge, %13, %27 : vector<128x128xi32>
    %29 = arith.ori %19, %24 : vector<128x128xi1>
    %30 = arith.ori %29, %26 : vector<128x128xi1>
    %cst_14 = arith.constant 1.000000e+02 : f32
    %31 = vector.broadcast %cst_14 : f32 to vector<128x128xf32>
    %32 = arith.select %30, %31, %12 : vector<128x128xi1>, vector<128x128xf32>
    %cst_15 = arith.constant 0x7F800000 : f32
    %33 = vector.broadcast %cst_15 : f32 to vector<128x128xf32>
    %34 = arith.select %28, %33, %32 : vector<128x128xi1>, vector<128x128xf32>
    %cst_16 = arith.constant dense<0x7F800000> : vector<128xf32>
    %35 = vector.multi_reduction <minimumf>, %34, %cst_16 [1] : vector<128x128xf32> to vector<128xf32>
    %36 = vector.shape_cast %35 : vector<128xf32> to vector<128x1xf32>
    %37 = vector.broadcast %36 : vector<128x1xf32> to vector<128x128xf32>
    %38 = arith.cmpf oeq, %34, %37 : vector<128x128xf32>
    %c128_i32_17 = arith.constant 128 : i32
    %39 = vector.broadcast %c128_i32_17 : i32 to vector<128x128xi32>
    %40 = arith.select %38, %13, %39 : vector<128x128xi1>, vector<128x128xi32>
    %cst_18 = arith.constant dense<2147483647> : vector<128xi32>
    %41 = vector.multi_reduction <minsi>, %40, %cst_18 [1] : vector<128x128xi32> to vector<128xi32>
    %42 = vector.shape_cast %41 : vector<128xi32> to vector<128x1xi32>
    %43 = vector.broadcast %42 : vector<128x1xi32> to vector<128x128xi32>
    %44 = arith.cmpi eq, %13, %43 : vector<128x128xi32>
    %cst_19 = arith.constant 0x7F800000 : f32
    %45 = vector.broadcast %cst_19 : f32 to vector<128x128xf32>
    %46 = arith.select %44, %45, %34 : vector<128x128xi1>, vector<128x128xf32>
    %cst_20 = arith.constant dense<0x7F800000> : vector<128xf32>
    %47 = vector.multi_reduction <minimumf>, %46, %cst_20 [1] : vector<128x128xf32> to vector<128xf32>
    %48 = vector.shape_cast %47 : vector<128xf32> to vector<128x1xf32>
    %49 = vector.broadcast %48 : vector<128x1xf32> to vector<128x128xf32>
    %50 = arith.cmpf oeq, %46, %49 : vector<128x128xf32>
    %c128_i32_21 = arith.constant 128 : i32
    %51 = vector.broadcast %c128_i32_21 : i32 to vector<128x128xi32>
    %52 = arith.select %50, %13, %51 : vector<128x128xi1>, vector<128x128xi32>
    %cst_22 = arith.constant dense<2147483647> : vector<128xi32>
    %53 = vector.multi_reduction <minsi>, %52, %cst_22 [1] : vector<128x128xi32> to vector<128xi32>
    %54 = vector.shape_cast %53 : vector<128xi32> to vector<128x1xi32>
    %55 = vector.broadcast %54 : vector<128x1xi32> to vector<128x128xi32>
    %56 = arith.cmpi eq, %13, %55 : vector<128x128xi32>
    %cst_23 = arith.constant 0x7F800000 : f32
    %57 = vector.broadcast %cst_23 : f32 to vector<128x128xf32>
    %58 = arith.select %56, %57, %46 : vector<128x128xi1>, vector<128x128xf32>
    %cst_24 = arith.constant dense<0x7F800000> : vector<128xf32>
    %59 = vector.multi_reduction <minimumf>, %58, %cst_24 [1] : vector<128x128xf32> to vector<128xf32>
    %60 = vector.shape_cast %59 : vector<128xf32> to vector<128x1xf32>
    %61 = vector.broadcast %60 : vector<128x1xf32> to vector<128x128xf32>
    %62 = arith.cmpf oeq, %58, %61 : vector<128x128xf32>
    %c128_i32_25 = arith.constant 128 : i32
    %63 = vector.broadcast %c128_i32_25 : i32 to vector<128x128xi32>
    %64 = arith.select %62, %13, %63 : vector<128x128xi1>, vector<128x128xi32>
    %cst_26 = arith.constant dense<2147483647> : vector<128xi32>
    %65 = vector.multi_reduction <minsi>, %64, %cst_26 [1] : vector<128x128xi32> to vector<128xi32>
    %66 = vector.shape_cast %65 : vector<128xi32> to vector<128x1xi32>
    %67 = vector.broadcast %66 : vector<128x1xi32> to vector<128x128xi32>
    %68 = arith.cmpi eq, %13, %67 : vector<128x128xi32>
    %cst_27 = arith.constant 0x7F800000 : f32
    %69 = vector.broadcast %cst_27 : f32 to vector<128x128xf32>
    %70 = arith.select %68, %69, %58 : vector<128x128xi1>, vector<128x128xf32>
    %cst_28 = arith.constant dense<0x7F800000> : vector<128xf32>
    %71 = vector.multi_reduction <minimumf>, %70, %cst_28 [1] : vector<128x128xf32> to vector<128xf32>
    %72 = vector.shape_cast %71 : vector<128xf32> to vector<128x1xf32>
    %73 = vector.broadcast %72 : vector<128x1xf32> to vector<128x128xf32>
    %74 = arith.cmpf oeq, %70, %73 : vector<128x128xf32>
    %c128_i32_29 = arith.constant 128 : i32
    %75 = vector.broadcast %c128_i32_29 : i32 to vector<128x128xi32>
    %76 = arith.select %74, %13, %75 : vector<128x128xi1>, vector<128x128xi32>
    %cst_30 = arith.constant dense<2147483647> : vector<128xi32>
    %77 = vector.multi_reduction <minsi>, %76, %cst_30 [1] : vector<128x128xi32> to vector<128xi32>
    %78 = vector.shape_cast %77 : vector<128xi32> to vector<128x1xi32>
    %79 = tpu.concatenate %42, %54, %66, %78 in 1 : vector<128x1xi32>, vector<128x1xi32>, vector<128x1xi32>, vector<128x1xi32> -> vector<128x4xi32>
    %c0_31 = arith.constant 0 : index
    %c0_32 = arith.constant 0 : index
    %80 = vector.load %arg7[%c0_31, %c0_32] : memref<128x4xi32, #tpu.memory_space<vmem>>, vector<128x4xi32>
    tpu.vector_store %arg7[%c0_31, %c0_32], %79 {strides = array<i32>} : memref<128x4xi32, #tpu.memory_space<vmem>>, vector<128x4xi32>,
    %81 = tpu.concatenate %36, %48, %60, %72 in 1 : vector<128x1xf32>, vector<128x1xf32>, vector<128x1xf32>, vector<128x1xf32> -> vector<128x4xf32>
    %82 = math.sqrt %81 : vector<128x4xf32>
    %c0_33 = arith.constant 0 : index
    %c0_34 = arith.constant 0 : index
    %83 = vector.load %arg8[%c0_33, %c0_34] : memref<128x4xf32, #tpu.memory_space<vmem>>, vector<128x4xf32>
    tpu.vector_store %arg8[%c0_33, %c0_34], %82 {strides = array<i32>} : memref<128x4xf32, #tpu.memory_space<vmem>>, vector<128x4xf32>,
    return
  }
  func.func @transform_0(%arg0: i32) -> (i32, i32) {
    %c0_i32 = arith.constant 0 : i32
    %c0_i32_0 = arith.constant 0 : i32
    return %arg0, %c0_i32 : i32, i32
  }
  func.func @transform_1(%arg0: i32) -> (i32, i32) {
    %c0_i32 = arith.constant 0 : i32
    %c0_i32_0 = arith.constant 0 : i32
    %c0_i32_1 = arith.constant 0 : i32
    return %c0_i32, %c0_i32_0 : i32, i32
  }
  func.func @transform_2(%arg0: i32) -> (i32, i32) {
    %c0_i32 = arith.constant 0 : i32
    %c0_i32_0 = arith.constant 0 : i32
    return %arg0, %c0_i32 : i32, i32
  }
  func.func @transform_3(%arg0: i32) -> (i32, i32) {
    %c0_i32 = arith.constant 0 : i32
    %c0_i32_0 = arith.constant 0 : i32
    %c0_i32_1 = arith.constant 0 : i32
    return %c0_i32, %c0_i32_0 : i32, i32
  }
  func.func @transform_4(%arg0: i32) -> (i32, i32) {
    %c0_i32 = arith.constant 0 : i32
    %c0_i32_0 = arith.constant 0 : i32
    return %arg0, %c0_i32 : i32, i32
  }
  func.func @transform_5(%arg0: i32) -> (i32, i32) {
    %c0_i32 = arith.constant 0 : i32
    %c0_i32_0 = arith.constant 0 : i32
    %c0_i32_1 = arith.constant 0 : i32
    return %c0_i32, %c0_i32_0 : i32, i32
  }
  func.func @transform_6(%arg0: i32) -> (i32, i32) {
    %c0_i32 = arith.constant 0 : i32
    %c0_i32_0 = arith.constant 0 : i32
    return %arg0, %c0_i32 : i32, i32
  }
  func.func @transform_7(%arg0: i32) -> (i32, i32) {
    %c0_i32 = arith.constant 0 : i32
    %c0_i32_0 = arith.constant 0 : i32
    return %arg0, %c0_i32 : i32, i32
  }
}

</mosaic_0001>

<bundles_post_ra>
// kernel: tpu_custom_call.1
= control target key start
LH: loop header
LB: loop body
LE: loop exit
PB: predicated region body
PF: predicated region fallthrough
CT: control target
= control target key end

     0   :  { %v2220_v0 = vmov 0   ;;  %vm42_vm0 = vcmask 64512   ;;  %s4788_s2 = inlined_call_operand.vmem [shape: f32[128,1], index: 2, kind: input, shape index: {}]   ;;  %s4789_s1 = inlined_call_operand.vmem [shape: f32[8,128], index: 1, kind: input, shape index: {}]   ;;  %s4790_s0 = inlined_call_operand.vmem [shape: f32[128,8], index: 0, kind: input, shape index: {}]   ;;  %s4791_s4 = inlined_call_operand.vmem [shape: s32[128,1], index: 4, kind: input, shape index: {}]   ;;  %s4792_s3 = inlined_call_operand.vmem [shape: f32[1,128], index: 3, kind: input, shape index: {}]   ;;  %s4793_s5 = inlined_call_operand.vmem [shape: s32[1,128], index: 5, kind: input, shape index: {}]   ;;  %s4794_s7 = inlined_call_operand.vmem [shape: f32[128,4], index: 7, kind: output, shape index: {1}]   ;;  %s4795_s6 = inlined_call_operand.vmem [shape: s32[128,4], index: 6, kind: output, shape index: {0}]  }
   0x1   :  { %2187 = vset.pattern.permute.xlu1 %v2220_v0  ;;  %2186 = vset.pattern.permute.xlu0 %v2220_v0  ;;  %v238_v1 = vld [vmem:[%s4788_s2 + $0x10] sm:$0xff]  ;;  %v236_v2 = vld [vmem:[%s4788_s2] sm:$0xff]  ;;  %v26_v6 = vld [vmem:[%s4790_s0 + $0x8] sm:$0xff] }
   0x2   :  { %v41_v3 = vld [vmem:[%s4789_s1] sm:$0xff]  ;;  %265 = vperm.xlu1 %2187, %v238_v1   ;;  %255 = vperm.xlu0 %2186, %v236_v2   ;;  %v34_v7 = vld [vmem:[%s4790_s0 + $0x48] sm:$0xff]  ;;  %v239_v8 = vld [vmem:[%s4788_s2 + $0x18] sm:$0xff] }
   0x3   :  { %v25_v4 = vld [vmem:[%s4790_s0] sm:$0xff]  ;;  %2157 = vmatprep.subr.mxu0 %v41_v3  ;;  %2183 = vmatprep.subr.mxu1 %v41_v3  ;;  %v237_v9 = vld [vmem:[%s4788_s2 + $0x8] sm:$0xff]  ;;  %v27_v10 = vld [vmem:[%s4790_s0 + $0x10] sm:$0xff] }
   0x4   :  { %v33_v5 = vld [vmem:[%s4790_s0 + $0x40] sm:$0xff]  ;;  %2158 = vmatpush3.msra.mxu0 %v41_v3  ;;  %2184 = vmatpush3.msra.mxu1 %v41_v3  ;;  %v35_v11 = vld [vmem:[%s4790_s0 + $0x50] sm:$0xff]  ;;  %v28_v12 = vld [vmem:[%s4790_s0 + $0x18] sm:$0xff] }
   0x5   :  { %2159 = vmatprep.mubr.msk.f32.mxu0 %vm42_vm0, %v25_v4  ;;  %2171 = vmatprep.mubr.msk.f32.mxu1 %vm42_vm0, %v33_v5  ;;  %v36_v13 = vld [vmem:[%s4790_s0 + $0x58] sm:$0xff]  ;;  %v241_v14 = vld [vmem:[%s4788_s2 + $0x28] sm:$0xff]  ;;  %v240_v15 = vld [vmem:[%s4788_s2 + $0x20] sm:$0xff] }
   0x6   :  { %2160 = vmatmul.mubr.msk.f32.vlgmr.msra.gmra.mrb[0].mxu0 %vm42_vm0, %v26_v6  ;;  %2172 = vmatmul.mubr.msk.f32.vlgmr.msra.gmra.mrb[0].mxu1 %vm42_vm0, %v34_v7  ;;  %v29_v16 = vld [vmem:[%s4790_s0 + $0x20] sm:$0xff]  ;;  %v30_v18 = vld [vmem:[%s4790_s0 + $0x28] sm:$0xff]  ;;  %v243_v20 = vld [vmem:[%s4788_s2 + $0x38] sm:$0xff]  ;;  %v403_v6 = vlaneseq }
   0x7   :  { %270 = vperm.xlu1 %2187, %v239_v8   ;;  %260 = vperm.xlu0 %2186, %v237_v9   ;;  %v37_v17 = vld [vmem:[%s4790_s0 + $0x60] sm:$0xff]  ;;  %v38_v19 = vld [vmem:[%s4790_s0 + $0x68] sm:$0xff]  ;;  %v242_v21 = vld [vmem:[%s4788_s2 + $0x30] sm:$0xff] }
   0x8   :  { %2162 = vmatprep.mubr.msk.f32.mxu0 %vm42_vm0, %v27_v10  ;;  %2174 = vmatprep.mubr.msk.f32.mxu1 %vm42_vm0, %v35_v11  ;;  %v31_v22 = vld [vmem:[%s4790_s0 + $0x30] sm:$0xff]  ;;  %v32_v24 = vld [vmem:[%s4790_s0 + $0x38] sm:$0xff]  ;;  %v245_v26 = vld [vmem:[%s4788_s2 + $0x48] sm:$0xff]  ;;  %v2446_v9 = vshrl.u32 %v403_v6, 7  ;;  %v2450_v11 = vand.u32 127, %v403_v6 }
   0x9   :  { %v39_v23 = vld [vmem:[%s4790_s0 + $0x70] sm:$0xff]  ;;  %v40_v25 = vld [vmem:[%s4790_s0 + $0x78] sm:$0xff]  ;;  %v244_v27 = vld [vmem:[%s4788_s2 + $0x40] sm:$0xff] }
   0xa   :  { %2163 = vmatmul.mubr.msk.f32.gmra.mrb[2].mxu0 %vm42_vm0, %v28_v12  ;;  %2175 = vmatmul.mubr.msk.f32.gmra.mrb[2].mxu1 %vm42_vm0, %v36_v13  ;;  %v247_v28 = vld [vmem:[%s4788_s2 + $0x58] sm:$0xff]  ;;  %v246_v29 = vld [vmem:[%s4788_s2 + $0x50] sm:$0xff]  ;;  %v249_v30 = vld [vmem:[%s4788_s2 + $0x68] sm:$0xff]  ;;  %v408_v12 = vadd.s32 8, %v2446_v9  ;;  %vm440_vm1 = vcmp.eq.s32.totalorder %v2450_v11, %v2446_v9  ;;  %vm557_vm6 = vcmp.ge.s32.totalorder %v2450_v11, 32 }
   0xb   :  { %280 = vperm.xlu1 %2187, %v241_v14   ;;  %275 = vperm.xlu0 %2186, %v240_v15   ;;  %v248_v31 = vld [vmem:[%s4788_s2 + $0x60] sm:$0xff]  ;;  %v251_v32 = vld [vmem:[%s4788_s2 + $0x78] sm:$0xff]  ;;  %v250_v33 = vld [vmem:[%s4788_s2 + $0x70] sm:$0xff]  ;;  %v2456_v14 = vadd.s32 72, %v2446_v9  ;;  %v2459_v15 = vadd.s32 24, %v2446_v9 }
   0xc   :  { %2165 = vmatprep.mubr.msk.f32.mxu0 %vm42_vm0, %v29_v16  ;;  %2177 = vmatprep.mubr.msk.f32.mxu1 %vm42_vm0, %v37_v17  ;;  %v457_v34 = vld [vmem:[%s4791_s4 + $0x8] sm:$0xff]  ;;  %v456_v35 = vld [vmem:[%s4791_s4] sm:$0xff]  ;;  %v459_v36 = vld [vmem:[%s4791_s4 + $0x18] sm:$0xff]  ;;  %v2462_v16 = vadd.s32 64, %v2446_v9  ;;  %vm441_vm2 = vcmp.eq.s32.totalorder %v2450_v11, %v408_v12 }
   0xd   :  { %v458_v37 = vld [vmem:[%s4791_s4 + $0x10] sm:$0xff]  ;;  %v461_v38 = vld [vmem:[%s4791_s4 + $0x28] sm:$0xff]  ;;  %v460_v39 = vld [vmem:[%s4791_s4 + $0x20] sm:$0xff]  ;;  %vm449_vm3 = vcmp.eq.s32.totalorder %v2450_v11, %v2456_v14  ;;  %vm443_vm4 = vcmp.eq.s32.totalorder %v2450_v11, %v2459_v15 }
   0xe   :  { %2166 = vmatmul.mubr.msk.f32.gmra.mrb[4].mxu0 %vm42_vm0, %v30_v18  ;;  %2178 = vmatmul.mubr.msk.f32.gmra.mrb[4].mxu1 %vm42_vm0, %v38_v19  ;;  %v463_v40 = vld [vmem:[%s4791_s4 + $0x38] sm:$0xff]  ;;  %v462_v41 = vld [vmem:[%s4791_s4 + $0x30] sm:$0xff]  ;;  %v465_v42 = vld [vmem:[%s4791_s4 + $0x48] sm:$0xff]  ;;  %v2473_v18 = vadd.s32 16, %v2446_v9  ;;  %v2476_v19 = vadd.s32 40, %v2446_v9  ;;  %vm448_vm5 = vcmp.eq.s32.totalorder %v2450_v11, %v2462_v16 }
   0xf   :  { %290 = vperm.xlu1 %2187, %v243_v20   ;;  %285 = vperm.xlu0 %2186, %v242_v21   ;;  %v464_v43 = vld [vmem:[%s4791_s4 + $0x40] sm:$0xff]  ;;  %v467_v44 = vld [vmem:[%s4791_s4 + $0x58] sm:$0xff]  ;;  %v466_v45 = vld [vmem:[%s4791_s4 + $0x50] sm:$0xff]  ;;  %v2479_v20 = vadd.s32 32, %v2446_v9 }
  0x10   :  { %2168 = vmatprep.mubr.msk.f32.mxu0 %vm42_vm0, %v31_v22  ;;  %2180 = vmatprep.mubr.msk.f32.mxu1 %vm42_vm0, %v39_v23  ;;  %v469_v46 = vld [vmem:[%s4791_s4 + $0x68] sm:$0xff]  ;;  %v468_v47 = vld [vmem:[%s4791_s4 + $0x60] sm:$0xff]  ;;  %v471_v48 = vld [vmem:[%s4791_s4 + $0x78] sm:$0xff]  ;;  %v2484_v22 = vadd.s32 48, %v2446_v9  ;;  %v2489_v23 = vadd.s32 88, %v2446_v9  ;;  %vm442_vm8 = vcmp.eq.s32.totalorder %v2450_v11, %v2473_v18 }
  0x11   :  { %v470_v49 = vld [vmem:[%s4791_s4 + $0x70] sm:$0xff]  ;;  %v2467_v17 = vld [vmem:[%s4792_s3] ss:$0 sm:$0xff] }
  0x12   :  { %2169 = vmatmul.mubr.msk.f32.gmra.mrb[6].mxu0 %vm42_vm0, %v32_v24  ;;  %2181 = vmatmul.mubr.msk.f32.gmra.mrb[6].mxu1 %vm42_vm0, %v40_v25  ;;  %v2492_v24 = vadd.s32 80, %v2446_v9 }
  0x13   :  { %300 = vperm.xlu1 %2187, %v245_v26   ;;  %295 = vperm.xlu0 %2186, %v244_v27  }
  0x17   :  { %310 = vperm.xlu1 %2187, %v247_v28   ;;  %305 = vperm.xlu0 %2186, %v246_v29   ;;  %v2504_v28 = vld [vmem:[%s4793_s5] ss:$0 sm:$0xff] }
  0x1b   :  { %320 = vperm.xlu1 %2187, %v249_v30   ;;  %315 = vperm.xlu0 %2186, %v248_v31   ;;  %v2511_v30 = vadd.s32 96, %v2446_v9 }
  0x1f   :  { %330 = vperm.xlu1 %2187, %v251_v32   ;;  %325 = vperm.xlu0 %2186, %v250_v33  }
  0x23   :  { %477 = vperm.xlu1 %2187, %v457_v34   ;;  %474 = vperm.xlu0 %2186, %v456_v35  }
  0x27   :  { %483 = vperm.xlu1 %2187, %v459_v36   ;;  %480 = vperm.xlu0 %2186, %v458_v37  }
  0x2b   :  { %489 = vperm.xlu1 %2187, %v461_v38   ;;  %486 = vperm.xlu0 %2186, %v460_v39  }
  0x2f   :  { %495 = vperm.xlu1 %2187, %v463_v40   ;;  %492 = vperm.xlu0 %2186, %v462_v41  }
  0x33   :  { %501 = vperm.xlu1 %2187, %v465_v42   ;;  %498 = vperm.xlu0 %2186, %v464_v43  }
  0x37   :  { %507 = vperm.xlu1 %2187, %v467_v44   ;;  %504 = vperm.xlu0 %2186, %v466_v45  }
  0x3b   :  { %513 = vperm.xlu1 %2187, %v469_v46   ;;  %510 = vperm.xlu0 %2186, %v468_v47  }
  0x3f   :  { %519 = vperm.xlu1 %2187, %v471_v48   ;;  %516 = vperm.xlu0 %2186, %v470_v49  }
  0x81   :  { %v256_v50 = vpop.permute.xlu0 %255  ;;  %v266_v51 = vpop.permute.xlu1 %265 }
  0x82   :  { %v2495_v25 = vadd.f32 %v2467_v17, %v266_v51  ;;  %v339_v26 = vadd.f32 %v2467_v17, %v256_v50 }
  0x86   :  { %v261_v52 = vpop.permute.xlu0 %260  ;;  %v271_v53 = vpop.permute.xlu1 %270 }
  0x87   :  { %v2499_v27 = vadd.f32 %v2467_v17, %v271_v53  ;;  %v340_v31 = vadd.f32 %v2467_v17, %v261_v52 }
  0x8a   :  { %v276_v54 = vpop.permute.xlu0 %275  ;;  %v281_v55 = vpop.permute.xlu1 %280 }
  0x8b   :  { %v2515_v32 = vadd.f32 %v2467_v17, %v281_v55  ;;  %v2518_v33 = vadd.f32 %v2467_v17, %v276_v54 }
  0x8e   :  { %v286_v56 = vpop.permute.xlu0 %285  ;;  %v2424_v57 = vpop.permute.xlu1 %290 }
  0x8f   :  { %v2521_v34 = vadd.f32 %v2467_v17, %v286_v56 }
  0x92   :  { %v296_v58 = vpop.permute.xlu0 %295  ;;  %v301_v59 = vpop.permute.xlu1 %300 }
  0x93   :  { %v348_v37 = vadd.f32 %v2467_v17, %v301_v59  ;;  %v347_v38 = vadd.f32 %v2467_v17, %v296_v58 }
  0x96   :  { %v306_v60 = vpop.permute.xlu0 %305  ;;  %v311_v61 = vpop.permute.xlu1 %310 }
  0x97   :  { %v2527_v43 = vadd.f32 %v2467_v17, %v311_v61  ;;  %v2534_v46 = vadd.f32 %v2467_v17, %v306_v60 }
  0x9a   :  { %v2426_v62 = vpop.permute.xlu0 %315  ;;  %v2428_v63 = vpop.permute.xlu1 %320 }
  0x9b   :  { %v2544_v50 = vadd.f32 %v2467_v17, %v2428_v63 }
  0x9e   :  { %v2430_v0 = vpop.permute.xlu0 %325  ;;  %v2432_v1 = vpop.permute.xlu1 %330 }
  0xa2   :  { %v2434_v2 = vpop.permute.xlu0 %474  ;;  %v2436_v3 = vpop.permute.xlu1 %477 }
  0xa3   :  { %vm526_vm7 = vcmp.ne.s32.totalorder %v2436_v3, %v2504_v28  ;;  %vm525_vm9 = vcmp.ne.s32.totalorder %v2434_v2, %v2504_v28 }
  0xa4   :  { %vm2554_vm13 = vmor %vm441_vm2, %vm526_vm7 }
  0xa5   :  { %vm2566_vm15 = vmor %vm440_vm1, %vm525_vm9 }
  0xa6   :  { %v2438_v4 = vpop.permute.xlu0 %480  ;;  %v2440_v5 = vpop.permute.xlu1 %483 }
  0xa7   :  { %vm528_vm0 = vcmp.ne.s32.totalorder %v2440_v5, %v2504_v28  ;;  %vm527_vm2 = vcmp.ne.s32.totalorder %v2438_v4, %v2504_v28 }
  0xaa   :  { %v2442_v7 = vpop.permute.xlu0 %486  ;;  %v2444_v8 = vpop.permute.xlu1 %489 }
  0xae   :  { %v2448_v10 = vpop.permute.xlu0 %492  ;;  %v2453_v13 = vpop.permute.xlu1 %495 }
  0xb2   :  { %v2481_v21 = vpop.permute.xlu0 %498  ;;  %v502_v29 = vpop.permute.xlu1 %501 }
  0xb3   :  { %vm534_vm11 = vcmp.ne.s32.totalorder %v502_v29, %v2504_v28  ;;  %vm533_vm7 = vcmp.ne.s32.totalorder %v2481_v21, %v2504_v28 }
  0xb4   :  { %vm567_vm1 = vmor %vm449_vm3, %vm534_vm11 }
  0xb6   :  { %v2540_v47 = vpop.permute.xlu0 %504  ;;  %v508_v2 = vpop.permute.xlu1 %507 }
  0xb7   :  { %vm535_vm12 = vcmp.ne.s32.totalorder %v2540_v47, %v2504_v28 }
  0xd9   :  { %v2161_v35 = vpop.f32.mrb[0].mxu0  ;;  %v2173_v36 = vpop.f32.mrb[0].mxu1 }
  0xda   :  { %v356_v39 = vmul.f32 2.0, %v2161_v35  ;;  %v364_v40 = vmul.f32 2.0, %v2173_v36  ;;  %v157_v41 = vpop.f32.mrb[1].mxu0  ;;  %v197_v42 = vpop.f32.mrb[1].mxu1  ;;  %v351_v35 = vadd.f32 %v2467_v17, %v2426_v62 }
  0xdb   :  { %v355_v44 = vmul.f32 2.0, %v157_v41  ;;  %v363_v45 = vmul.f32 2.0, %v197_v42  ;;  %v511_v42 = vpop.permute.xlu0 %510  ;;  %v514_v41 = vpop.permute.xlu1 %513 }
  0xdc   :  { %v372_v48 = vsub.f32 %v340_v31, %v356_v39  ;;  %v380_v49 = vsub.f32 %v348_v37, %v364_v40 }
  0xdd   :  { %v371_v51 = vsub.f32 %v339_v26, %v355_v44  ;;  %v379_v52 = vsub.f32 %v347_v38, %v363_v45  ;;  %v2164_v53 = vpop.f32.mrb[2].mxu0  ;;  %v2176_v54 = vpop.f32.mrb[2].mxu1 }
  0xde   :  { %v388_v56 = vmax.f32 %v372_v48, 0.0  ;;  %v396_v58 = vmax.f32 %v380_v49, 0.0  ;;  %v358_v59 = vmul.f32 2.0, %v2164_v53  ;;  %v366_v60 = vmul.f32 2.0, %v2176_v54  ;;  %v167_v61 = vpop.f32.mrb[3].mxu0  ;;  %v207_v63 = vpop.f32.mrb[3].mxu1 }
  0xdf   :  { %v2574_v6 = vmax.f32 %v371_v51, 0.0  ;;  %v2576_v12 = vmax.f32 %v379_v52, 0.0  ;;  %v365_v26 = vmul.f32 2.0, %v207_v63  ;;  %v357_v31 = vmul.f32 2.0, %v167_v61 }
  0xe0   :  { %vm550_vm9 = vcmp.gt.f32.partialorder %v396_v58, 100.0  ;;  %vm542_vm14 = vcmp.gt.f32.partialorder %v388_v56, 100.0  ;;  %v374_v37 = vsub.f32 %v2499_v27, %v358_v59  ;;  %v382_v38 = vsub.f32 %v2527_v43, %v366_v60 }
  0xe1   :  { %v2167_v29 = vpop.f32.mrb[4].mxu0  ;;  %v2179_v36 = vpop.f32.mrb[4].mxu1  ;;  %vm2591_vm10 = vmor %vm567_vm1, %vm550_vm9  ;;  %vm549_vm3 = vcmp.gt.f32.partialorder %v2576_v12, 100.0  ;;  %v381_v62 = vsub.f32 %v2534_v46, %v365_v26  ;;  %vm541_vm1 = vcmp.gt.f32.partialorder %v2574_v6, 100.0  ;;  %v373_v15 = vsub.f32 %v2495_v25, %v357_v31 }
  0xe2   :  { %v177_v39 = vpop.f32.mrb[5].mxu0  ;;  %v217_v40 = vpop.f32.mrb[5].mxu1  ;;  %vm2601_vm11 = vmor %vm2554_vm13, %vm542_vm14  ;;  %vm536_vm14 = vcmp.ne.s32.totalorder %v508_v2, %v2504_v28  ;;  %v360_v43 = vmul.f32 2.0, %v2167_v29  ;;  %v599_v45 = vsel %vm2591_vm10, 100.0, %v396_v58  ;;  %v390_v54 = vmax.f32 %v374_v37, 0.0 }
  0xe3   :  { %vm2612_vm9 = vmor %vm443_vm4, %vm528_vm0  ;;  %v359_v44 = vmul.f32 2.0, %v177_v39  ;;  %v367_v5 = vmul.f32 2.0, %v217_v40  ;;  %v591_v21 = vsel %vm2601_vm11, 100.0, %v388_v56  ;;  %v2639_v49 = vsel %vm557_vm6, inf, %v599_v45 }
  0xe4   :  { %vm566_vm13 = vmor %vm448_vm5, %vm533_vm7  ;;  %v2643_v25 = vsel %vm557_vm6, inf, %v591_v21  ;;  %vm445_vm0 = vcmp.eq.s32.totalorder %v2450_v11, %v2476_v19  ;;  %vm537_vm7 = vcmp.ne.s32.totalorder %v511_v42, %v2504_v28  ;;  %v2668_v55 = vmax.f32 %v382_v38, 0.0  ;;  %640 = vmin.xlane.f32.xlu0 %v2639_v49 }
  0xe5   :  { %vm2632_vm4 = vmor %vm566_vm13, %vm549_vm3  ;;  %v375_v46 = vsub.f32 %v2518_v33, %v359_v44  ;;  %v383_v48 = vsub.f32 %v351_v35, %v367_v5  ;;  %v2170_v51 = vpop.f32.mrb[6].mxu0  ;;  %v2645_v52 = vpop.f32.mrb[6].mxu1  ;;  %v397_v56 = vmax.f32 %v381_v62, 0.0  ;;  %624 = vmin.xlane.f32.xlu1 %v2643_v25  ;;  %v376_v59 = vsub.f32 %v2515_v32, %v360_v43 }
  0xe6   :  { %vm2651_vm5 = vmor %vm2566_vm15, %vm541_vm1  ;;  %v187_v4 = vpop.f32.mrb[7].mxu0  ;;  %v227_v58 = vpop.f32.mrb[7].mxu1  ;;  %vm4888_vm15 = vcmp.eq.s32.totalorder %v2450_v11, %v2479_v20  ;;  %v368_v60 = vmul.f32 2.0, %v2179_v36  ;;  %vm4891_vm3 = vcmp.eq.s32.totalorder %v2450_v11, %v2489_v23  ;;  %v598_v26 = vsel %vm2632_vm4, 100.0, %v2576_v12 }
  0xe7   :  { %vm2661_vm10 = vmor %vm442_vm8, %vm527_vm2  ;;  %vm4887_vm8 = vcmp.ne.s32.totalorder %v2442_v7, %v2504_v28  ;;  %v391_v61 = vmax.f32 %v375_v46, 0.0  ;;  %v361_v63 = vmul.f32 2.0, %v187_v4  ;;  %v2692_v7 = vmax.f32 %v373_v15, 0.0 }
  0xe8   :  { %vm2678_vm2 = vmor %vm4888_vm15, %vm4887_vm8  ;;  %v369_v20 = vmul.f32 2.0, %v227_v58  ;;  %v590_v32 = vsel %vm2651_vm5, 100.0, %v2574_v6  ;;  %vm4894_vm1 = vcmp.eq.s32.totalorder %v2450_v11, %v2492_v24  ;;  %v2706_v23 = vmax.f32 %v383_v48, 0.0 }
  0xe9   :  { %vm2688_vm11 = vmor %vm4891_vm3, %vm536_vm14  ;;  %v377_v2 = vsub.f32 %v2521_v34, %v361_v63  ;;  %v2711_v31 = vsel %vm557_vm6, inf, %v598_v26  ;;  %v2715_v12 = vsel %vm557_vm6, inf, %v590_v32  ;;  %v353_v6 = vadd.f32 %v2467_v17, %v2430_v0 }
  0xea   :  { %vm568_vm13 = vmor %vm4894_vm1, %vm535_vm12  ;;  %vm446_vm14 = vcmp.eq.s32.totalorder %v2450_v11, %v2484_v22  ;;  %vm4895_vm12 = vcmp.eq.s32.totalorder %v2450_v11, %v2511_v30  ;;  %638 = vmin.xlane.f32.xlu1 %v2711_v31  ;;  %622 = vmin.xlane.f32.xlu0 %v2715_v12  ;;  %vm551_vm5 = vcmp.gt.f32.partialorder %v397_v56, 100.0  ;;  %vm544_vm8 = vcmp.gt.f32.partialorder %v390_v54, 100.0 }
  0xeb   :  { %vm2726_vm4 = vmor %vm4895_vm12, %vm537_vm7  ;;  %v2732_v34 = vmax.f32 %v376_v59, 0.0  ;;  %v384_v0 = vsub.f32 %v2544_v50, %v368_v60  ;;  %vm552_vm3 = vcmp.gt.f32.partialorder %v2668_v55, 100.0  ;;  %vm545_vm1 = vcmp.gt.f32.partialorder %v391_v61, 100.0  ;;  %v520_v59 = vpop.permute.xlu1 %519 }
  0xec   :  { %vm584_vm15 = vmor %vm568_vm13, %vm551_vm5  ;;  %v2736_v47 = vmax.f32 %v377_v2, 0.0  ;;  %v385_v30 = vsub.f32 %v353_v6, %v369_v20  ;;  %vm543_vm12 = vcmp.gt.f32.partialorder %v2692_v7, 100.0  ;;  %v362_v29 = vmul.f32 2.0, %v2170_v51 }
  0xed   :  { %v600_v35 = vsel %vm584_vm15, 100.0, %v397_v56  ;;  %vm577_vm7 = vmor %vm2612_vm9, %vm544_vm8  ;;  %vm553_vm5 = vcmp.gt.f32.partialorder %v2706_v23, 100.0  ;;  %vm530_vm15 = vcmp.ne.s32.totalorder %v2444_v8, %v2504_v28  ;;  %v420_v37 = vadd.s32 104, %v2446_v9 }
  0xee   :  { %v2743_v36 = vsel %vm557_vm6, inf, %v600_v35  ;;  %v593_v14 = vsel %vm577_vm7, 100.0, %v390_v54  ;;  %vm2747_vm13 = vmor %vm2688_vm11, %vm552_vm3  ;;  %v421_v38 = vadd.s32 112, %v2446_v9  ;;  %v346_v40 = vadd.f32 %v2467_v17, %v2424_v57  ;;  %v517_v57 = vpop.permute.xlu0 %516 }
  0xef   :  { %642 = vmin.xlane.f32.xlu1 %v2743_v36  ;;  %v2759_v62 = vsel %vm557_vm6, inf, %v593_v14  ;;  %vm2764_vm9 = vmor %vm2678_vm2, %vm545_vm1  ;;  %vm531_vm11 = vcmp.ne.s32.totalorder %v2448_v10, %v2504_v28  ;;  %v601_v27 = vsel %vm2747_vm13, 100.0, %v2668_v55  ;;  %v400_v44 = vmax.f32 %v384_v0, 0.0 }
  0xf0   :  { %628 = vmin.xlane.f32.xlu0 %v2759_v62  ;;  %v594_v42 = vsel %vm2764_vm9, 100.0, %v391_v61  ;;  %vm2782_vm2 = vmor %vm2661_vm10, %vm543_vm12  ;;  %vm547_vm8 = vcmp.gt.f32.partialorder %v2736_v47, 100.0  ;;  %v401_v5 = vmax.f32 %v385_v30, 0.0  ;;  %v378_v21 = vsub.f32 %v346_v40, %v362_v29 }
  0xf1   :  { %vm2791_vm3 = vmor %vm2726_vm4, %vm553_vm5  ;;  %v370_v16 = vmul.f32 2.0, %v2645_v52  ;;  %v2808_v46 = vsel %vm557_vm6, inf, %v594_v42  ;;  %vm546_vm4 = vcmp.gt.f32.partialorder %v2732_v34, 100.0  ;;  %vm538_vm7 = vcmp.ne.s32.totalorder %v514_v41, %v2504_v28 }
  0xf2   :  { %vm2801_vm10 = vmor %vm445_vm0, %vm530_vm15  ;;  %vm453_vm0 = vcmp.eq.s32.totalorder %v2450_v11, %v420_v37  ;;  %v2821_v8 = vsel %vm557_vm6, inf, %v601_v27  ;;  %v602_v19 = vsel %vm2791_vm3, 100.0, %v2706_v23  ;;  %v354_v10 = vadd.f32 %v2467_v17, %v2432_v1 }
  0xf3   :  { %vm564_vm1 = vmor %vm446_vm14, %vm531_vm11  ;;  %630 = vmin.xlane.f32.xlu1 %v2808_v46  ;;  %vm454_vm12 = vcmp.eq.s32.totalorder %v2450_v11, %v421_v38  ;;  %vm539_vm14 = vcmp.ne.s32.totalorder %v517_v57, %v2504_v28  ;;  %v592_v22 = vsel %vm2782_vm2, 100.0, %v2692_v7  ;;  %v414_v51 = vadd.s32 56, %v2446_v9 }
  0xf4   :  { %644 = vmin.xlane.f32.xlu0 %v2821_v8  ;;  %vm2837_vm13 = vmor %vm564_vm1, %vm547_vm8  ;;  %vm555_vm5 = vcmp.gt.f32.partialorder %v401_v5, 100.0  ;;  %v394_v52 = vmax.f32 %v378_v21, 0.0  ;;  %v386_v53 = vsub.f32 %v354_v10, %v370_v16  ;;  %v2856_v33 = vsel %vm557_vm6, inf, %v602_v19 }
  0xf5   :  { %vm2846_vm15 = vmor %vm2801_vm10, %vm546_vm4  ;;  %vm554_vm11 = vcmp.gt.f32.partialorder %v400_v44, 100.0  ;;  %v2860_v54 = vsel %vm557_vm6, inf, %v592_v22  ;;  %v596_v55 = vsel %vm2837_vm13, 100.0, %v2736_v47  ;;  %vm447_vm3 = vcmp.eq.s32.totalorder %v2450_v11, %v414_v51 }
  0xf6   :  { %vm2850_vm9 = vmor %vm453_vm0, %vm538_vm7  ;;  %v595_v56 = vsel %vm2846_vm15, 100.0, %v2732_v34  ;;  %vm532_vm10 = vcmp.ne.s32.totalorder %v2453_v13, %v2504_v28  ;;  %v422_v58 = vadd.s32 120, %v2446_v9  ;;  %v402_v60 = vmax.f32 %v386_v53, 0.0 }
  0xf7   :  { %vm572_vm2 = vmor %vm454_vm12, %vm539_vm14  ;;  %646 = vmin.xlane.f32.xlu1 %v2856_v33  ;;  %v2886_v61 = vsel %vm557_vm6, inf, %v596_v55  ;;  %vm548_vm1 = vcmp.gt.f32.partialorder %v394_v52, 100.0  ;;  %v2890_v63 = vsel %vm557_vm6, inf, %v595_v56  ;;  %vm540_vm12 = vcmp.ne.s32.totalorder %v520_v59, %v2504_v28 }
  0xf8   :  { %626 = vmin.xlane.f32.xlu0 %v2860_v54  ;;  %vm2870_vm8 = vmor %vm572_vm2, %vm555_vm5  ;;  %vm455_vm7 = vcmp.eq.s32.totalorder %v2450_v11, %v422_v58  ;;  %vm556_vm13 = vcmp.gt.f32.partialorder %v402_v60, 100.0 }
  0xf9   :  { %vm2880_vm4 = vmor %vm2850_vm9, %vm554_vm11  ;;  %v604_v9 = vsel %vm2870_vm8, 100.0, %v401_v5 }
  0xfa   :  { %vm565_vm0 = vmor %vm447_vm3, %vm532_vm10  ;;  %v603_v13 = vsel %vm2880_vm4, 100.0, %v400_v44  ;;  %v2902_v3 = vsel %vm557_vm6, inf, %v604_v9 }
  0xfb   :  { %634 = vmin.xlane.f32.xlu1 %v2886_v61  ;;  %vm581_vm14 = vmor %vm565_vm0, %vm548_vm1  ;;  %v2906_v7 = vsel %vm557_vm6, inf, %v603_v13 }
  0xfc   :  { %632 = vmin.xlane.f32.xlu0 %v2890_v63  ;;  %vm573_vm5 = vmor %vm455_vm7, %vm540_vm12  ;;  %v597_v20 = vsel %vm581_vm14, 100.0, %v394_v52 }
  0xfd   :  { %vm589_vm15 = vmor %vm573_vm5, %vm556_vm13  ;;  %v2912_v28 = vsel %vm557_vm6, inf, %v597_v20 }
  0xfe   :  { %v605_v26 = vsel %vm589_vm15, 100.0, %v402_v60 }
  0xff   :  { %650 = vmin.xlane.f32.xlu1 %v2902_v3  ;;  %v2917_v32 = vsel %vm557_vm6, inf, %v605_v26 }
 0x100   :  { %648 = vmin.xlane.f32.xlu0 %v2906_v7 }
 0x104   :  { %636 = vmin.xlane.f32.xlu0 %v2912_v28 }
 0x108   :  { %652 = vmin.xlane.f32.xlu0 %v2917_v32 }
 0x171   :  { %v2920_v23 = vpop.xlane.xlu0 %640 }
 0x172   :  { %4918 = vst [vmem:[#allocation2_spill] sm:$0xff] %v2920_v23  ;;  %v2922_v2 = vpop.xlane.xlu1 %624  ;;  %vm663_vm9 = vcmp.eq.f32.partialorder %v2639_v49, %v2920_v23 }
 0x173   :  { %4919 = vst [vmem:[#allocation3_spill] sm:$0xff] %v2922_v2  ;;  %vm655_vm11 = vcmp.eq.f32.partialorder %v2643_v25, %v2922_v2  ;;  %v2932_v24 = vsel %vm663_vm9, %v2450_v11, 128 }
 0x174   :  { %v2929_v6 = vsel %vm655_vm11, %v2450_v11, 128  ;;  %v813_v35 = vshra.s32 %v2932_v24, 16 }
 0x175   :  { %v701_v34 = vshra.s32 %v2929_v6, 16 }
 0x176   :  { %v2958_v39 = vcvt.s32.f32 %v813_v35 }
 0x177   :  { %v2935_v0 = vpop.xlane.xlu1 %638  ;;  %v2937_v47 = vpop.xlane.xlu0 %622  ;;  %v2943_v30 = vcvt.s32.f32 %v701_v34 }
 0x178   :  { %4920 = vst [vmem:[#allocation4_spill] sm:$0xff] %v2935_v0  ;;  %4921 = vst [vmem:[#allocation5_spill] sm:$0xff] %v2937_v47  ;;  %vm662_vm6 = vcmp.eq.f32.partialorder %v2711_v31, %v2935_v0  ;;  %vm654_vm2 = vcmp.eq.f32.partialorder %v2715_v12, %v2937_v47 }
 0x179   :  { %v2947_v29 = vsel %vm654_vm2, %v2450_v11, 128  ;;  %v2950_v14 = vsel %vm662_vm6, %v2450_v11, 128  ;;  %704 = vmin.xlane.f32.xlu0 %v2943_v30 }
 0x17a   :  { %v687_v50 = vshra.s32 %v2947_v29, 16  ;;  %v799_v41 = vshra.s32 %v2950_v14, 16 }
 0x17c   :  { %v2954_v37 = vpop.xlane.xlu1 %642  ;;  %v2960_v40 = vcvt.s32.f32 %v687_v50  ;;  %v2975_v44 = vcvt.s32.f32 %v799_v41 }
 0x17d   :  { %4922 = vst [vmem:[#allocation6_spill] sm:$0xff] %v2954_v37  ;;  %v2956_v38 = vpop.xlane.xlu0 %628  ;;  %816 = vmin.xlane.f32.xlu0 %v2958_v39  ;;  %vm664_vm10 = vcmp.eq.f32.partialorder %v2743_v36, %v2954_v37 }
 0x17e   :  { %4923 = vst [vmem:[#allocation7_spill] sm:$0xff] %v2956_v38  ;;  %vm657_vm8 = vcmp.eq.f32.partialorder %v2759_v62, %v2956_v38  ;;  %690 = vmin.xlane.f32.xlu1 %v2960_v40  ;;  %v3001_v22 = vsel %vm664_vm10, %v2450_v11, 128 }
 0x17f   :  { %v2968_v27 = vsel %vm657_vm8, %v2450_v11, 128  ;;  %v827_v17 = vshra.s32 %v3001_v22, 16 }
 0x180   :  { %v2970_v42 = vpop.xlane.xlu1 %630  ;;  %v729_v43 = vshra.s32 %v2968_v27, 16 }
 0x181   :  { %4924 = vst [vmem:[#allocation8_spill] sm:$0xff] %v2970_v42  ;;  %v2973_v57 = vpop.xlane.xlu0 %644  ;;  %vm658_vm1 = vcmp.eq.f32.partialorder %v2808_v46, %v2970_v42  ;;  %v3032_v18 = vcvt.s32.f32 %v827_v17 }
 0x182   :  { %4925 = vst [vmem:[#allocation9_spill] sm:$0xff] %v2973_v57  ;;  %vm665_vm3 = vcmp.eq.f32.partialorder %v2821_v8, %v2973_v57  ;;  %v2979_v5 = vcvt.s32.f32 %v729_v43  ;;  %802 = vmin.xlane.f32.xlu1 %v2975_v44  ;;  %v3020_v55 = vsel %vm658_vm1, %v2450_v11, 128 }
 0x183   :  { %v2983_v15 = vsel %vm665_vm3, %v2450_v11, 128  ;;  %v743_v59 = vshra.s32 %v3020_v55, 16 }
 0x184   :  { %732 = vmin.xlane.f32.xlu0 %v2979_v5  ;;  %v841_v45 = vshra.s32 %v2983_v15, 16  ;;  %v2991_v16 = vpop.xlane.xlu1 %646 }
 0x185   :  { %v2989_v21 = vpop.xlane.xlu0 %626  ;;  %4927 = vst [vmem:[#allocation11_spill] sm:$0xff] %v2991_v16  ;;  %vm666_vm7 = vcmp.eq.f32.partialorder %v2856_v33, %v2991_v16  ;;  %v3054_v35 = vcvt.s32.f32 %v743_v59 }
 0x186   :  { %4926 = vst [vmem:[#allocation10_spill] sm:$0xff] %v2989_v21  ;;  %vm656_vm4 = vcmp.eq.f32.partialorder %v2860_v54, %v2989_v21  ;;  %v2995_v19 = vcvt.s32.f32 %v841_v45  ;;  %v3039_v9 = vsel %vm666_vm7, %v2450_v11, 128 }
 0x187   :  { %v2998_v10 = vsel %vm656_vm4, %v2450_v11, 128  ;;  %v855_v50 = vshra.s32 %v3039_v9, 16 }
 0x188   :  { %844 = vmin.xlane.f32.xlu0 %v2995_v19  ;;  %v715_v48 = vshra.s32 %v2998_v10, 16  ;;  %v3014_v52 = vpop.xlane.xlu1 %634 }
 0x189   :  { %v3007_v51 = vpop.xlane.xlu0 %632  ;;  %4929 = vst [vmem:[#allocation13_spill] sm:$0xff] %v3014_v52  ;;  %vm660_vm14 = vcmp.eq.f32.partialorder %v2886_v61, %v3014_v52 }
 0x18a   :  { %4928 = vst [vmem:[#allocation12_spill] sm:$0xff] %v3007_v51  ;;  %vm659_vm0 = vcmp.eq.f32.partialorder %v2890_v63, %v3007_v51  ;;  %v3011_v1 = vcvt.s32.f32 %v715_v48  ;;  %v3061_v43 = vsel %vm660_vm14, %v2450_v11, 128 }
 0x18b   :  { %v3017_v53 = vsel %vm659_vm0, %v2450_v11, 128  ;;  %v771_v59 = vshra.s32 %v3061_v43, 16 }
 0x18c   :  { %718 = vmin.xlane.f32.xlu1 %v3011_v1  ;;  %v757_v56 = vshra.s32 %v3017_v53, 16  ;;  %v3046_v20 = vpop.xlane.xlu1 %650 }
 0x18d   :  { %v3026_v4 = vpop.xlane.xlu0 %648  ;;  %4931 = vst [vmem:[#allocation15_spill] sm:$0xff] %v3046_v20  ;;  %vm668_vm5 = vcmp.eq.f32.partialorder %v2902_v3, %v3046_v20 }
 0x18e   :  { %4930 = vst [vmem:[#allocation14_spill] sm:$0xff] %v3026_v4  ;;  %vm667_vm12 = vcmp.eq.f32.partialorder %v2906_v7, %v3026_v4  ;;  %v3030_v58 = vcvt.s32.f32 %v757_v56  ;;  %v3074_v56 = vcvt.s32.f32 %v855_v50  ;;  %v3081_v20 = vsel %vm668_vm5, %v2450_v11, 128 }
 0x18f   :  { %v3036_v60 = vsel %vm667_vm12, %v2450_v11, 128  ;;  %v883_v50 = vshra.s32 %v3081_v20, 16 }
 0x190   :  { %760 = vmin.xlane.f32.xlu0 %v3030_v58  ;;  %830 = vmin.xlane.f32.xlu1 %v3032_v18  ;;  %v869_v13 = vshra.s32 %v3036_v60, 16 }
 0x191   :  { %v3048_v26 = vpop.xlane.xlu0 %636 }
 0x192   :  { %4932 = vst [vmem:[#allocation16_spill] sm:$0xff] %v3048_v26  ;;  %vm661_vm13 = vcmp.eq.f32.partialorder %v2912_v28, %v3048_v26  ;;  %v3052_v34 = vcvt.s32.f32 %v869_v13  ;;  %v700_v26 = vand.u32 65535, %v2929_v6  ;;  %v798_v6 = vand.u32 65535, %v2950_v14 }
 0x193   :  { %v3058_v41 = vsel %vm661_vm13, %v2450_v11, 128  ;;  %v840_v14 = vand.u32 65535, %v2983_v15 }
 0x194   :  { %872 = vmin.xlane.f32.xlu0 %v3052_v34  ;;  %746 = vmin.xlane.f32.xlu1 %v3054_v35  ;;  %v785_v45 = vshra.s32 %v3058_v41, 16  ;;  %v702_v4 = vcvt.s32.f32 %v700_v26 }
 0x195   :  { %v3068_v48 = vpop.xlane.xlu0 %652 }
 0x196   :  { %4933 = vst [vmem:[#allocation17_spill] sm:$0xff] %v3068_v48  ;;  %vm669_vm15 = vcmp.eq.f32.partialorder %v2917_v32, %v3068_v48  ;;  %v3072_v17 = vcvt.s32.f32 %v785_v45  ;;  %v3088_v45 = vcvt.s32.f32 %v771_v59  ;;  %v3093_v48 = vcvt.s32.f32 %v883_v50 }
 0x197   :  { %v3078_v13 = vsel %vm669_vm15, %v2450_v11, 128  ;;  %v686_v59 = vand.u32 65535, %v2947_v29 }
 0x198   :  { %788 = vmin.xlane.f32.xlu0 %v3072_v17  ;;  %858 = vmin.xlane.f32.xlu1 %v3074_v56  ;;  %v897_v52 = vshra.s32 %v3078_v13, 16 }
 0x199   :  { %v688_v57 = vcvt.s32.f32 %v686_v59 }
 0x19a   :  { %v3086_v16 = vcvt.s32.f32 %v897_v52  ;;  %v812_v52 = vand.u32 65535, %v2932_v24  ;;  %v728_v24 = vand.u32 65535, %v2968_v27 }
 0x19c   :  { %900 = vmin.xlane.f32.xlu0 %v3086_v16  ;;  %774 = vmin.xlane.f32.xlu1 %v3088_v45  ;;  %v814_v21 = vcvt.s32.f32 %v812_v52  ;;  %v730_v52 = vcvt.s32.f32 %v728_v24 }
 0x1a0   :  { %886 = vmin.xlane.f32.xlu1 %v3093_v48 }
 0x206   :  { %v3097_v42 = vpop.xlane.xlu0 %704 }
 0x207   :  { %vm706_vm9 = vcmp.eq.f32.partialorder %v2943_v30, %v3097_v42 }
 0x208   :  { %v707_v37 = vsel %vm706_vm9, %v702_v4, inf  ;;  %v800_v4 = vcvt.s32.f32 %v798_v6  ;;  %v756_v6 = vand.u32 65535, %v3017_v53 }
 0x209   :  { %708 = vmin.xlane.f32.xlu0 %v707_v37 }
 0x20a   :  { %v3103_v51 = vpop.xlane.xlu0 %816 }
 0x20b   :  { %v3105_v50 = vpop.xlane.xlu1 %690  ;;  %vm818_vm11 = vcmp.eq.f32.partialorder %v2958_v39, %v3103_v51 }
 0x20c   :  { %vm692_vm6 = vcmp.eq.f32.partialorder %v2960_v40, %v3105_v50  ;;  %v819_v29 = vsel %vm818_vm11, %v814_v21, inf  ;;  %v714_v21 = vand.u32 65535, %v2998_v10 }
 0x20d   :  { %v693_v30 = vsel %vm692_vm6, %v688_v57, inf  ;;  %820 = vmin.xlane.f32.xlu0 %v819_v29  ;;  %v842_v57 = vcvt.s32.f32 %v840_v14 }
 0x20e   :  { %694 = vmin.xlane.f32.xlu1 %v693_v30  ;;  %v716_v15 = vcvt.s32.f32 %v714_v21  ;;  %v758_v30 = vcvt.s32.f32 %v756_v6 }
 0x20f   :  { %v3113_v37 = vpop.xlane.xlu1 %802 }
 0x210   :  { %vm804_vm2 = vcmp.eq.f32.partialorder %v2975_v44, %v3113_v37 }
 0x211   :  { %v3115_v26 = vpop.xlane.xlu0 %732  ;;  %v805_v39 = vsel %vm804_vm2, %v800_v4, inf  ;;  %v868_v4 = vand.u32 65535, %v3036_v60  ;;  %v784_v60 = vand.u32 65535, %v3058_v41  ;;  %v896_v41 = vand.u32 65535, %v3078_v13 }
 0x212   :  { %vm734_vm8 = vcmp.eq.f32.partialorder %v2979_v5, %v3115_v26  ;;  %806 = vmin.xlane.f32.xlu1 %v805_v39  ;;  %v826_v5 = vand.u32 65535, %v3001_v22  ;;  %v882_v13 = vand.u32 65535, %v3081_v20  ;;  %v711_v20 = vcvt.f32.s32 %v3097_v42 }
 0x213   :  { %v735_v40 = vsel %vm734_vm8, %v730_v52, inf  ;;  %v742_v52 = vand.u32 65535, %v3020_v55  ;;  %v870_v39 = vcvt.s32.f32 %v868_v4  ;;  %v854_v55 = vand.u32 65535, %v3039_v9 }
 0x214   :  { %736 = vmin.xlane.f32.xlu0 %v735_v40  ;;  %v770_v9 = vand.u32 65535, %v3061_v43  ;;  %v739_v42 = vcvt.f32.s32 %v3115_v26 }
 0x215   :  { %v3122_v27 = vpop.xlane.xlu0 %844  ;;  %v744_v40 = vcvt.s32.f32 %v742_v52  ;;  %v823_v52 = vcvt.f32.s32 %v3103_v51 }
 0x216   :  { %vm846_vm3 = vcmp.eq.f32.partialorder %v2995_v19, %v3122_v27  ;;  %v828_v19 = vcvt.s32.f32 %v826_v5 }
 0x217   :  { %v847_v59 = vsel %vm846_vm3, %v842_v57, inf }
 0x218   :  { %848 = vmin.xlane.f32.xlu0 %v847_v59  ;;  %v786_v59 = vcvt.s32.f32 %v784_v60  ;;  %v809_v60 = vcvt.f32.s32 %v3113_v37 }
 0x219   :  { %v3127_v44 = vpop.xlane.xlu1 %718 }
 0x21a   :  { %vm720_vm10 = vcmp.eq.f32.partialorder %v3011_v1, %v3127_v44  ;;  %v810_v37 = vshll.u32 %v809_v60, 16 }
 0x21b   :  { %v721_v24 = vsel %vm720_vm10, %v716_v15, inf  ;;  %v856_v15 = vcvt.s32.f32 %v854_v55 }
 0x21c   :  { %722 = vmin.xlane.f32.xlu1 %v721_v24  ;;  %v898_v24 = vcvt.s32.f32 %v896_v41 }
 0x21d   :  { %v3133_v29 = vpop.xlane.xlu0 %760  ;;  %v3135_v10 = vpop.xlane.xlu1 %830 }
 0x21e   :  { %vm762_vm4 = vcmp.eq.f32.partialorder %v3030_v58, %v3133_v29  ;;  %vm832_vm1 = vcmp.eq.f32.partialorder %v3032_v18, %v3135_v10 }
 0x21f   :  { %v763_v22 = vsel %vm762_vm4, %v758_v30, inf  ;;  %v833_v1 = vsel %vm832_vm1, %v828_v19, inf  ;;  %v772_v30 = vcvt.s32.f32 %v770_v9  ;;  %v884_v19 = vcvt.s32.f32 %v882_v13 }
 0x220   :  { %764 = vmin.xlane.f32.xlu0 %v763_v22  ;;  %834 = vmin.xlane.f32.xlu1 %v833_v1  ;;  %v712_v22 = vshll.u32 %v711_v20, 16  ;;  %v851_v9 = vcvt.f32.s32 %v3122_v27 }
 0x221   :  { %v3143_v53 = vpop.xlane.xlu0 %872  ;;  %v3145_v14 = vpop.xlane.xlu1 %746 }
 0x222   :  { %vm874_vm0 = vcmp.eq.f32.partialorder %v3052_v34, %v3143_v53  ;;  %vm748_vm7 = vcmp.eq.f32.partialorder %v3054_v35, %v3145_v14 }
 0x223   :  { %v875_v58 = vsel %vm874_vm0, %v870_v39, inf  ;;  %v749_v18 = vsel %vm748_vm7, %v744_v40, inf  ;;  %v824_v40 = vshll.u32 %v823_v52, 16  ;;  %v767_v52 = vcvt.f32.s32 %v3133_v29 }
 0x224   :  { %876 = vmin.xlane.f32.xlu0 %v875_v58  ;;  %750 = vmin.xlane.f32.xlu1 %v749_v18  ;;  %v753_v29 = vcvt.f32.s32 %v3145_v14 }
 0x225   :  { %v3153_v57 = vpop.xlane.xlu0 %788  ;;  %v3155_v21 = vpop.xlane.xlu1 %858 }
 0x226   :  { %vm790_vm12 = vcmp.eq.f32.partialorder %v3072_v17, %v3153_v57  ;;  %vm860_vm14 = vcmp.eq.f32.partialorder %v3074_v56, %v3155_v21  ;;  %v795_v14 = vcvt.f32.s32 %v3153_v57 }
 0x227   :  { %v791_v34 = vsel %vm790_vm12, %v786_v59, inf  ;;  %v861_v35 = vsel %vm860_vm14, %v856_v15, inf }
 0x228   :  { %792 = vmin.xlane.f32.xlu0 %v791_v34  ;;  %862 = vmin.xlane.f32.xlu1 %v861_v35 }
 0x229   :  { %v3163_v6 = vpop.xlane.xlu0 %900  ;;  %v3165_v5 = vpop.xlane.xlu1 %774 }
 0x22a   :  { %vm902_vm13 = vcmp.eq.f32.partialorder %v3086_v16, %v3163_v6  ;;  %vm776_vm5 = vcmp.eq.f32.partialorder %v3088_v45, %v3165_v5  ;;  %v697_v45 = vcvt.f32.s32 %v3105_v50 }
 0x22b   :  { %v903_v43 = vsel %vm902_vm13, %v898_v24, inf  ;;  %v777_v17 = vsel %vm776_vm5, %v772_v30, inf }
 0x22c   :  { %904 = vmin.xlane.f32.xlu0 %v903_v43  ;;  %778 = vmin.xlane.f32.xlu1 %v777_v17  ;;  %v698_v18 = vshll.u32 %v697_v45, 16  ;;  %v852_v43 = vshll.u32 %v851_v9, 16 }
 0x22d   :  { %v3172_v56 = vpop.xlane.xlu1 %886 }
 0x22e   :  { %vm888_vm15 = vcmp.eq.f32.partialorder %v3093_v48, %v3172_v56 }
 0x22f   :  { %v889_v4 = vsel %vm888_vm15, %v884_v19, inf  ;;  %v725_v19 = vcvt.f32.s32 %v3127_v44 }
 0x230   :  { %890 = vmin.xlane.f32.xlu1 %v889_v4 }
 0x231   :  { %v726_v44 = vshll.u32 %v725_v19, 16  ;;  %v781_v19 = vcvt.f32.s32 %v3165_v5 }
 0x296   :  { %v709_v16 = vpop.xlane.xlu0 %708 }
 0x297   :  { %v710_v1 = vcvt.f32.s32 %v709_v16 }
 0x299   :  { %v3179_v39 = vadd.s32 %v712_v22, %v710_v1  ;;  %v837_v22 = vcvt.f32.s32 %v3135_v10  ;;  %v768_v1 = vshll.u32 %v767_v52, 16 }
 0x29a   :  { %v821_v55 = vpop.xlane.xlu0 %820 }
 0x29b   :  { %v695_v58 = vpop.xlane.xlu1 %694  ;;  %v822_v48 = vcvt.f32.s32 %v821_v55  ;;  %vm911_vm9 = vcmp.eq.s32.totalorder %v2450_v11, %v3179_v39 }
 0x29c   :  { %v696_v59 = vcvt.f32.s32 %v695_v58  ;;  %v3186_v51 = vsel %vm911_vm9, inf, %v2643_v25  ;;  %v740_v25 = vshll.u32 %v739_v42, 16  ;;  %v838_v58 = vshll.u32 %v837_v22, 16 }
 0x29d   :  { %v3188_v50 = vadd.s32 %v824_v40, %v822_v48  ;;  %944 = vmin.xlane.f32.xlu0 %v3186_v51  ;;  %v879_v40 = vcvt.f32.s32 %v3143_v53  ;;  %v754_v42 = vshll.u32 %v753_v29, 16 }
 0x29e   :  { %v3190_v15 = vadd.s32 %v698_v18, %v696_v59 }
 0x29f   :  { %v807_v41 = vpop.xlane.xlu1 %806  ;;  %vm919_vm11 = vcmp.eq.s32.totalorder %v2450_v11, %v3188_v50  ;;  %v880_v53 = vshll.u32 %v879_v40, 16 }
 0x2a0   :  { %v808_v35 = vcvt.f32.s32 %v807_v41  ;;  %vm910_vm6 = vcmp.eq.s32.totalorder %v2450_v11, %v3190_v15  ;;  %v3199_v24 = vsel %vm919_vm11, inf, %v2639_v49 }
 0x2a1   :  { %v737_v34 = vpop.xlane.xlu0 %736  ;;  %v3202_v30 = vsel %vm910_vm6, inf, %v2715_v12  ;;  %960 = vmin.xlane.f32.xlu0 %v3199_v24 }
 0x2a2   :  { %v738_v26 = vcvt.f32.s32 %v737_v34  ;;  %v3204_v13 = vadd.s32 %v810_v37, %v808_v35  ;;  %942 = vmin.xlane.f32.xlu1 %v3202_v30  ;;  %v865_v37 = vcvt.f32.s32 %v3155_v21  ;;  %v796_v21 = vshll.u32 %v795_v14, 16 }
 0x2a4   :  { %v3208_v27 = vadd.s32 %v740_v25, %v738_v26  ;;  %vm918_vm2 = vcmp.eq.s32.totalorder %v2450_v11, %v3204_v13 }
 0x2a5   :  { %v849_v17 = vpop.xlane.xlu0 %848  ;;  %v3216_v12 = vsel %vm918_vm2, inf, %v2711_v31 }
 0x2a6   :  { %v850_v49 = vcvt.f32.s32 %v849_v17  ;;  %vm913_vm8 = vcmp.eq.s32.totalorder %v2450_v11, %v3208_v27  ;;  %958 = vmin.xlane.f32.xlu1 %v3216_v12  ;;  %v907_v17 = vcvt.f32.s32 %v3163_v6 }
 0x2a7   :  { %v3219_v4 = vsel %vm913_vm8, inf, %v2759_v62 }
 0x2a8   :  { %v3222_v20 = vadd.s32 %v852_v43, %v850_v49  ;;  %948 = vmin.xlane.f32.xlu0 %v3219_v4  ;;  %v866_v43 = vshll.u32 %v865_v37, 16  ;;  %v908_v5 = vshll.u32 %v907_v17, 16 }
 0x2a9   :  { %v723_v16 = vpop.xlane.xlu1 %722 }
 0x2aa   :  { %4934 = vst [vmem:[#allocation18_spill] sm:$0xff] %v3222_v20  ;;  %v724_v45 = vcvt.f32.s32 %v723_v16  ;;  %vm921_vm3 = vcmp.eq.s32.totalorder %v2450_v11, %v3222_v20 }
 0x2ab   :  { %v3230_v31 = vsel %vm921_vm3, inf, %v2821_v8 }
 0x2ac   :  { %v3232_v62 = vadd.s32 %v726_v44, %v724_v45  ;;  %964 = vmin.xlane.f32.xlu0 %v3230_v31  ;;  %v782_v45 = vshll.u32 %v781_v19, 16 }
 0x2ad   :  { %v765_v60 = vpop.xlane.xlu0 %764  ;;  %v835_v55 = vpop.xlane.xlu1 %834 }
 0x2ae   :  { %4935 = vst [vmem:[#allocation19_spill] sm:$0xff] %v3232_v62  ;;  %v766_v10 = vcvt.f32.s32 %v765_v60  ;;  %v836_v18 = vcvt.f32.s32 %v835_v55  ;;  %vm912_vm10 = vcmp.eq.s32.totalorder %v2450_v11, %v3232_v62 }
 0x2af   :  { %v3240_v8 = vsel %vm912_vm10, inf, %v2860_v54 }
 0x2b0   :  { %v3242_v48 = vadd.s32 %v768_v1, %v766_v10  ;;  %v3244_v59 = vadd.s32 %v838_v58, %v836_v18  ;;  %946 = vmin.xlane.f32.xlu1 %v3240_v8  ;;  %v893_v1 = vcvt.f32.s32 %v3172_v56 }
 0x2b1   :  { %v877_v41 = vpop.xlane.xlu0 %876  ;;  %v751_v9 = vpop.xlane.xlu1 %750 }
 0x2b2   :  { %4936 = vst [vmem:[#allocation20_spill] sm:$0xff] %v3242_v48  ;;  %4937 = vst [vmem:[#allocation21_spill] sm:$0xff] %v3244_v59  ;;  %v878_v34 = vcvt.f32.s32 %v877_v41  ;;  %v752_v35 = vcvt.f32.s32 %v751_v9  ;;  %vm915_vm4 = vcmp.eq.s32.totalorder %v2450_v11, %v3242_v48  ;;  %vm920_vm1 = vcmp.eq.s32.totalorder %v2450_v11, %v3244_v59 }
 0x2b3   :  { %v3254_v54 = vsel %vm915_vm4, inf, %v2890_v63  ;;  %v3257_v25 = vsel %vm920_vm1, inf, %v2743_v36  ;;  %v894_v18 = vshll.u32 %v893_v1, 16 }
 0x2b4   :  { %v3259_v26 = vadd.s32 %v880_v53, %v878_v34  ;;  %v3261_v57 = vadd.s32 %v754_v42, %v752_v35  ;;  %952 = vmin.xlane.f32.xlu0 %v3254_v54  ;;  %962 = vmin.xlane.f32.xlu1 %v3257_v25 }
 0x2b5   :  { %v793_v49 = vpop.xlane.xlu0 %792  ;;  %v863_v63 = vpop.xlane.xlu1 %862 }
 0x2b6   :  { %4938 = vst [vmem:[#allocation22_spill] sm:$0xff] %v3259_v26  ;;  %4939 = vst [vmem:[#allocation23_spill] sm:$0xff] %v3261_v57  ;;  %v794_v52 = vcvt.f32.s32 %v793_v49  ;;  %v864_v16 = vcvt.f32.s32 %v863_v63  ;;  %vm923_vm0 = vcmp.eq.s32.totalorder %v2450_v11, %v3259_v26  ;;  %vm914_vm7 = vcmp.eq.s32.totalorder %v2450_v11, %v3261_v57 }
 0x2b7   :  { %v3272_v36 = vsel %vm923_vm0, inf, %v2906_v7  ;;  %v3275_v44 = vsel %vm914_vm7, inf, %v2808_v46 }
 0x2b8   :  { %v3277_v22 = vadd.s32 %v796_v21, %v794_v52  ;;  %v3279_v6 = vadd.s32 %v866_v43, %v864_v16  ;;  %968 = vmin.xlane.f32.xlu0 %v3272_v36  ;;  %950 = vmin.xlane.f32.xlu1 %v3275_v44 }
 0x2b9   :  { %v905_v40 = vpop.xlane.xlu0 %904  ;;  %v779_v29 = vpop.xlane.xlu1 %778 }
 0x2ba   :  { %4940 = vst [vmem:[#allocation24_spill] sm:$0xff] %v3277_v22  ;;  %4941 = vst [vmem:[#allocation25_spill] sm:$0xff] %v3279_v6  ;;  %v906_v60 = vcvt.f32.s32 %v905_v40  ;;  %v780_v7 = vcvt.f32.s32 %v779_v29  ;;  %vm917_vm12 = vcmp.eq.s32.totalorder %v2450_v11, %v3277_v22  ;;  %vm922_vm14 = vcmp.eq.s32.totalorder %v2450_v11, %v3279_v6 }
 0x2bb   :  { %v3289_v46 = vsel %vm917_vm12, inf, %v2912_v28  ;;  %v3292_v55 = vsel %vm922_vm14, inf, %v2856_v33 }
 0x2bc   :  { %v3294_v58 = vadd.s32 %v908_v5, %v906_v60  ;;  %v3296_v10 = vadd.s32 %v782_v45, %v780_v7  ;;  %956 = vmin.xlane.f32.xlu0 %v3289_v46  ;;  %966 = vmin.xlane.f32.xlu1 %v3292_v55 }
 0x2bd   :  { %v891_v56 = vpop.xlane.xlu1 %890 }
 0x2be   :  { %4942 = vst [vmem:[#allocation26_spill] sm:$0xff] %v3294_v58  ;;  %4943 = vst [vmem:[#allocation27_spill] sm:$0xff] %v3296_v10  ;;  %v892_v53 = vcvt.f32.s32 %v891_v56  ;;  %vm925_vm13 = vcmp.eq.s32.totalorder %v2450_v11, %v3294_v58  ;;  %vm916_vm5 = vcmp.eq.s32.totalorder %v2450_v11, %v3296_v10 }
 0x2bf   :  { %v3305_v33 = vsel %vm925_vm13, inf, %v2917_v32  ;;  %v3308_v28 = vsel %vm916_vm5, inf, %v2886_v61 }
 0x2c0   :  { %v3310_v42 = vadd.s32 %v894_v18, %v892_v53  ;;  %972 = vmin.xlane.f32.xlu0 %v3305_v33  ;;  %954 = vmin.xlane.f32.xlu1 %v3308_v28 }
 0x2c2   :  { %4944 = vst [vmem:[#allocation28_spill] sm:$0xff] %v3310_v42  ;;  %vm924_vm15 = vcmp.eq.s32.totalorder %v2450_v11, %v3310_v42 }
 0x2c3   :  { %v3317_v14 = vsel %vm924_vm15, inf, %v2902_v3 }
 0x2c4   :  { %970 = vmin.xlane.f32.xlu1 %v3317_v14 }
 0x32a   :  { %v3320_v37 = vpop.xlane.xlu0 %944 }
 0x32b   :  { %4945 = vst [vmem:[#allocation29_spill] sm:$0xff] %v3320_v37  ;;  %vm975_vm9 = vcmp.eq.f32.partialorder %v3186_v51, %v3320_v37 }
 0x32c   :  { %v3325_v61 = vsel %vm975_vm9, %v2450_v11, 128 }
 0x32d   :  { %v1021_v32 = vshra.s32 %v3325_v61, 16  ;;  %v1020_v57 = vand.u32 65535, %v3325_v61 }
 0x32e   :  { %v3328_v41 = vpop.xlane.xlu0 %960 }
 0x32f   :  { %4946 = vst [vmem:[#allocation30_spill] sm:$0xff] %v3328_v41  ;;  %v3330_v9 = vpop.xlane.xlu1 %942  ;;  %vm983_vm11 = vcmp.eq.f32.partialorder %v3199_v24, %v3328_v41  ;;  %v3339_v34 = vcvt.s32.f32 %v1021_v32 }
 0x330   :  { %4947 = vst [vmem:[#allocation31_spill] sm:$0xff] %v3330_v9  ;;  %vm974_vm6 = vcmp.eq.f32.partialorder %v3202_v30, %v3330_v9  ;;  %v3337_v3 = vsel %vm983_vm11, %v2450_v11, 128 }
 0x331   :  { %v3342_v35 = vsel %vm974_vm6, %v2450_v11, 128  ;;  %v1133_v21 = vshra.s32 %v3337_v3, 16  ;;  %1024 = vmin.xlane.f32.xlu0 %v3339_v34  ;;  %v1132_v26 = vand.u32 65535, %v3337_v3 }
 0x332   :  { %v1007_v43 = vshra.s32 %v3342_v35, 16 }
 0x333   :  { %v3347_v17 = vpop.xlane.xlu1 %958  ;;  %v3353_v49 = vcvt.s32.f32 %v1133_v21  ;;  %v1134_v61 = vcvt.s32.f32 %v1132_v26 }
 0x334   :  { %4948 = vst [vmem:[#allocation32_spill] sm:$0xff] %v3347_v17  ;;  %vm982_vm2 = vcmp.eq.f32.partialorder %v3216_v12, %v3347_v17  ;;  %v3355_v63 = vcvt.s32.f32 %v1007_v43 }
 0x335   :  { %v3349_v19 = vpop.xlane.xlu0 %948  ;;  %v3360_v52 = vsel %vm982_vm2, %v2450_v11, 128  ;;  %1136 = vmin.xlane.f32.xlu0 %v3353_v49 }
 0x336   :  { %4949 = vst [vmem:[#allocation33_spill] sm:$0xff] %v3349_v19  ;;  %vm977_vm8 = vcmp.eq.f32.partialorder %v3219_v4, %v3349_v19  ;;  %1010 = vmin.xlane.f32.xlu1 %v3355_v63  ;;  %v1119_v5 = vshra.s32 %v3360_v52, 16  ;;  %v1118_v48 = vand.u32 65535, %v3360_v52 }
 0x337   :  { %v3363_v16 = vsel %vm977_vm8, %v2450_v11, 128 }
 0x338   :  { %v1049_v45 = vshra.s32 %v3363_v16, 16  ;;  %v3371_v40 = vcvt.s32.f32 %v1119_v5 }
 0x339   :  { %v3369_v1 = vpop.xlane.xlu0 %964 }
 0x33a   :  { %4950 = vst [vmem:[#allocation34_spill] sm:$0xff] %v3369_v1  ;;  %vm985_vm3 = vcmp.eq.f32.partialorder %v3230_v31, %v3369_v1  ;;  %v3375_v29 = vcvt.s32.f32 %v1049_v45  ;;  %1122 = vmin.xlane.f32.xlu1 %v3371_v40 }
 0x33b   :  { %v3378_v60 = vsel %vm985_vm3, %v2450_v11, 128 }
 0x33c   :  { %1052 = vmin.xlane.f32.xlu0 %v3375_v29  ;;  %v1161_v7 = vshra.s32 %v3378_v60, 16  ;;  %v1160_v26 = vand.u32 65535, %v3378_v60 }
 0x33d   :  { %v3383_v56 = vpop.xlane.xlu1 %946 }
 0x33e   :  { %4951 = vst [vmem:[#allocation35_spill] sm:$0xff] %v3383_v56  ;;  %vm976_vm10 = vcmp.eq.f32.partialorder %v3240_v8, %v3383_v56  ;;  %v3387_v18 = vcvt.s32.f32 %v1161_v7 }
 0x33f   :  { %v3390_v53 = vsel %vm976_vm10, %v2450_v11, 128 }
 0x340   :  { %1164 = vmin.xlane.f32.xlu0 %v3387_v18  ;;  %v1035_v32 = vshra.s32 %v3390_v53, 16 }
 0x341   :  { %v3394_v21 = vpop.xlane.xlu0 %952  ;;  %v3396_v43 = vpop.xlane.xlu1 %962 }
 0x342   :  { %4952 = vst [vmem:[#allocation36_spill] sm:$0xff] %v3394_v21  ;;  %4953 = vst [vmem:[#allocation37_spill] sm:$0xff] %v3396_v43  ;;  %vm979_vm4 = vcmp.eq.f32.partialorder %v3254_v54, %v3394_v21  ;;  %vm984_vm1 = vcmp.eq.f32.partialorder %v3257_v25, %v3396_v43  ;;  %v3408_v7 = vcvt.s32.f32 %v1035_v32 }
 0x343   :  { %v3403_v5 = vsel %vm979_vm4, %v2450_v11, 128  ;;  %v3406_v45 = vsel %vm984_vm1, %v2450_v11, 128 }
 0x344   :  { %v1077_v56 = vshra.s32 %v3403_v5, 16  ;;  %v1147_v1 = vshra.s32 %v3406_v45, 16  ;;  %1038 = vmin.xlane.f32.xlu1 %v3408_v7 }
 0x345   :  { %v3413_v0 = vpop.xlane.xlu0 %968  ;;  %v3415_v21 = vpop.xlane.xlu1 %950 }
 0x346   :  { %4954 = vst [vmem:[#allocation38_spill] sm:$0xff] %v3413_v0  ;;  %4955 = vst [vmem:[#allocation39_spill] sm:$0xff] %v3415_v21  ;;  %vm987_vm0 = vcmp.eq.f32.partialorder %v3272_v36, %v3413_v0  ;;  %vm978_vm7 = vcmp.eq.f32.partialorder %v3275_v44, %v3415_v21  ;;  %v3427_v17 = vcvt.s32.f32 %v1077_v56  ;;  %v3429_v38 = vcvt.s32.f32 %v1147_v1 }
 0x347   :  { %v3422_v43 = vsel %vm987_vm0, %v2450_v11, 128  ;;  %v3425_v32 = vsel %vm978_vm7, %v2450_v11, 128 }
 0x348   :  { %v1189_v19 = vshra.s32 %v3422_v43, 16  ;;  %v1063_v23 = vshra.s32 %v3425_v32, 16  ;;  %1080 = vmin.xlane.f32.xlu0 %v3427_v17  ;;  %1150 = vmin.xlane.f32.xlu1 %v3429_v38 }
 0x349   :  { %v3435_v0 = vpop.xlane.xlu0 %956  ;;  %v3437_v21 = vpop.xlane.xlu1 %966 }
 0x34a   :  { %4956 = vst [vmem:[#allocation40_spill] sm:$0xff] %v3435_v0  ;;  %4957 = vst [vmem:[#allocation41_spill] sm:$0xff] %v3437_v21  ;;  %vm981_vm12 = vcmp.eq.f32.partialorder %v3289_v46, %v3435_v0  ;;  %vm986_vm14 = vcmp.eq.f32.partialorder %v3292_v55, %v3437_v21  ;;  %v3449_v41 = vcvt.s32.f32 %v1189_v19  ;;  %v3451_v47 = vcvt.s32.f32 %v1063_v23 }
 0x34b   :  { %v3444_v1 = vsel %vm981_vm12, %v2450_v11, 128  ;;  %v3447_v56 = vsel %vm986_vm14, %v2450_v11, 128 }
 0x34c   :  { %v1105_v9 = vshra.s32 %v3444_v1, 16  ;;  %v1175_v2 = vshra.s32 %v3447_v56, 16  ;;  %1192 = vmin.xlane.f32.xlu0 %v3449_v41  ;;  %1066 = vmin.xlane.f32.xlu1 %v3451_v47 }
 0x34d   :  { %v3457_v0 = vpop.xlane.xlu0 %972  ;;  %v3459_v21 = vpop.xlane.xlu1 %954 }
 0x34e   :  { %4958 = vst [vmem:[#allocation42_spill] sm:$0xff] %v3457_v0  ;;  %4959 = vst [vmem:[#allocation43_spill] sm:$0xff] %v3459_v21  ;;  %vm989_vm13 = vcmp.eq.f32.partialorder %v3305_v33, %v3457_v0  ;;  %vm980_vm5 = vcmp.eq.f32.partialorder %v3308_v28, %v3459_v21  ;;  %v3471_v37 = vcvt.s32.f32 %v1105_v9  ;;  %v3473_v42 = vcvt.s32.f32 %v1175_v2 }
 0x34f   :  { %v3466_v23 = vsel %vm989_vm13, %v2450_v11, 128  ;;  %v3469_v19 = vsel %vm980_vm5, %v2450_v11, 128 }
 0x350   :  { %v1217_v10 = vshra.s32 %v3466_v23, 16  ;;  %v1091_v58 = vshra.s32 %v3469_v19, 16  ;;  %1108 = vmin.xlane.f32.xlu0 %v3471_v37  ;;  %1178 = vmin.xlane.f32.xlu1 %v3473_v42 }
 0x351   :  { %v3479_v0 = vpop.xlane.xlu1 %970 }
 0x352   :  { %4960 = vst [vmem:[#allocation44_spill] sm:$0xff] %v3479_v0  ;;  %vm988_vm15 = vcmp.eq.f32.partialorder %v3317_v14, %v3479_v0  ;;  %v3483_v21 = vcvt.s32.f32 %v1217_v10  ;;  %v3485_v6 = vcvt.s32.f32 %v1091_v58  ;;  %v1006_v10 = vand.u32 65535, %v3342_v35 }
 0x353   :  { %v3488_v2 = vsel %vm988_vm15, %v2450_v11, 128  ;;  %v1022_v58 = vcvt.s32.f32 %v1020_v57  ;;  %v1048_v57 = vand.u32 65535, %v3363_v16  ;;  %v1162_v16 = vcvt.s32.f32 %v1160_v26 }
 0x354   :  { %v1203_v9 = vshra.s32 %v3488_v2, 16  ;;  %1220 = vmin.xlane.f32.xlu0 %v3483_v21  ;;  %1094 = vmin.xlane.f32.xlu1 %v3485_v6  ;;  %v1008_v62 = vcvt.s32.f32 %v1006_v10 }
 0x355   :  { %v1050_v10 = vcvt.s32.f32 %v1048_v57 }
 0x356   :  { %v3493_v22 = vcvt.s32.f32 %v1203_v9 }
 0x358   :  { %1206 = vmin.xlane.f32.xlu1 %v3493_v22 }
 0x3be   :  { %v3498_v0 = vpop.xlane.xlu0 %1024 }
 0x3bf   :  { %vm1026_vm9 = vcmp.eq.f32.partialorder %v3339_v34, %v3498_v0 }
 0x3c0   :  { %v1027_v59 = vsel %vm1026_vm9, %v1022_v58, inf }
 0x3c1   :  { %1028 = vmin.xlane.f32.xlu0 %v1027_v59  ;;  %v1120_v59 = vcvt.s32.f32 %v1118_v48  ;;  %v1034_v48 = vand.u32 65535, %v3390_v53 }
 0x3c2   :  { %v3506_v20 = vpop.xlane.xlu0 %1136 }
 0x3c3   :  { %v3504_v9 = vpop.xlane.xlu1 %1010  ;;  %vm1138_vm6 = vcmp.eq.f32.partialorder %v3353_v49, %v3506_v20  ;;  %v1036_v60 = vcvt.s32.f32 %v1034_v48 }
 0x3c4   :  { %vm1012_vm11 = vcmp.eq.f32.partialorder %v3355_v63, %v3504_v9  ;;  %v1139_v34 = vsel %vm1138_vm6, %v1134_v61, inf  ;;  %v1076_v61 = vand.u32 65535, %v3403_v5 }
 0x3c5   :  { %v1013_v3 = vsel %vm1012_vm11, %v1008_v62, inf  ;;  %1140 = vmin.xlane.f32.xlu0 %v1139_v34 }
 0x3c6   :  { %1014 = vmin.xlane.f32.xlu1 %v1013_v3 }
 0x3c7   :  { %v3513_v35 = vpop.xlane.xlu1 %1122 }
 0x3c8   :  { %vm1124_vm2 = vcmp.eq.f32.partialorder %v3371_v40, %v3513_v35 }
 0x3c9   :  { %v3515_v52 = vpop.xlane.xlu0 %1052  ;;  %v1125_v63 = vsel %vm1124_vm2, %v1120_v59, inf  ;;  %v1188_v59 = vand.u32 65535, %v3422_v43  ;;  %v1104_v43 = vand.u32 65535, %v3444_v1  ;;  %v1216_v1 = vand.u32 65535, %v3466_v23 }
 0x3ca   :  { %vm1054_vm8 = vcmp.eq.f32.partialorder %v3375_v29, %v3515_v52  ;;  %1126 = vmin.xlane.f32.xlu1 %v1125_v63  ;;  %v1146_v29 = vand.u32 65535, %v3406_v45  ;;  %v1202_v23 = vand.u32 65535, %v3488_v2  ;;  %v1031_v2 = vcvt.f32.s32 %v3498_v0 }
 0x3cb   :  { %v1055_v49 = vsel %vm1054_vm8, %v1050_v10, inf  ;;  %v1062_v10 = vand.u32 65535, %v3425_v32  ;;  %v1190_v63 = vcvt.s32.f32 %v1188_v59  ;;  %v1174_v32 = vand.u32 65535, %v3447_v56 }
 0x3cc   :  { %1056 = vmin.xlane.f32.xlu0 %v1055_v49  ;;  %v1148_v53 = vcvt.s32.f32 %v1146_v29  ;;  %v1090_v56 = vand.u32 65535, %v3469_v19 }
 0x3cd   :  { %v3522_v62 = vpop.xlane.xlu0 %1164  ;;  %v1064_v49 = vcvt.s32.f32 %v1062_v10  ;;  %v1017_v10 = vcvt.f32.s32 %v3504_v9 }
 0x3ce   :  { %vm1166_vm3 = vcmp.eq.f32.partialorder %v3387_v18, %v3522_v62  ;;  %v1078_v18 = vcvt.s32.f32 %v1076_v61 }
 0x3cf   :  { %v1167_v58 = vsel %vm1166_vm3, %v1162_v16, inf }
 0x3d0   :  { %1168 = vmin.xlane.f32.xlu0 %v1167_v58  ;;  %v1106_v58 = vcvt.s32.f32 %v1104_v43  ;;  %v1018_v43 = vshll.u32 %v1017_v10, 16 }
 0x3d1   :  { %v3527_v40 = vpop.xlane.xlu1 %1038 }
 0x3d2   :  { %vm1040_vm10 = vcmp.eq.f32.partialorder %v3408_v7, %v3527_v40 }
 0x3d3   :  { %v1041_v57 = vsel %vm1040_vm10, %v1036_v60, inf  ;;  %v1176_v60 = vcvt.s32.f32 %v1174_v32  ;;  %v1059_v32 = vcvt.f32.s32 %v3515_v52 }
 0x3d4   :  { %1042 = vmin.xlane.f32.xlu1 %v1041_v57  ;;  %v1218_v57 = vcvt.s32.f32 %v1216_v1 }
 0x3d5   :  { %v3533_v3 = vpop.xlane.xlu0 %1080  ;;  %v3535_v34 = vpop.xlane.xlu1 %1150  ;;  %v1060_v52 = vshll.u32 %v1059_v32, 16 }
 0x3d6   :  { %vm1082_vm4 = vcmp.eq.f32.partialorder %v3427_v17, %v3533_v3  ;;  %vm1152_vm1 = vcmp.eq.f32.partialorder %v3429_v38, %v3535_v34  ;;  %v1087_v10 = vcvt.f32.s32 %v3533_v3 }
 0x3d7   :  { %v1083_v5 = vsel %vm1082_vm4, %v1078_v18, inf  ;;  %v1153_v45 = vsel %vm1152_vm1, %v1148_v53, inf  ;;  %v1092_v18 = vcvt.s32.f32 %v1090_v56  ;;  %v1204_v53 = vcvt.s32.f32 %v1202_v23 }
 0x3d8   :  { %1084 = vmin.xlane.f32.xlu0 %v1083_v5  ;;  %1154 = vmin.xlane.f32.xlu1 %v1153_v45  ;;  %v1032_v5 = vshll.u32 %v1031_v2, 16 }
 0x3d9   :  { %v3543_v7 = vpop.xlane.xlu0 %1192  ;;  %v3545_v26 = vpop.xlane.xlu1 %1066 }
 0x3da   :  { %vm1194_vm0 = vcmp.eq.f32.partialorder %v3449_v41, %v3543_v7  ;;  %vm1068_vm7 = vcmp.eq.f32.partialorder %v3451_v47, %v3545_v26 }
 0x3db   :  { %v1195_v38 = vsel %vm1194_vm0, %v1190_v63, inf  ;;  %v1069_v17 = vsel %vm1068_vm7, %v1064_v49, inf }
 0x3dc   :  { %1196 = vmin.xlane.f32.xlu0 %v1195_v38  ;;  %1070 = vmin.xlane.f32.xlu1 %v1069_v17  ;;  %v1129_v38 = vcvt.f32.s32 %v3513_v35 }
 0x3dd   :  { %v3553_v16 = vpop.xlane.xlu0 %1108  ;;  %v3555_v48 = vpop.xlane.xlu1 %1178 }
 0x3de   :  { %vm1110_vm12 = vcmp.eq.f32.partialorder %v3471_v37, %v3553_v16  ;;  %vm1180_vm14 = vcmp.eq.f32.partialorder %v3473_v42, %v3555_v48  ;;  %v1130_v56 = vshll.u32 %v1129_v38, 16 }
 0x3df   :  { %v1111_v47 = vsel %vm1110_vm12, %v1106_v58, inf  ;;  %v1181_v41 = vsel %vm1180_vm14, %v1176_v60, inf }
 0x3e0   :  { %1112 = vmin.xlane.f32.xlu0 %v1111_v47  ;;  %1182 = vmin.xlane.f32.xlu1 %v1181_v41  ;;  %v1171_v41 = vcvt.f32.s32 %v3522_v62 }
 0x3e1   :  { %v3563_v61 = vpop.xlane.xlu0 %1220  ;;  %v3565_v29 = vpop.xlane.xlu1 %1094 }
 0x3e2   :  { %vm1222_vm13 = vcmp.eq.f32.partialorder %v3483_v21, %v3563_v61  ;;  %vm1096_vm5 = vcmp.eq.f32.partialorder %v3485_v6, %v3565_v29  ;;  %v1143_v6 = vcvt.f32.s32 %v3506_v20  ;;  %v1172_v62 = vshll.u32 %v1171_v41, 16 }
 0x3e3   :  { %v1223_v37 = vsel %vm1222_vm13, %v1218_v57, inf  ;;  %v1097_v42 = vsel %vm1096_vm5, %v1092_v18, inf }
 0x3e4   :  { %1224 = vmin.xlane.f32.xlu0 %v1223_v37  ;;  %1098 = vmin.xlane.f32.xlu1 %v1097_v42  ;;  %v1144_v58 = vshll.u32 %v1143_v6, 16 }
 0x3e5   :  { %v3572_v19 = vpop.xlane.xlu1 %1206 }
 0x3e6   :  { %vm1208_vm15 = vcmp.eq.f32.partialorder %v3493_v22, %v3572_v19 }
 0x3e7   :  { %v1209_v59 = vsel %vm1208_vm15, %v1204_v53, inf }
 0x3e8   :  { %1210 = vmin.xlane.f32.xlu1 %v1209_v59 }
 0x44e   :  { %v1029_v21 = vpop.xlane.xlu0 %1028 }
 0x44f   :  { %v1030_v45 = vcvt.f32.s32 %v1029_v21  ;;  %v1157_v21 = vcvt.f32.s32 %v3535_v34  ;;  %v1073_v34 = vcvt.f32.s32 %v3545_v26 }
 0x451   :  { %v3579_v63 = vadd.s32 %v1032_v5, %v1030_v45  ;;  %v1088_v45 = vshll.u32 %v1087_v10, 16  ;;  %v1074_v26 = vshll.u32 %v1073_v34, 16  ;;  %v1101_v10 = vcvt.f32.s32 %v3565_v29 }
 0x452   :  { %v1141_v22 = vpop.xlane.xlu0 %1140 }
 0x453   :  { %v1015_v49 = vpop.xlane.xlu1 %1014  ;;  %v1142_v60 = vcvt.f32.s32 %v1141_v22  ;;  %vm1231_vm9 = vcmp.eq.s32.totalorder %v2450_v11, %v3579_v63 }
 0x454   :  { %v1016_v17 = vcvt.f32.s32 %v1015_v49  ;;  %v3588_v20 = vsel %vm1231_vm9, inf, %v3186_v51  ;;  %v1158_v49 = vshll.u32 %v1157_v21, 16 }
 0x455   :  { %v3590_v9 = vadd.s32 %v1144_v58, %v1142_v60  ;;  %1264 = vmin.xlane.f32.xlu0 %v3588_v20 }
 0x456   :  { %v3585_v0 = vadd.s32 %v1018_v43, %v1016_v17  ;;  %v1199_v43 = vcvt.f32.s32 %v3543_v7  ;;  %v1115_v7 = vcvt.f32.s32 %v3553_v16 }
 0x457   :  { %v1127_v1 = vpop.xlane.xlu1 %1126  ;;  %vm1239_vm6 = vcmp.eq.s32.totalorder %v2450_v11, %v3590_v9 }
 0x458   :  { %v1128_v47 = vcvt.f32.s32 %v1127_v1  ;;  %vm1230_vm11 = vcmp.eq.s32.totalorder %v2450_v11, %v3585_v0  ;;  %v3604_v23 = vsel %vm1239_vm6, inf, %v3199_v24  ;;  %v1045_v24 = vcvt.f32.s32 %v3527_v40 }
 0x459   :  { %v1057_v35 = vpop.xlane.xlu0 %1056  ;;  %v3599_v51 = vsel %vm1230_vm11, inf, %v3202_v30  ;;  %1280 = vmin.xlane.f32.xlu0 %v3604_v23  ;;  %v1200_v60 = vshll.u32 %v1199_v43, 16  ;;  %v1213_v43 = vcvt.f32.s32 %v3572_v19 }
 0x45a   :  { %v1058_v57 = vcvt.f32.s32 %v1057_v35  ;;  %v3601_v18 = vadd.s32 %v1130_v56, %v1128_v47  ;;  %1262 = vmin.xlane.f32.xlu1 %v3599_v51  ;;  %v1185_v56 = vcvt.f32.s32 %v3555_v48  ;;  %v1227_v48 = vcvt.f32.s32 %v3563_v61 }
 0x45c   :  { %v3607_v37 = vadd.s32 %v1060_v52, %v1058_v57  ;;  %vm1238_vm2 = vcmp.eq.s32.totalorder %v2450_v11, %v3601_v18 }
 0x45d   :  { %v1169_v42 = vpop.xlane.xlu0 %1168  ;;  %v3615_v30 = vsel %vm1238_vm2, inf, %v3216_v12  ;;  %v1046_v12 = vshll.u32 %v1045_v24, 16  ;;  %v1186_v24 = vshll.u32 %v1185_v56, 16 }
 0x45e   :  { %v1170_v53 = vcvt.f32.s32 %v1169_v42  ;;  %vm1233_vm8 = vcmp.eq.s32.totalorder %v2450_v11, %v3607_v37  ;;  %1278 = vmin.xlane.f32.xlu1 %v3615_v30  ;;  %v1116_v42 = vshll.u32 %v1115_v7, 16 }
 0x45f   :  { %v3619_v59 = vsel %vm1233_vm8, inf, %v3219_v4 }
 0x460   :  { %v3622_v2 = vadd.s32 %v1172_v62, %v1170_v53  ;;  %1268 = vmin.xlane.f32.xlu0 %v3619_v59 }
 0x461   :  { %v1043_v5 = vpop.xlane.xlu1 %1042 }
 0x462   :  { %vm1241_vm3 = vcmp.eq.s32.totalorder %v2450_v11, %v3622_v2  ;;  %v1044_v6 = vcvt.f32.s32 %v1043_v5 }
 0x463   :  { %v3630_v40 = vsel %vm1241_vm3, inf, %v3230_v31 }
 0x464   :  { %1284 = vmin.xlane.f32.xlu0 %v3630_v40  ;;  %v3633_v4 = vadd.s32 %v1046_v12, %v1044_v6  ;;  %v1228_v6 = vshll.u32 %v1227_v48, 16 }
 0x465   :  { %v1085_v3 = vpop.xlane.xlu0 %1084  ;;  %v1155_v32 = vpop.xlane.xlu1 %1154 }
 0x466   :  { %v1086_v38 = vcvt.f32.s32 %v1085_v3  ;;  %v1156_v22 = vcvt.f32.s32 %v1155_v32  ;;  %vm1232_vm10 = vcmp.eq.s32.totalorder %v2450_v11, %v3633_v4 }
 0x467   :  { %v3640_v31 = vsel %vm1232_vm10, inf, %v3240_v8 }
 0x468   :  { %v3642_v17 = vadd.s32 %v1088_v45, %v1086_v38  ;;  %v3644_v58 = vadd.s32 %v1158_v49, %v1156_v22  ;;  %1266 = vmin.xlane.f32.xlu1 %v3640_v31  ;;  %v1102_v49 = vshll.u32 %v1101_v10, 16  ;;  %v1214_v22 = vshll.u32 %v1213_v43, 16 }
 0x469   :  { %v1197_v1 = vpop.xlane.xlu0 %1196  ;;  %v1071_v52 = vpop.xlane.xlu1 %1070 }
 0x46a   :  { %v1198_v35 = vcvt.f32.s32 %v1197_v1  ;;  %v1072_v47 = vcvt.f32.s32 %v1071_v52  ;;  %vm1235_vm4 = vcmp.eq.s32.totalorder %v2450_v11, %v3642_v17  ;;  %vm1240_vm1 = vcmp.eq.s32.totalorder %v2450_v11, %v3644_v58 }
 0x46b   :  { %v3658_v57 = vsel %vm1235_vm4, inf, %v3254_v54  ;;  %v3661_v16 = vsel %vm1240_vm1, inf, %v3257_v25 }
 0x46c   :  { %v3653_v8 = vadd.s32 %v1200_v60, %v1198_v35  ;;  %v3655_v41 = vadd.s32 %v1074_v26, %v1072_v47  ;;  %4963 = vst [vmem:[#allocation47_spill] sm:$0xff] %v3658_v57  ;;  %4964 = vst [vmem:[#allocation48_spill] sm:$0xff] %v3661_v16  ;;  %1272 = vmin.xlane.f32.xlu0 %v3658_v57  ;;  %1282 = vmin.xlane.f32.xlu1 %v3661_v16 }
 0x46d   :  { %v1113_v62 = vpop.xlane.xlu0 %1112  ;;  %v1183_v53 = vpop.xlane.xlu1 %1182 }
 0x46e   :  { %4961 = vst [vmem:[#allocation45_spill] sm:$0xff] %v3653_v8  ;;  %4962 = vst [vmem:[#allocation46_spill] sm:$0xff] %v3655_v41  ;;  %v1114_v21 = vcvt.f32.s32 %v1113_v62  ;;  %v1184_v5 = vcvt.f32.s32 %v1183_v53  ;;  %vm1243_vm0 = vcmp.eq.s32.totalorder %v2450_v11, %v3653_v8  ;;  %vm1234_vm7 = vcmp.eq.s32.totalorder %v2450_v11, %v3655_v41 }
 0x46f   :  { %v3676_v61 = vsel %vm1243_vm0, inf, %v3272_v36  ;;  %v3679_v12 = vsel %vm1234_vm7, inf, %v3275_v44 }
 0x470   :  { %v3671_v54 = vadd.s32 %v1116_v42, %v1114_v21  ;;  %v3673_v25 = vadd.s32 %v1186_v24, %v1184_v5  ;;  %4967 = vst [vmem:[#allocation51_spill] sm:$0xff] %v3676_v61  ;;  %4968 = vst [vmem:[#allocation52_spill] sm:$0xff] %v3679_v12  ;;  %1288 = vmin.xlane.f32.xlu0 %v3676_v61  ;;  %1270 = vmin.xlane.f32.xlu1 %v3679_v12 }
 0x471   :  { %v1225_v29 = vpop.xlane.xlu0 %1224  ;;  %v1099_v45 = vpop.xlane.xlu1 %1098 }
 0x472   :  { %4965 = vst [vmem:[#allocation49_spill] sm:$0xff] %v3671_v54  ;;  %4966 = vst [vmem:[#allocation50_spill] sm:$0xff] %v3673_v25  ;;  %v1226_v3 = vcvt.f32.s32 %v1225_v29  ;;  %v1100_v32 = vcvt.f32.s32 %v1099_v45  ;;  %vm1237_vm12 = vcmp.eq.s32.totalorder %v2450_v11, %v3671_v54  ;;  %vm1242_vm14 = vcmp.eq.s32.totalorder %v2450_v11, %v3673_v25 }
 0x473   :  { %v3693_v34 = vsel %vm1237_vm12, inf, %v3289_v46  ;;  %v3696_v38 = vsel %vm1242_vm14, inf, %v3292_v55 }
 0x474   :  { %v3688_v36 = vadd.s32 %v1228_v6, %v1226_v3  ;;  %v3690_v44 = vadd.s32 %v1102_v49, %v1100_v32  ;;  %4971 = vst [vmem:[#allocation55_spill] sm:$0xff] %v3693_v34  ;;  %4972 = vst [vmem:[#allocation56_spill] sm:$0xff] %v3696_v38  ;;  %1276 = vmin.xlane.f32.xlu0 %v3693_v34  ;;  %1286 = vmin.xlane.f32.xlu1 %v3696_v38 }
 0x475   :  { %v1211_v19 = vpop.xlane.xlu1 %1210 }
 0x476   :  { %4969 = vst [vmem:[#allocation53_spill] sm:$0xff] %v3688_v36  ;;  %4970 = vst [vmem:[#allocation54_spill] sm:$0xff] %v3690_v44  ;;  %v1212_v60 = vcvt.f32.s32 %v1211_v19  ;;  %vm1245_vm13 = vcmp.eq.s32.totalorder %v2450_v11, %v3688_v36  ;;  %vm1236_vm5 = vcmp.eq.s32.totalorder %v2450_v11, %v3690_v44 }
 0x477   :  { %v3703_v7 = vsel %vm1245_vm13, inf, %v3305_v33  ;;  %v3710_v55 = vsel %vm1236_vm5, inf, %v3308_v28 }
 0x478   :  { %4973 = vst [vmem:[#allocation57_spill] sm:$0xff] %v3703_v7  ;;  %v3707_v46 = vadd.s32 %v1214_v22, %v1212_v60  ;;  %4975 = vst [vmem:[#allocation59_spill] sm:$0xff] %v3710_v55  ;;  %1292 = vmin.xlane.f32.xlu0 %v3703_v7  ;;  %1274 = vmin.xlane.f32.xlu1 %v3710_v55 }
 0x47a   :  { %4974 = vst [vmem:[#allocation58_spill] sm:$0xff] %v3707_v46  ;;  %vm1244_vm15 = vcmp.eq.s32.totalorder %v2450_v11, %v3707_v46 }
 0x47b   :  { %v3717_v1 = vsel %vm1244_vm15, inf, %v3317_v14 }
 0x47c   :  { %4976 = vst [vmem:[#allocation60_spill] sm:$0xff] %v3717_v1  ;;  %1290 = vmin.xlane.f32.xlu1 %v3717_v1 }
 0x4e2   :  { %v3720_v33 = vpop.xlane.xlu0 %1264 }
 0x4e3   :  { %4977 = vst [vmem:[#allocation61_spill] sm:$0xff] %v3720_v33  ;;  %vm1295_vm9 = vcmp.eq.f32.partialorder %v3588_v20, %v3720_v33 }
 0x4e4   :  { %v3725_v28 = vsel %vm1295_vm9, %v2450_v11, 128 }
 0x4e5   :  { %v1341_v52 = vshra.s32 %v3725_v28, 16  ;;  %v1340_v54 = vand.u32 65535, %v3725_v28 }
 0x4e6   :  { %v3730_v56 = vpop.xlane.xlu0 %1280 }
 0x4e7   :  { %v3728_v26 = vpop.xlane.xlu1 %1262  ;;  %4979 = vst [vmem:[#allocation63_spill] sm:$0xff] %v3730_v56  ;;  %vm1303_vm6 = vcmp.eq.f32.partialorder %v3604_v23, %v3730_v56  ;;  %v3739_v35 = vcvt.s32.f32 %v1341_v52 }
 0x4e8   :  { %4978 = vst [vmem:[#allocation62_spill] sm:$0xff] %v3728_v26  ;;  %vm1294_vm11 = vcmp.eq.f32.partialorder %v3599_v51, %v3728_v26  ;;  %v3742_v47 = vsel %vm1303_vm6, %v2450_v11, 128 }
 0x4e9   :  { %v3737_v14 = vsel %vm1294_vm11, %v2450_v11, 128  ;;  %v1453_v48 = vshra.s32 %v3742_v47, 16  ;;  %1344 = vmin.xlane.f32.xlu0 %v3739_v35 }
 0x4ea   :  { %v1327_v42 = vshra.s32 %v3737_v14, 16 }
 0x4eb   :  { %v3747_v62 = vpop.xlane.xlu1 %1278  ;;  %v3760_v21 = vcvt.s32.f32 %v1453_v48 }
 0x4ec   :  { %4980 = vst [vmem:[#allocation64_spill] sm:$0xff] %v3747_v62  ;;  %vm1302_vm2 = vcmp.eq.f32.partialorder %v3615_v30, %v3747_v62  ;;  %v3753_v24 = vcvt.s32.f32 %v1327_v42 }
 0x4ed   :  { %v3749_v53 = vpop.xlane.xlu0 %1268  ;;  %v3758_v10 = vsel %vm1302_vm2, %v2450_v11, 128  ;;  %1456 = vmin.xlane.f32.xlu0 %v3760_v21 }
 0x4ee   :  { %4981 = vst [vmem:[#allocation65_spill] sm:$0xff] %v3749_v53  ;;  %vm1297_vm8 = vcmp.eq.f32.partialorder %v3619_v59, %v3749_v53  ;;  %v1439_v6 = vshra.s32 %v3758_v10, 16  ;;  %1330 = vmin.xlane.f32.xlu1 %v3753_v24 }
 0x4ef   :  { %v3763_v5 = vsel %vm1297_vm8, %v2450_v11, 128 }
 0x4f0   :  { %v1369_v29 = vshra.s32 %v3763_v5, 16  ;;  %v3771_v49 = vcvt.s32.f32 %v1439_v6  ;;  %v1368_v8 = vand.u32 65535, %v3763_v5 }
 0x4f1   :  { %v3769_v45 = vpop.xlane.xlu0 %1284 }
 0x4f2   :  { %4982 = vst [vmem:[#allocation66_spill] sm:$0xff] %v3769_v45  ;;  %vm1305_vm3 = vcmp.eq.f32.partialorder %v3630_v40, %v3769_v45  ;;  %v3775_v43 = vcvt.s32.f32 %v1369_v29  ;;  %1442 = vmin.xlane.f32.xlu1 %v3771_v49  ;;  %v1370_v5 = vcvt.s32.f32 %v1368_v8 }
 0x4f3   :  { %v3778_v3 = vsel %vm1305_vm3, %v2450_v11, 128 }
 0x4f4   :  { %v1481_v32 = vshra.s32 %v3778_v3, 16  ;;  %1372 = vmin.xlane.f32.xlu0 %v3775_v43 }
 0x4f5   :  { %v3783_v19 = vpop.xlane.xlu1 %1266 }
 0x4f6   :  { %4983 = vst [vmem:[#allocation67_spill] sm:$0xff] %v3783_v19  ;;  %v3785_v22 = vcvt.s32.f32 %v1481_v32  ;;  %vm1296_vm10 = vcmp.eq.f32.partialorder %v3640_v31, %v3783_v19 }
 0x4f7   :  { %v3790_v60 = vsel %vm1296_vm10, %v2450_v11, 128 }
 0x4f8   :  { %1484 = vmin.xlane.f32.xlu0 %v3785_v22  ;;  %v1355_v52 = vshra.s32 %v3790_v60, 16 }
 0x4f9   :  { %v3794_v42 = vpop.xlane.xlu0 %1272  ;;  %v3796_v48 = vpop.xlane.xlu1 %1282 }
 0x4fa   :  { %4984 = vst [vmem:[#allocation68_spill] sm:$0xff] %v3794_v42  ;;  %4985 = vst [vmem:[#allocation69_spill] sm:$0xff] %v3796_v48  ;;  %v3798_v6 = vcvt.s32.f32 %v1355_v52  ;;  %vm1299_vm4 = vcmp.eq.f32.partialorder %v3658_v57, %v3794_v42  ;;  %vm1304_vm1 = vcmp.eq.f32.partialorder %v3661_v16, %v3796_v48  ;;  %v1438_v57 = vand.u32 65535, %v3758_v10 }
 0x4fb   :  { %v3805_v29 = vsel %vm1299_vm4, %v2450_v11, 128  ;;  %v3808_v32 = vsel %vm1304_vm1, %v2450_v11, 128 }
 0x4fc   :  { %1358 = vmin.xlane.f32.xlu1 %v3798_v6  ;;  %v1397_v19 = vshra.s32 %v3805_v29, 16  ;;  %v1467_v45 = vshra.s32 %v3808_v32, 16 }
 0x4fd   :  { %v3813_v52 = vpop.xlane.xlu0 %1288  ;;  %v3815_v62 = vpop.xlane.xlu1 %1270 }
 0x4fe   :  { %4986 = vst [vmem:[#allocation70_spill] sm:$0xff] %v3813_v52  ;;  %4987 = vst [vmem:[#allocation71_spill] sm:$0xff] %v3815_v62  ;;  %vm1307_vm0 = vcmp.eq.f32.partialorder %v3676_v61, %v3813_v52  ;;  %vm1298_vm7 = vcmp.eq.f32.partialorder %v3679_v12, %v3815_v62  ;;  %v3827_v53 = vcvt.s32.f32 %v1397_v19  ;;  %v3829_v56 = vcvt.s32.f32 %v1467_v45 }
 0x4ff   :  { %v3822_v48 = vsel %vm1307_vm0, %v2450_v11, 128  ;;  %v3825_v42 = vsel %vm1298_vm7, %v2450_v11, 128 }
 0x500   :  { %v1509_v26 = vshra.s32 %v3822_v48, 16  ;;  %v1383_v33 = vshra.s32 %v3825_v42, 16  ;;  %1400 = vmin.xlane.f32.xlu0 %v3827_v53  ;;  %1470 = vmin.xlane.f32.xlu1 %v3829_v56 }
 0x501   :  { %v3835_v52 = vpop.xlane.xlu0 %1276  ;;  %v3837_v62 = vpop.xlane.xlu1 %1286 }
 0x502   :  { %4988 = vst [vmem:[#allocation72_spill] sm:$0xff] %v3835_v52  ;;  %4989 = vst [vmem:[#allocation73_spill] sm:$0xff] %v3837_v62  ;;  %vm1301_vm12 = vcmp.eq.f32.partialorder %v3693_v34, %v3835_v52  ;;  %vm1306_vm14 = vcmp.eq.f32.partialorder %v3696_v38, %v3837_v62  ;;  %v3849_v46 = vcvt.s32.f32 %v1509_v26  ;;  %v3851_v44 = vcvt.s32.f32 %v1383_v33 }
 0x503   :  { %v3844_v45 = vsel %vm1301_vm12, %v2450_v11, 128  ;;  %v3847_v19 = vsel %vm1306_vm14, %v2450_v11, 128 }
 0x504   :  { %v1425_v36 = vshra.s32 %v3844_v45, 16  ;;  %v1495_v25 = vshra.s32 %v3847_v19, 16  ;;  %1512 = vmin.xlane.f32.xlu0 %v3849_v46  ;;  %1386 = vmin.xlane.f32.xlu1 %v3851_v44 }
 0x505   :  { %v3857_v52 = vpop.xlane.xlu0 %1292  ;;  %v3859_v62 = vpop.xlane.xlu1 %1274 }
 0x506   :  { %4990 = vst [vmem:[#allocation74_spill] sm:$0xff] %v3857_v52  ;;  %4991 = vst [vmem:[#allocation75_spill] sm:$0xff] %v3859_v62  ;;  %vm1309_vm13 = vcmp.eq.f32.partialorder %v3703_v7, %v3857_v52  ;;  %vm1300_vm5 = vcmp.eq.f32.partialorder %v3710_v55, %v3859_v62  ;;  %v3871_v38 = vcvt.s32.f32 %v1425_v36  ;;  %v3873_v34 = vcvt.s32.f32 %v1495_v25 }
 0x507   :  { %v3866_v33 = vsel %vm1309_vm13, %v2450_v11, 128  ;;  %v3869_v26 = vsel %vm1300_vm5, %v2450_v11, 128 }
 0x508   :  { %v1537_v12 = vshra.s32 %v3866_v33, 16  ;;  %v1411_v61 = vshra.s32 %v3869_v26, 16  ;;  %1428 = vmin.xlane.f32.xlu0 %v3871_v38  ;;  %1498 = vmin.xlane.f32.xlu1 %v3873_v34 }
 0x509   :  { %v3879_v52 = vpop.xlane.xlu1 %1290 }
 0x50a   :  { %4992 = vst [vmem:[#allocation76_spill] sm:$0xff] %v3879_v52  ;;  %vm1308_vm15 = vcmp.eq.f32.partialorder %v3717_v1, %v3879_v52  ;;  %v3883_v62 = vcvt.s32.f32 %v1537_v12  ;;  %v3885_v55 = vcvt.s32.f32 %v1411_v61  ;;  %v1326_v12 = vand.u32 65535, %v3737_v14 }
 0x50b   :  { %v3888_v25 = vsel %vm1308_vm15, %v2450_v11, 128  ;;  %v1452_v61 = vand.u32 65535, %v3742_v47  ;;  %v1342_v1 = vcvt.s32.f32 %v1340_v54  ;;  %v1480_v47 = vand.u32 65535, %v3778_v3 }
 0x50c   :  { %v1523_v36 = vshra.s32 %v3888_v25, 16  ;;  %1540 = vmin.xlane.f32.xlu0 %v3883_v62  ;;  %1414 = vmin.xlane.f32.xlu1 %v3885_v55  ;;  %v1328_v41 = vcvt.s32.f32 %v1326_v12 }
 0x50d   :  { %v1454_v14 = vcvt.s32.f32 %v1452_v61  ;;  %v1482_v12 = vcvt.s32.f32 %v1480_v47 }
 0x50e   :  { %v3893_v7 = vcvt.s32.f32 %v1523_v36 }
 0x510   :  { %1526 = vmin.xlane.f32.xlu1 %v3893_v7 }
 0x576   :  { %v3899_v52 = vpop.xlane.xlu0 %1344 }
 0x577   :  { %vm1346_vm9 = vcmp.eq.f32.partialorder %v3739_v35, %v3899_v52 }
 0x578   :  { %v1347_v16 = vsel %vm1346_vm9, %v1342_v1, inf  ;;  %vm1870_vm9 = vcmask 7168  }
 0x579   :  { %1348 = vmin.xlane.f32.xlu0 %v1347_v16  ;;  %v1440_v16 = vcvt.s32.f32 %v1438_v57  ;;  %v1354_v57 = vand.u32 65535, %v3790_v60  ;;  %v1382_v60 = vand.u32 65535, %v3825_v42  ;;  %v1494_v42 = vand.u32 65535, %v3847_v19 }
 0x57a   :  { %v3907_v28 = vpop.xlane.xlu0 %1456  ;;  %v1410_v19 = vand.u32 65535, %v3869_v26 }
 0x57b   :  { %v3904_v36 = vpop.xlane.xlu1 %1330  ;;  %vm1458_vm6 = vcmp.eq.f32.partialorder %v3760_v21, %v3907_v28  ;;  %v1356_v8 = vcvt.s32.f32 %v1354_v57 }
 0x57c   :  { %vm1332_vm11 = vcmp.eq.f32.partialorder %v3753_v24, %v3904_v36  ;;  %v1459_v35 = vsel %vm1458_vm6, %v1454_v14, inf }
 0x57d   :  { %v1333_v54 = vsel %vm1332_vm11, %v1328_v41, inf  ;;  %1460 = vmin.xlane.f32.xlu0 %v1459_v35  ;;  %vm1887_vm11 = vcmask 15360  }
 0x57e   :  { %1334 = vmin.xlane.f32.xlu1 %v1333_v54  ;;  %v1508_v54 = vand.u32 65535, %v3822_v48  ;;  %v1424_v48 = vand.u32 65535, %v3844_v45  ;;  %v1536_v45 = vand.u32 65535, %v3866_v33  ;;  %v1522_v33 = vand.u32 65535, %v3888_v25 }
 0x57f   :  { %v3913_v1 = vpop.xlane.xlu1 %1442 }
 0x580   :  { %vm1444_vm2 = vcmp.eq.f32.partialorder %v3771_v49, %v3913_v1  ;;  %v1396_v49 = vand.u32 65535, %v3805_v29 }
 0x581   :  { %v3916_v10 = vpop.xlane.xlu0 %1372  ;;  %v1445_v24 = vsel %vm1444_vm2, %v1440_v16, inf }
 0x582   :  { %vm1374_vm8 = vcmp.eq.f32.partialorder %v3775_v43, %v3916_v10  ;;  %1446 = vmin.xlane.f32.xlu1 %v1445_v24  ;;  %v1466_v43 = vand.u32 65535, %v3808_v32  ;;  %v1398_v16 = vcvt.s32.f32 %v1396_v49  ;;  %v1510_v24 = vcvt.s32.f32 %v1508_v54 }
 0x583   :  { %v1375_v21 = vsel %vm1374_vm8, %v1370_v5, inf }
 0x584   :  { %1376 = vmin.xlane.f32.xlu0 %v1375_v21  ;;  %v1468_v47 = vcvt.s32.f32 %v1466_v43  ;;  %v1384_v21 = vcvt.s32.f32 %v1382_v60  ;;  %v1538_v43 = vcvt.s32.f32 %v1536_v45  ;;  %v1524_v60 = vcvt.s32.f32 %v1522_v33 }
 0x585   :  { %v3922_v41 = vpop.xlane.xlu0 %1484 }
 0x586   :  { %vm1486_vm3 = vcmp.eq.f32.partialorder %v3785_v22, %v3922_v41 }
 0x587   :  { %v1487_v3 = vsel %vm1486_vm3, %v1482_v12, inf }
 0x588   :  { %1488 = vmin.xlane.f32.xlu0 %v1487_v3  ;;  %v1426_v3 = vcvt.s32.f32 %v1424_v48  ;;  %v1379_v48 = vcvt.f32.s32 %v3916_v10 }
 0x589   :  { %v3927_v61 = vpop.xlane.xlu1 %1358 }
 0x58a   :  { %vm1360_vm10 = vcmp.eq.f32.partialorder %v3798_v6, %v3927_v61 }
 0x58b   :  { %v1361_v14 = vsel %vm1360_vm10, %v1356_v8, inf  ;;  %v1496_v8 = vcvt.s32.f32 %v1494_v42  ;;  %v1449_v42 = vcvt.f32.s32 %v3913_v1  ;;  %v1871_v1 = vsel %vm1870_vm9, %v3190_v15, %v3585_v0 }
 0x58c   :  { %1362 = vmin.xlane.f32.xlu1 %v1361_v14  ;;  %v1412_v14 = vcvt.s32.f32 %v1410_v19 }
 0x58d   :  { %v3935_v35 = vpop.xlane.xlu0 %1400  ;;  %v3937_v22 = vpop.xlane.xlu1 %1470 }
 0x58e   :  { %vm1402_vm4 = vcmp.eq.f32.partialorder %v3827_v53, %v3935_v35  ;;  %vm1472_vm1 = vcmp.eq.f32.partialorder %v3829_v56, %v3937_v22 }
 0x58f   :  { %v1403_v6 = vsel %vm1402_vm4, %v1398_v16, inf  ;;  %v1473_v29 = vsel %vm1472_vm1, %v1468_v47, inf  ;;  %v1351_v16 = vcvt.f32.s32 %v3899_v52  ;;  %v1337_v47 = vcvt.f32.s32 %v3904_v36 }
 0x590   :  { %1404 = vmin.xlane.f32.xlu0 %v1403_v6  ;;  %1474 = vmin.xlane.f32.xlu1 %v1473_v29 }
 0x591   :  { %v3945_v32 = vpop.xlane.xlu0 %1512  ;;  %v3947_v5 = vpop.xlane.xlu1 %1386  ;;  %v1352_v6 = vshll.u32 %v1351_v16, 16  ;;  %v1338_v52 = vshll.u32 %v1337_v47, 16  ;;  %v4993_v47 = vld [vmem:[#allocation18_spill] sm:$0xff] }
 0x592   :  { %vm1514_vm0 = vcmp.eq.f32.partialorder %v3849_v46, %v3945_v32  ;;  %vm1388_vm7 = vcmp.eq.f32.partialorder %v3851_v44, %v3947_v5 }
 0x593   :  { %v1515_v56 = vsel %vm1514_vm0, %v1510_v24, inf  ;;  %v1389_v53 = vsel %vm1388_vm7, %v1384_v21, inf }
 0x594   :  { %1516 = vmin.xlane.f32.xlu0 %v1515_v56  ;;  %1390 = vmin.xlane.f32.xlu1 %v1389_v53 }
 0x595   :  { %v3955_v12 = vpop.xlane.xlu0 %1428  ;;  %v3957_v57 = vpop.xlane.xlu1 %1498 }
 0x596   :  { %vm1430_vm12 = vcmp.eq.f32.partialorder %v3871_v38, %v3955_v12  ;;  %vm1500_vm14 = vcmp.eq.f32.partialorder %v3873_v34, %v3957_v57 }
 0x597   :  { %v1431_v44 = vsel %vm1430_vm12, %v1426_v3, inf  ;;  %v1501_v46 = vsel %vm1500_vm14, %v1496_v8, inf  ;;  %v1450_v3 = vshll.u32 %v1449_v42, 16 }
 0x598   :  { %1432 = vmin.xlane.f32.xlu0 %v1431_v44  ;;  %1502 = vmin.xlane.f32.xlu1 %v1501_v46  ;;  %v1491_v46 = vcvt.f32.s32 %v3922_v41  ;;  %v1879_v41 = vsel %vm1870_vm9, %v3204_v13, %v3601_v18  ;;  %v1365_v18 = vcvt.f32.s32 %v3927_v61 }
 0x599   :  { %v3964_v49 = vpop.xlane.xlu0 %1540  ;;  %v3966_v26 = vpop.xlane.xlu1 %1414 }
 0x59a   :  { %vm1542_vm13 = vcmp.eq.f32.partialorder %v3883_v62, %v3964_v49  ;;  %vm1416_vm5 = vcmp.eq.f32.partialorder %v3885_v55, %v3966_v26  ;;  %v1463_v55 = vcvt.f32.s32 %v3907_v28 }
 0x59b   :  { %v1543_v38 = vsel %vm1542_vm13, %v1538_v43, inf  ;;  %v1417_v34 = vsel %vm1416_vm5, %v1412_v14, inf }
 0x59c   :  { %1544 = vmin.xlane.f32.xlu0 %v1543_v38  ;;  %1418 = vmin.xlane.f32.xlu1 %v1417_v34  ;;  %v1464_v53 = vshll.u32 %v1463_v55, 16  ;;  %v1874_v34 = vsel %vm1870_vm9, %v3208_v27, %v3607_v37 }
 0x59d   :  { %v3972_v54 = vpop.xlane.xlu1 %1526 }
 0x59e   :  { %vm1528_vm15 = vcmp.eq.f32.partialorder %v3893_v7, %v3972_v54  ;;  %v1872_v7 = vsel %vm1870_vm9, %v3179_v39, %v3579_v63  ;;  %v1880_v39 = vsel %vm1870_vm9, %v3188_v50, %v3590_v9  ;;  %v1380_v63 = vshll.u32 %v1379_v48, 16 }
 0x59f   :  { %v1529_v25 = vsel %vm1528_vm15, %v1524_v60, inf  ;;  %v1492_v60 = vshll.u32 %v1491_v46, 16  ;;  %v1477_v48 = vcvt.f32.s32 %v3937_v22 }
 0x5a0   :  { %1530 = vmin.xlane.f32.xlu1 %v1529_v25 }
 0x606   :  { %v1349_v62 = vpop.xlane.xlu0 %1348 }
 0x607   :  { %v1350_v29 = vcvt.f32.s32 %v1349_v62  ;;  %v1882_v62 = vsel %vm1870_vm9, %v4993_v47, %v3622_v2  ;;  %v4994_v2 = vld [vmem:[#allocation19_spill] sm:$0xff] }
 0x609   :  { %v1353_v24 = vadd.s32 %v1352_v6, %v1350_v29  ;;  %v1407_v29 = vcvt.f32.s32 %v3935_v35 }
 0x60a   :  { %v1461_v56 = vpop.xlane.xlu0 %1460 }
 0x60b   :  { %v1335_v21 = vpop.xlane.xlu1 %1334  ;;  %v3985_v45 = vsel %vm1887_vm11, %v1872_v7, %v1353_v24  ;;  %v1462_v28 = vcvt.f32.s32 %v1461_v56  ;;  %vm1551_vm6 = vcmp.eq.s32.totalorder %v2450_v11, %v1353_v24  ;;  %v1873_v24 = vsel %vm1870_vm9, %v4994_v2, %v3633_v4  ;;  %v4995_v4 = vld [vmem:[#allocation20_spill] sm:$0xff] }
 0x60c   :  { %v1336_v36 = vcvt.f32.s32 %v1335_v21  ;;  %v3992_v19 = vsel %vm1551_vm6, inf, %v3588_v20  ;;  %v1519_v7 = vcvt.f32.s32 %v3945_v32  ;;  %v1408_v22 = vshll.u32 %v1407_v29, 16 }
 0x60d   :  { %v1465_v8 = vadd.s32 %v1464_v53, %v1462_v28  ;;  %1584 = vmin.xlane.f32.xlu0 %v3992_v19 }
 0x60e   :  { %v1339_v10 = vadd.s32 %v1338_v52, %v1336_v36  ;;  %v1478_v36 = vshll.u32 %v1477_v48, 16 }
 0x60f   :  { %v1447_v44 = vpop.xlane.xlu1 %1446  ;;  %v4004_v20 = vsel %vm1887_vm11, %v1880_v39, %v1465_v8  ;;  %vm1559_vm8 = vcmp.eq.s32.totalorder %v2450_v11, %v1465_v8  ;;  %v1505_v8 = vcvt.f32.s32 %v3957_v57 }
 0x610   :  { %v4000_v33 = vsel %vm1887_vm11, %v1871_v1, %v1339_v10  ;;  %v1448_v0 = vcvt.f32.s32 %v1447_v44  ;;  %vm1550_vm2 = vcmp.eq.s32.totalorder %v2450_v11, %v1339_v10  ;;  %v4011_v14 = vsel %vm1559_vm8, inf, %v3604_v23  ;;  %v4996_v10 = vld [vmem:[#allocation21_spill] sm:$0xff] }
 0x611   :  { %v1377_v15 = vpop.xlane.xlu0 %1376  ;;  %v4008_v50 = vsel %vm1550_vm2, inf, %v3599_v51  ;;  %1600 = vmin.xlane.f32.xlu0 %v4011_v14  ;;  %v1876_v1 = vsel %vm1870_vm9, %v4995_v4, %v3642_v17  ;;  %v1881_v32 = vsel %vm1870_vm9, %v4996_v10, %v3644_v58  ;;  %v4998_v58 = vld [vmem:[#allocation22_spill] sm:$0xff]  ;;  %v5008_v4 = vld [vmem:[#allocation25_spill] sm:$0xff]  ;;  %vm1904_vm8 = vcmask 23552  }
 0x612   :  { %v1378_v43 = vcvt.f32.s32 %v1377_v15  ;;  %v1451_v9 = vadd.s32 %v1450_v3, %v1448_v0  ;;  %1582 = vmin.xlane.f32.xlu1 %v4008_v50 }
 0x614   :  { %v1381_v38 = vadd.s32 %v1380_v63, %v1378_v43  ;;  %v4022_v51 = vsel %vm1887_vm11, %v1879_v41, %v1451_v9  ;;  %vm1558_vm3 = vcmp.eq.s32.totalorder %v2450_v11, %v1451_v9  ;;  %v1520_v63 = vshll.u32 %v1519_v7, 16  ;;  %v4997_v9 = vld [vmem:[#allocation45_spill] sm:$0xff] }
 0x615   :  { %v1489_v25 = vpop.xlane.xlu0 %1488  ;;  %v4030_v13 = vsel %vm1558_vm3, inf, %v3615_v30  ;;  %v1366_v30 = vshll.u32 %v1365_v18, 16  ;;  %v1884_v41 = vsel %vm1870_vm9, %v4998_v58, %v4997_v9  ;;  %v5002_v18 = vld [vmem:[#allocation48_spill] sm:$0xff]  ;;  %v5003_v7 = vld [vmem:[#allocation49_spill] sm:$0xff] }
 0x616   :  { %v4026_v23 = vsel %vm1887_vm11, %v1874_v34, %v1381_v38  ;;  %v1490_v16 = vcvt.f32.s32 %v1489_v25  ;;  %vm1553_vm10 = vcmp.eq.s32.totalorder %v2450_v11, %v1381_v38  ;;  %1598 = vmin.xlane.f32.xlu1 %v4030_v13  ;;  %v4999_v38 = vld [vmem:[#allocation46_spill] sm:$0xff]  ;;  %v5000_v34 = vld [vmem:[#allocation23_spill] sm:$0xff]  ;;  %v5010_v9 = vld [vmem:[#allocation56_spill] sm:$0xff] }
 0x617   :  { %v4034_v27 = vsel %vm1553_vm10, inf, %v3619_v59  ;;  %v5001_v25 = vld [vmem:[#allocation47_spill] sm:$0xff] }
 0x618   :  { %v1493_v37 = vadd.s32 %v1492_v60, %v1490_v16  ;;  %1588 = vmin.xlane.f32.xlu0 %v4034_v27 }
 0x619   :  { %v1363_v55 = vpop.xlane.xlu1 %1362 }
 0x61a   :  { %v4042_v6 = vsel %vm1887_vm11, %v1882_v62, %v1493_v37  ;;  %vm1561_vm4 = vcmp.eq.s32.totalorder %v2450_v11, %v1493_v37  ;;  %v1364_v61 = vcvt.f32.s32 %v1363_v55  ;;  %v1506_v62 = vshll.u32 %v1505_v8, 16 }
 0x61b   :  { %v4046_v59 = vsel %vm1561_vm4, inf, %v3630_v40  ;;  %v1393_v40 = vcvt.f32.s32 %v3947_v5  ;;  %v1547_v55 = vcvt.f32.s32 %v3964_v49 }
 0x61c   :  { %1604 = vmin.xlane.f32.xlu0 %v4046_v59  ;;  %v1367_v42 = vadd.s32 %v1366_v30, %v1364_v61  ;;  %v1421_v30 = vcvt.f32.s32 %v3966_v26 }
 0x61d   :  { %v1405_v52 = vpop.xlane.xlu0 %1404  ;;  %v1475_v56 = vpop.xlane.xlu1 %1474  ;;  %v1394_v3 = vshll.u32 %v1393_v40, 16  ;;  %v5004_v40 = vld [vmem:[#allocation24_spill] sm:$0xff]  ;;  %v1548_v10 = vshll.u32 %v1547_v55, 16 }
 0x61e   :  { %v4055_v21 = vsel %vm1887_vm11, %v1873_v24, %v1367_v42  ;;  %vm1552_vm1 = vcmp.eq.s32.totalorder %v2450_v11, %v1367_v42  ;;  %v1406_v53 = vcvt.f32.s32 %v1405_v52  ;;  %v1476_v28 = vcvt.f32.s32 %v1475_v56  ;;  %v5005_v56 = vld [vmem:[#allocation51_spill] sm:$0xff] }
 0x61f   :  { %v4061_v35 = vsel %vm1552_vm1, inf, %v3640_v31  ;;  %v1435_v31 = vcvt.f32.s32 %v3955_v12  ;;  %v1875_v12 = vsel %vm1870_vm9, %v5000_v34, %v4999_v38  ;;  %v1878_v49 = vsel %vm1870_vm9, %v5004_v40, %v5003_v7  ;;  %v5012_v38 = vld [vmem:[#allocation26_spill] sm:$0xff]  ;;  %v5019_v40 = vld [vmem:[#allocation28_spill] sm:$0xff] }
 0x620   :  { %1586 = vmin.xlane.f32.xlu1 %v4061_v35  ;;  %v1409_v5 = vadd.s32 %v1408_v22, %v1406_v53  ;;  %v1479_v39 = vadd.s32 %v1478_v36, %v1476_v28  ;;  %v5006_v36 = vld [vmem:[#allocation52_spill] sm:$0xff]  ;;  %v5007_v28 = vld [vmem:[#allocation50_spill] sm:$0xff] }
 0x621   :  { %v1517_v44 = vpop.xlane.xlu0 %1516  ;;  %v1391_v46 = vpop.xlane.xlu1 %1390  ;;  %v1436_v47 = vshll.u32 %v1435_v31, 16  ;;  %v5018_v7 = vld [vmem:[#allocation58_spill] sm:$0xff] }
 0x622   :  { %v4073_v15 = vsel %vm1887_vm11, %v1876_v1, %v1409_v5  ;;  %v4076_v0 = vsel %vm1887_vm11, %v1881_v32, %v1479_v39  ;;  %v1518_v17 = vcvt.f32.s32 %v1517_v44  ;;  %v1392_v43 = vcvt.f32.s32 %v1391_v46 }
 0x623   :  { %vm1555_vm0 = vcmp.eq.s32.totalorder %v2450_v11, %v1409_v5  ;;  %vm1560_vm7 = vcmp.eq.s32.totalorder %v2450_v11, %v1479_v39  ;;  %v1883_v1 = vsel %vm1870_vm9, %v5008_v4, %v5007_v28  ;;  %v1422_v32 = vshll.u32 %v1421_v30, 16  ;;  %v5016_v30 = vld [vmem:[#allocation57_spill] sm:$0xff]  ;;  %v5023_v28 = vld [vmem:[#allocation3_spill] sm:$0xff] }
 0x624   :  { %v1521_v57 = vadd.s32 %v1520_v63, %v1518_v17  ;;  %v1395_v60 = vadd.s32 %v1394_v3, %v1392_v43  ;;  %v4087_v16 = vsel %vm1555_vm0, inf, %v5001_v25  ;;  %v4090_v37 = vsel %vm1560_vm7, inf, %v5002_v18  ;;  %v5009_v17 = vld [vmem:[#allocation55_spill] sm:$0xff] }
 0x625   :  { %1592 = vmin.xlane.f32.xlu0 %v4087_v16  ;;  %1602 = vmin.xlane.f32.xlu1 %v4090_v37  ;;  %v1433_v61 = vpop.xlane.xlu0 %1432  ;;  %v1503_v29 = vpop.xlane.xlu1 %1502  ;;  %v1533_v5 = vcvt.f32.s32 %v3972_v54  ;;  %vm1921_vm7 = vcmask 31744  }
 0x626   :  { %v4097_v48 = vsel %vm1887_vm11, %v1884_v41, %v1521_v57  ;;  %v4100_v42 = vsel %vm1887_vm11, %v1875_v12, %v1395_v60  ;;  %v1434_v2 = vcvt.f32.s32 %v1433_v61  ;;  %v1504_v24 = vcvt.f32.s32 %v1503_v29  ;;  %v5011_v41 = vld [vmem:[#allocation53_spill] sm:$0xff]  ;;  %v5013_v12 = vld [vmem:[#allocation54_spill] sm:$0xff] }
 0x627   :  { %vm1563_vm12 = vcmp.eq.s32.totalorder %v2450_v11, %v1521_v57  ;;  %vm1554_vm14 = vcmp.eq.s32.totalorder %v2450_v11, %v1395_v60  ;;  %v1886_v34 = vsel %vm1870_vm9, %v5012_v38, %v5011_v41  ;;  %v5014_v57 = vld [vmem:[#allocation27_spill] sm:$0xff]  ;;  %v1534_v25 = vshll.u32 %v1533_v5, 16 }
 0x628   :  { %v1437_v26 = vadd.s32 %v1436_v47, %v1434_v2  ;;  %v1507_v52 = vadd.s32 %v1506_v62, %v1504_v24  ;;  %v4108_v22 = vsel %vm1563_vm12, inf, %v5005_v56  ;;  %v4111_v53 = vsel %vm1554_vm14, inf, %v5006_v36  ;;  %v5017_v2 = vld [vmem:[#allocation59_spill] sm:$0xff]  ;;  %v5022_v36 = vld [vmem:[#allocation29_spill] sm:$0xff] }
 0x629   :  { %1608 = vmin.xlane.f32.xlu0 %v4108_v22  ;;  %1590 = vmin.xlane.f32.xlu1 %v4111_v53  ;;  %v1545_v39 = vpop.xlane.xlu0 %1544  ;;  %v1419_v63 = vpop.xlane.xlu1 %1418  ;;  %v1877_v60 = vsel %vm1870_vm9, %v5014_v57, %v5013_v12  ;;  %v1939_v4 = vsel %vm1870_vm9, %v5023_v28, %v5022_v36  ;;  %v5030_v38 = vld [vmem:[#allocation63_spill] sm:$0xff]  ;;  %v5038_v36 = vld [vmem:[#allocation10_spill] sm:$0xff] }
 0x62a   :  { %v4120_v3 = vsel %vm1887_vm11, %v1878_v49, %v1437_v26  ;;  %v4123_v31 = vsel %vm1887_vm11, %v1883_v1, %v1507_v52  ;;  %v1546_v8 = vcvt.f32.s32 %v1545_v39  ;;  %v1420_v44 = vcvt.f32.s32 %v1419_v63  ;;  %v5024_v1 = vld [vmem:[#allocation61_spill] sm:$0xff]  ;;  %v5025_v39 = vld [vmem:[#allocation31_spill] sm:$0xff] }
 0x62b   :  { %vm1557_vm13 = vcmp.eq.s32.totalorder %v2450_v11, %v1437_v26  ;;  %vm1562_vm5 = vcmp.eq.s32.totalorder %v2450_v11, %v1507_v52  ;;  %v1885_v49 = vsel %vm1870_vm9, %v5019_v40, %v5018_v7  ;;  %v5021_v52 = vld [vmem:[#allocation60_spill] sm:$0xff]  ;;  %v5026_v63 = vld [vmem:[#allocation5_spill] sm:$0xff]  ;;  %v5035_v40 = vld [vmem:[#allocation34_spill] sm:$0xff] }
 0x62c   :  { %v1549_v46 = vadd.s32 %v1548_v10, %v1546_v8  ;;  %v1423_v54 = vadd.s32 %v1422_v32, %v1420_v44  ;;  %v4128_v43 = vsel %vm1557_vm13, inf, %v5009_v17  ;;  %v4131_v58 = vsel %vm1562_vm5, inf, %v5010_v9  ;;  %v5029_v9 = vld [vmem:[#allocation62_spill] sm:$0xff] }
 0x62d   :  { %1596 = vmin.xlane.f32.xlu0 %v4128_v43  ;;  %1606 = vmin.xlane.f32.xlu1 %v4131_v58  ;;  %v1531_v18 = vpop.xlane.xlu1 %1530  ;;  %v1955_v10 = vsel %vm1887_vm11, %v1939_v4, %v5024_v1  ;;  %v1938_v8 = vsel %vm1870_vm9, %v5026_v63, %v5025_v39  ;;  %v5039_v4 = vld [vmem:[#allocation36_spill] sm:$0xff]  ;;  %v5041_v63 = vld [vmem:[#allocation65_spill] sm:$0xff] }
 0x62e   :  { %v4142_v47 = vsel %vm1887_vm11, %v1886_v34, %v1549_v46  ;;  %v4145_v62 = vsel %vm1887_vm11, %v1877_v60, %v1423_v54  ;;  %v1532_v55 = vcvt.f32.s32 %v1531_v18  ;;  %vm1565_vm15 = vcmp.eq.s32.totalorder %v2450_v11, %v1549_v46  ;;  %v5027_v46 = vld [vmem:[#allocation30_spill] sm:$0xff]  ;;  %v5031_v18 = vld [vmem:[#allocation33_spill] sm:$0xff]  ;;  %v5040_v1 = vld [vmem:[#allocation12_spill] sm:$0xff] }
 0x62f   :  { %5015 = vst [vmem:[#allocation18_spill] sm:$0xff] %v4145_v62  ;;  %v4149_v61 = vsel %vm1565_vm15, inf, %v5016_v30  ;;  %vm1556_vm6 = vcmp.eq.s32.totalorder %v2450_v11, %v1423_v54  ;;  %v5028_v54 = vld [vmem:[#allocation2_spill] sm:$0xff]  ;;  %v1954_v41 = vsel %vm1887_vm11, %v1938_v8, %v5029_v9 }
 0x630   :  { %v1535_v29 = vadd.s32 %v1534_v25, %v1532_v55  ;;  %v4153_v24 = vsel %vm1556_vm6, inf, %v5017_v2  ;;  %v1947_v17 = vsel %vm1870_vm9, %v5028_v54, %v5027_v46  ;;  %v5032_v55 = vld [vmem:[#allocation7_spill] sm:$0xff]  ;;  %v5034_v2 = vld [vmem:[#allocation4_spill] sm:$0xff] }
 0x631   :  { %1612 = vmin.xlane.f32.xlu0 %v4149_v61  ;;  %1594 = vmin.xlane.f32.xlu1 %v4153_v24  ;;  %v1963_v34 = vsel %vm1887_vm11, %v1947_v17, %v5030_v38  ;;  %v1941_v30 = vsel %vm1870_vm9, %v5032_v55, %v5031_v18  ;;  %v5042_v46 = vld [vmem:[#allocation64_spill] sm:$0xff]  ;;  %v5043_v17 = vld [vmem:[#allocation66_spill] sm:$0xff] }
 0x632   :  { %v4161_v26 = vsel %vm1887_vm11, %v1885_v49, %v1535_v29  ;;  %vm1564_vm2 = vcmp.eq.s32.totalorder %v2450_v11, %v1535_v29  ;;  %v5033_v29 = vld [vmem:[#allocation32_spill] sm:$0xff]  ;;  %v1957_v8 = vsel %vm1887_vm11, %v1941_v30, %v5041_v63 }
 0x633   :  { %5020 = vst [vmem:[#allocation19_spill] sm:$0xff] %v4161_v26  ;;  %v4165_v56 = vsel %vm1564_vm2, inf, %v5021_v52  ;;  %v5037_v52 = vld [vmem:[#allocation35_spill] sm:$0xff]  ;;  %v5066_v26 = vld [vmem:[#allocation73_spill] sm:$0xff] }
 0x634   :  { %v1940_v28 = vsel %vm1870_vm9, %v5038_v36, %v5037_v52 }
 0x635   :  { %1610 = vmin.xlane.f32.xlu1 %v4165_v56 }
 0x69a   :  { %v1585_v32 = vpop.xlane.xlu0 %1584 }
 0x69b   :  { %vm1615_vm3 = vcmp.eq.f32.partialorder %v3992_v19, %v1585_v32  ;;  %v4175_v5 = vsel %vm1904_vm8, %v1955_v10, %v1585_v32  ;;  %v4220_v10 = vsel %vm1870_vm9, %v5040_v1, %v5039_v4 }
 0x69c   :  { %v4181_v44 = vsel %vm1615_vm3, %v2450_v11, 128  ;;  %2188 = vrsqrt.f32 %v4175_v5  ;;  %vm1995_vm12 = vcmp.eq.f32.partialorder %v4175_v5, inf  ;;  %vm1997_vm14 = vcmp.eq.f32.partialorder %v4175_v5, 0.0 }
 0x69d   :  { %v1661_v60 = vshra.s32 %v4181_v44, 16 }
 0x69e   :  { %v1601_v12 = vpop.xlane.xlu0 %1600 }
 0x69f   :  { %v1583_v19 = vpop.xlane.xlu1 %1582  ;;  %vm1623_vm4 = vcmp.eq.f32.partialorder %v4011_v14, %v1601_v12  ;;  %v4198_v25 = vsel %vm1904_vm8, %v1963_v34, %v1601_v12  ;;  %v5036_v14 = vld [vmem:[#allocation9_spill] sm:$0xff]  ;;  %v4232_v38 = vcvt.s32.f32 %v1661_v60  ;;  %v5044_v12 = vld [vmem:[#allocation67_spill] sm:$0xff]  ;;  %v1998_v60 = vand.u32 2147483648, %v4175_v5 }
 0x6a0   :  { %vm1614_vm10 = vcmp.eq.f32.partialorder %v4008_v50, %v1583_v19  ;;  %v4193_v57 = vsel %vm1904_vm8, %v1954_v41, %v1583_v19  ;;  %v1946_v50 = vsel %vm1870_vm9, %v5034_v2, %v5033_v29  ;;  %v4208_v7 = vsel %vm1623_vm4, %v2450_v11, 128 }
 0x6a1   :  { %2190 = vrsqrt.f32 %v4193_v57  ;;  %v1949_v49 = vsel %vm1870_vm9, %v5036_v14, %v5035_v40  ;;  %v4223_v32 = vsel %vm1614_vm10, %v2450_v11, 128  ;;  %v1962_v54 = vsel %vm1887_vm11, %v1946_v50, %v5042_v46  ;;  %1664 = vmin.xlane.f32.xlu0 %v4232_v38 }
 0x6a2   :  { %2192 = vrsqrt.f32 %v4198_v25  ;;  %v1965_v9 = vsel %vm1887_vm11, %v1949_v49, %v5043_v17  ;;  %v1773_v41 = vshra.s32 %v4208_v7, 16  ;;  %v1956_v18 = vsel %vm1887_vm11, %v1940_v28, %v5044_v12 }
 0x6a3   :  { %v1599_v39 = vpop.xlane.xlu1 %1598  ;;  %v1647_v55 = vshra.s32 %v4223_v32, 16  ;;  %vm2051_vm13 = vcmp.eq.f32.partialorder %v4198_v25, inf  ;;  %vm2053_vm5 = vcmp.eq.f32.partialorder %v4198_v25, 0.0  ;;  %v2054_v1 = vand.u32 2147483648, %v4198_v25 }
 0x6a4   :  { %vm1622_vm0 = vcmp.eq.f32.partialorder %v4030_v13, %v1599_v39  ;;  %v4255_v29 = vsel %vm1904_vm8, %v1962_v54, %v1599_v39  ;;  %v4257_v2 = vcvt.s32.f32 %v1773_v41  ;;  %vm1988_vm6 = vcmp.eq.f32.partialorder %v4193_v57, inf }
 0x6a5   :  { %v1589_v19 = vpop.xlane.xlu0 %1588  ;;  %v4264_v52 = vcvt.s32.f32 %v1647_v55  ;;  %vm1990_vm2 = vcmp.eq.f32.partialorder %v4193_v57, 0.0  ;;  %v1991_v54 = vand.u32 2147483648, %v4193_v57 }
 0x6a6   :  { %vm1617_vm1 = vcmp.eq.f32.partialorder %v4034_v27, %v1589_v19  ;;  %v4236_v34 = vsel %vm1904_vm8, %v1957_v8, %v1589_v19  ;;  %v4250_v27 = vsel %vm1622_vm0, %v2450_v11, 128  ;;  %v2189_v13 = vpop.eup %2188  ;;  %1776 = vmin.xlane.f32.xlu0 %v4257_v2  ;;  %vm2046_vm0 = vcmp.eq.f32.partialorder %v4255_v29, 0.0 }
 0x6a7   :  { %v4243_v30 = vsel %vm1617_vm1, %v2450_v11, 128  ;;  %2194 = vrsqrt.f32 %v4236_v34  ;;  %v1994_v40 = vmul.f32 %v2189_v13, %v4175_v5  ;;  %v1759_v49 = vshra.s32 %v4250_v27, 16  ;;  %1650 = vmin.xlane.f32.xlu1 %v4264_v52 }
 0x6a8   :  { %v1689_v14 = vshra.s32 %v4243_v30, 16  ;;  %2196 = vrsqrt.f32 %v4255_v29  ;;  %vm2009_vm10 = vcmp.eq.f32.partialorder %v4236_v34, inf  ;;  %vm2011_vm4 = vcmp.eq.f32.partialorder %v4236_v34, 0.0 }
 0x6a9   :  { %v1605_v50 = vpop.xlane.xlu0 %1604  ;;  %v1996_v4 = vsel %vm1995_vm12, %v4175_v5, %v1994_v40  ;;  %v4295_v19 = vcvt.s32.f32 %v1759_v49  ;;  %v5046_v40 = vld [vmem:[#allocation6_spill] sm:$0xff]  ;;  %vm2044_vm1 = vcmp.eq.f32.partialorder %v4255_v29, inf }
 0x6aa   :  { %vm1625_vm15 = vcmp.eq.f32.partialorder %v4046_v59, %v1605_v50  ;;  %v4268_v36 = vsel %vm1904_vm8, %v1965_v9, %v1605_v50  ;;  %v1999_v59 = vsel %vm1997_vm14, %v1998_v60, %v1996_v4  ;;  %v4292_v17 = vcvt.s32.f32 %v1689_v14  ;;  %v5045_v50 = vld [vmem:[#allocation37_spill] sm:$0xff]  ;;  %v5047_v14 = vld [vmem:[#allocation38_spill] sm:$0xff] }
 0x6ab   :  { %v2191_v28 = vpop.eup %2190  ;;  %v4276_v39 = vsel %vm1625_vm15, %v2450_v11, 128  ;;  %2198 = vrsqrt.f32 %v4268_v36  ;;  %2099 = vst.msk [vmem:[%s4794_s7 + $0x8] sm:$0xff] %vm1921_vm7, %v1999_v59  ;;  %1762 = vmin.xlane.f32.xlu1 %v4295_v19  ;;  %v5050_v59 = vld [vmem:[#allocation8_spill] sm:$0xff] }
 0x6ac   :  { %v2193_v63 = vpop.eup %2192  ;;  %v1987_v8 = vmul.f32 %v2191_v28, %v4193_v57  ;;  %v1801_v5 = vshra.s32 %v4276_v39, 16  ;;  %1692 = vmin.xlane.f32.xlu0 %v4292_v17 }
 0x6ad   :  { %v2050_v46 = vmul.f32 %v2193_v63, %v4198_v25  ;;  %v1587_v9 = vpop.xlane.xlu1 %1586  ;;  %v5049_v63 = vld [vmem:[#allocation39_spill] sm:$0xff] }
 0x6ae   :  { %v1989_v41 = vsel %vm1988_vm6, %v4193_v57, %v1987_v8  ;;  %vm1616_vm3 = vcmp.eq.f32.partialorder %v4061_v35, %v1587_v9  ;;  %v4299_v12 = vsel %vm1904_vm8, %v1956_v18, %v1587_v9  ;;  %v1948_v35 = vsel %vm1870_vm9, %v5046_v40, %v5045_v50  ;;  %v5048_v18 = vld [vmem:[#allocation14_spill] sm:$0xff] }
 0x6af   :  { %v2052_v55 = vsel %vm2051_vm13, %v4198_v25, %v2050_v46  ;;  %v1992_v13 = vsel %vm1990_vm2, %v1991_v54, %v1989_v41  ;;  %v4306_v60 = vsel %vm1616_vm3, %v2450_v11, 128  ;;  %2200 = vrsqrt.f32 %v4299_v12  ;;  %v5051_v46 = vld [vmem:[#allocation40_spill] sm:$0xff]  ;;  %v5053_v41 = vld [vmem:[#allocation41_spill] sm:$0xff] }
 0x6b0   :  { %v1951_v49 = vsel %vm1870_vm9, %v5048_v18, %v5047_v14  ;;  %v2055_v28 = vsel %vm2053_vm5, %v2054_v1, %v2052_v55  ;;  %2098 = vst.msk [vmem:[%s4794_s7] sm:$0xff] %vm1921_vm7, %v1992_v13  ;;  %v1675_v4 = vshra.s32 %v4306_v60, 16  ;;  %v1942_v8 = vsel %vm1870_vm9, %v5050_v59, %v5049_v63  ;;  %v5052_v54 = vld [vmem:[#allocation16_spill] sm:$0xff]  ;;  %v5054_v55 = vld [vmem:[#allocation11_spill] sm:$0xff]  ;;  %v5056_v63 = vld [vmem:[#allocation69_spill] sm:$0xff] }
 0x6b1   :  { %v2195_v57 = vpop.eup %2194  ;;  %v4329_v9 = vsel %vm1870_vm9, %v5052_v54, %v5051_v46  ;;  %2107 = vst.msk [vmem:[%s4794_s7 + $0x48] sm:$0xff] %vm1921_vm7, %v2055_v28  ;;  %v4336_v1 = vcvt.s32.f32 %v1801_v5  ;;  %v4341_v13 = vsel %vm1870_vm9, %v5054_v55, %v5053_v41  ;;  %v2012_v50 = vand.u32 2147483648, %v4236_v34  ;;  %v5055_v18 = vld [vmem:[#allocation68_spill] sm:$0xff] }
 0x6b2   :  { %v2008_v25 = vmul.f32 %v2195_v57, %v4236_v34  ;;  %v4345_v40 = vcvt.s32.f32 %v1675_v4  ;;  %v2197_v14 = vpop.eup %2196  ;;  %v1959_v28 = vsel %vm1887_vm11, %v4220_v10, %v5055_v18  ;;  %v1964_v5 = vsel %vm1887_vm11, %v1948_v35, %v5056_v63  ;;  %v1593_v4 = vpop.xlane.xlu0 %1592  ;;  %v5057_v18 = vld [vmem:[#allocation70_spill] sm:$0xff] }
 0x6b3   :  { %1804 = vmin.xlane.f32.xlu0 %v4336_v1  ;;  %v2043_v46 = vmul.f32 %v2197_v14, %v4255_v29  ;;  %v1603_v54 = vpop.xlane.xlu1 %1602  ;;  %vm1619_vm12 = vcmp.eq.f32.partialorder %v4087_v16, %v1593_v4  ;;  %v4366_v35 = vsel %vm1904_vm8, %v1959_v28, %v1593_v4  ;;  %vm2065_vm13 = vcmp.eq.f32.partialorder %v4268_v36, inf }
 0x6b4   :  { %v2010_v57 = vsel %vm2009_vm10, %v4236_v34, %v2008_v25  ;;  %1678 = vmin.xlane.f32.xlu1 %v4345_v40  ;;  %v2047_v34 = vand.u32 2147483648, %v4255_v29  ;;  %vm1624_vm14 = vcmp.eq.f32.partialorder %v4090_v37, %v1603_v54  ;;  %2202 = vrsqrt.f32 %v4366_v35 }
 0x6b5   :  { %v2013_v59 = vsel %vm2011_vm4, %v2012_v50, %v2010_v57  ;;  %v2199_v10 = vpop.eup %2198  ;;  %v2045_v25 = vsel %vm2044_vm1, %v4255_v29, %v2043_v46  ;;  %v4373_v55 = vsel %vm1904_vm8, %v1964_v5, %v1603_v54  ;;  %v2068_v14 = vand.u32 2147483648, %v4268_v36 }
 0x6b6   :  { %2101 = vst.msk [vmem:[%s4794_s7 + $0x18] sm:$0xff] %vm1921_vm7, %v2013_v59  ;;  %v2064_v41 = vmul.f32 %v2199_v10, %v4268_v36  ;;  %v2048_v50 = vsel %vm2046_vm0, %v2047_v34, %v2045_v25  ;;  %v4378_v16 = vsel %vm1619_vm12, %v2450_v11, 128  ;;  %v1967_v37 = vsel %vm1887_vm11, %v1951_v49, %v5057_v18  ;;  %v1609_v63 = vpop.xlane.xlu0 %1608  ;;  %v5058_v59 = vld [vmem:[#allocation71_spill] sm:$0xff] }
 0x6b7   :  { %2106 = vst.msk [vmem:[%s4794_s7 + $0x40] sm:$0xff] %vm1921_vm7, %v2048_v50  ;;  %vm2067_vm5 = vcmp.eq.f32.partialorder %v4268_v36, 0.0  ;;  %v4389_v28 = vsel %vm1624_vm14, %v2450_v11, 128  ;;  %v1591_v5 = vpop.xlane.xlu1 %1590  ;;  %v1958_v46 = vsel %vm1887_vm11, %v1942_v8, %v5058_v59  ;;  %vm2002_vm15 = vcmp.eq.f32.partialorder %v4299_v12, inf  ;;  %v5059_v50 = vld [vmem:[#allocation42_spill] sm:$0xff] }
 0x6b8   :  { %v2066_v29 = vsel %vm2065_vm13, %v4268_v36, %v2064_v41  ;;  %2204 = vrsqrt.f32 %v4373_v55  ;;  %vm2004_vm6 = vcmp.eq.f32.partialorder %v4299_v12, 0.0  ;;  %v2005_v49 = vand.u32 2147483648, %v4299_v12 }
 0x6b9   :  { %v2201_v57 = vpop.eup %2200  ;;  %v2069_v4 = vsel %vm2067_vm5, %v2068_v14, %v2066_v29  ;;  %v1717_v54 = vshra.s32 %v4378_v16, 16  ;;  %v1787_v8 = vshra.s32 %v4389_v28, 16  ;;  %vm1627_vm2 = vcmp.eq.f32.partialorder %v4108_v22, %v1609_v63  ;;  %v5060_v14 = vld [vmem:[#allocation17_spill] sm:$0xff]  ;;  %v5061_v22 = vld [vmem:[#allocation43_spill] sm:$0xff] }
 0x6ba   :  { %2109 = vst.msk [vmem:[%s4794_s7 + $0x58] sm:$0xff] %vm1921_vm7, %v2069_v4  ;;  %v2001_v36 = vmul.f32 %v2201_v57, %v4299_v12  ;;  %v4406_v10 = vsel %vm1904_vm8, %v1967_v37, %v1609_v63  ;;  %v4409_v34 = vsel %vm1904_vm8, %v1958_v46, %v1591_v5  ;;  %v4413_v41 = vsel %vm1627_vm2, %v2450_v11, 128  ;;  %v5062_v29 = vld [vmem:[#allocation13_spill] sm:$0xff]  ;;  %v5063_v63 = vld [vmem:[#allocation44_spill] sm:$0xff]  ;;  %v5064_v57 = vld [vmem:[#allocation15_spill] sm:$0xff]  ;;  %v1597_v46 = vpop.xlane.xlu0 %1596 }
 0x6bb   :  { %2206 = vrsqrt.f32 %v4406_v10  ;;  %vm1618_vm3 = vcmp.eq.f32.partialorder %v4111_v53, %v1591_v5  ;;  %v1953_v18 = vsel %vm1870_vm9, %v5060_v14, %v5059_v50  ;;  %v1944_v37 = vsel %vm1870_vm9, %v5062_v29, %v5061_v22  ;;  %v5065_v4 = vld [vmem:[#allocation72_spill] sm:$0xff]  ;;  %v5067_v5 = vld [vmem:[#allocation74_spill] sm:$0xff] }
 0x6bc   :  { %v2003_v25 = vsel %vm2002_vm15, %v4299_v12, %v2001_v36  ;;  %v1952_v59 = vsel %vm1870_vm9, %v5064_v57, %v5063_v63  ;;  %v1961_v36 = vsel %vm1887_vm11, %v4329_v9, %v5065_v4  ;;  %v1966_v53 = vsel %vm1887_vm11, %v4341_v13, %v5066_v26  ;;  %v5069_v22 = vld [vmem:[#allocation76_spill] sm:$0xff] }
 0x6bd   :  { %v2006_v12 = vsel %vm2004_vm6, %v2005_v49, %v2003_v25  ;;  %v1969_v50 = vsel %vm1887_vm11, %v1953_v18, %v5067_v5  ;;  %2208 = vrsqrt.f32 %v4409_v34  ;;  %v1607_v49 = vpop.xlane.xlu1 %1606  ;;  %v5068_v25 = vld [vmem:[#allocation75_spill] sm:$0xff]  ;;  %v4443_v9 = vsel %vm1887_vm11, %v1952_v59, %v5069_v22 }
 0x6be   :  { %2100 = vst.msk [vmem:[%s4794_s7 + $0x10] sm:$0xff] %vm1921_vm7, %v2006_v12  ;;  %v1960_v14 = vsel %vm1887_vm11, %v1944_v37, %v5068_v25  ;;  %v1829_v26 = vshra.s32 %v4413_v41, 16  ;;  %v4447_v13 = vsel %vm1618_vm3, %v2450_v11, 128  ;;  %v2203_v18 = vpop.eup %2202  ;;  %v4449_v29 = vcvt.s32.f32 %v1717_v54 }
 0x6bf   :  { %v4451_v63 = vcvt.s32.f32 %v1787_v8  ;;  %vm1621_vm9 = vcmp.eq.f32.partialorder %v4128_v43, %v1597_v46  ;;  %v4455_v57 = vsel %vm1904_vm8, %v1961_v36, %v1597_v46  ;;  %v2022_v37 = vmul.f32 %v2203_v18, %v4366_v35  ;;  %v1613_v36 = vpop.xlane.xlu0 %1612 }
 0x6c0   :  { %vm2023_vm11 = vcmp.eq.f32.partialorder %v4366_v35, inf  ;;  %vm2025_vm10 = vcmp.eq.f32.partialorder %v4366_v35, 0.0  ;;  %2210 = vrsqrt.f32 %v4455_v57  ;;  %v2026_v59 = vand.u32 2147483648, %v4366_v35  ;;  %1720 = vmin.xlane.f32.xlu0 %v4449_v29 }
 0x6c1   :  { %vm2058_vm4 = vcmp.eq.f32.partialorder %v4373_v55, inf  ;;  %v1703_v54 = vshra.s32 %v4447_v13, 16  ;;  %1790 = vmin.xlane.f32.xlu1 %v4451_v63  ;;  %v4467_v43 = vsel %vm1621_vm9, %v2450_v11, 128  ;;  %v2024_v12 = vsel %vm2023_vm11, %v4366_v35, %v2022_v37  ;;  %v1595_v22 = vpop.xlane.xlu1 %1594 }
 0x6c2   :  { %v2205_v8 = vpop.eup %2204  ;;  %vm1626_vm1 = vcmp.eq.f32.partialorder %v4131_v58, %v1607_v49  ;;  %v4472_v46 = vsel %vm1904_vm8, %v1966_v53, %v1607_v49  ;;  %v4474_v4 = vcvt.s32.f32 %v1829_v26  ;;  %v2027_v5 = vsel %vm2025_vm10, %v2026_v59, %v2024_v12 }
 0x6c3   :  { %v2057_v25 = vmul.f32 %v2205_v8, %v4373_v55  ;;  %vm2060_vm0 = vcmp.eq.f32.partialorder %v4373_v55, 0.0  ;;  %2212 = vrsqrt.f32 %v4472_v46  ;;  %2103 = vst.msk [vmem:[%s4794_s7 + $0x28] sm:$0xff] %vm1921_vm7, %v2027_v5  ;;  %v2061_v35 = vand.u32 2147483648, %v4373_v55 }
 0x6c4   :  { %vm2079_vm12 = vcmp.eq.f32.partialorder %v4406_v10, inf  ;;  %vm2081_vm14 = vcmp.eq.f32.partialorder %v4406_v10, 0.0  ;;  %v1745_v53 = vshra.s32 %v4467_v43, 16  ;;  %v4493_v37 = vsel %vm1626_vm1, %v2450_v11, 128  ;;  %1832 = vmin.xlane.f32.xlu0 %v4474_v4 }
 0x6c5   :  { %v2207_v26 = vpop.eup %2206  ;;  %v2059_v18 = vsel %vm2058_vm4, %v4373_v55, %v2057_v25  ;;  %v4496_v59 = vcvt.s32.f32 %v1703_v54  ;;  %vm1629_vm13 = vcmp.eq.f32.partialorder %v4149_v61, %v1613_v36  ;;  %v4504_v62 = vsel %vm1904_vm8, %v1969_v50, %v1613_v36 }
 0x6c6   :  { %v2062_v8 = vsel %vm2060_vm0, %v2061_v35, %v2059_v18  ;;  %v2078_v12 = vmul.f32 %v2207_v26, %v4406_v10  ;;  %v4501_v5 = vsel %vm1629_vm13, %v2450_v11, 128  ;;  %v2082_v58 = vand.u32 2147483648, %v4406_v10  ;;  %v1611_v18 = vpop.xlane.xlu1 %1610 }
 0x6c7   :  { %v2209_v55 = vpop.eup %2208  ;;  %2108 = vst.msk [vmem:[%s4794_s7 + $0x50] sm:$0xff] %vm1921_vm7, %v2062_v8  ;;  %vm2016_vm5 = vcmp.eq.f32.partialorder %v4409_v34, inf  ;;  %v2019_v61 = vand.u32 2147483648, %v4409_v34  ;;  %1706 = vmin.xlane.f32.xlu1 %v4496_v59  ;;  %2214 = vrsqrt.f32 %v4504_v62  ;;  %v1815_v54 = vshra.s32 %v4493_v37, 16 }
 0x6c8   :  { %v2080_v50 = vsel %vm2079_vm12, %v4406_v10, %v2078_v12  ;;  %v2015_v49 = vmul.f32 %v2209_v55, %v4409_v34  ;;  %v1857_v36 = vshra.s32 %v4501_v5, 16  ;;  %vm1620_vm15 = vcmp.eq.f32.partialorder %v4153_v24, %v1595_v22 }
 0x6c9   :  { %v2083_v25 = vsel %vm2081_vm14, %v2082_v58, %v2080_v50  ;;  %v1976_v35 = vsel %vm1904_vm8, %v1960_v14, %v1595_v22  ;;  %v4525_v26 = vcvt.s32.f32 %v1745_v53  ;;  %vm2018_vm6 = vcmp.eq.f32.partialorder %v4409_v34, 0.0 }
 0x6ca   :  { %v2211_v8 = vpop.eup %2210  ;;  %2111 = vst.msk [vmem:[%s4794_s7 + $0x68] sm:$0xff] %vm1921_vm7, %v2083_v25  ;;  %v2017_v12 = vsel %vm2016_vm5, %v4409_v34, %v2015_v49  ;;  %v4534_v10 = vsel %vm1620_vm15, %v2450_v11, 128  ;;  %2216 = vrsqrt.f32 %v1976_v35  ;;  %vm2037_vm2 = vcmp.eq.f32.partialorder %v4455_v57, inf }
 0x6cb   :  { %v2020_v24 = vsel %vm2018_vm6, %v2019_v61, %v2017_v12  ;;  %v2036_v14 = vmul.f32 %v2211_v8, %v4455_v57  ;;  %vm2039_vm3 = vcmp.eq.f32.partialorder %v4455_v57, 0.0  ;;  %1748 = vmin.xlane.f32.xlu0 %v4525_v26  ;;  %v2040_v34 = vand.u32 2147483648, %v4455_v57 }
 0x6cc   :  { %2102 = vst.msk [vmem:[%s4794_s7 + $0x20] sm:$0xff] %vm1921_vm7, %v2020_v24  ;;  %v1731_v22 = vshra.s32 %v4534_v10, 16  ;;  %v4546_v53 = vcvt.s32.f32 %v1815_v54  ;;  %vm1628_vm9 = vcmp.eq.f32.partialorder %v4165_v56, %v1611_v18  ;;  %v1984_v50 = vsel %vm1904_vm8, %v4443_v9, %v1611_v18 }
 0x6cd   :  { %v2213_v55 = vpop.eup %2212  ;;  %v2038_v58 = vsel %vm2037_vm2, %v4455_v57, %v2036_v14  ;;  %v4551_v61 = vsel %vm1628_vm9, %v2450_v11, 128  ;;  %v4555_v49 = vcvt.s32.f32 %v1857_v36  ;;  %vm2072_vm11 = vcmp.eq.f32.partialorder %v4472_v46, inf }
 0x6ce   :  { %v2041_v25 = vsel %vm2039_vm3, %v2040_v34, %v2038_v58  ;;  %v2071_v8 = vmul.f32 %v2213_v55, %v4472_v46  ;;  %1818 = vmin.xlane.f32.xlu1 %v4546_v53  ;;  %v1843_v54 = vshra.s32 %v4551_v61, 16  ;;  %v2075_v11 = vand.u32 2147483648, %v4472_v46 }
 0x6cf   :  { %2105 = vst.msk [vmem:[%s4794_s7 + $0x38] sm:$0xff] %vm1921_vm7, %v2041_v25  ;;  %2218 = vrsqrt.f32 %v1984_v50  ;;  %1860 = vmin.xlane.f32.xlu0 %v4555_v49  ;;  %vm2074_vm10 = vcmp.eq.f32.partialorder %v4472_v46, 0.0  ;;  %v4569_v9 = vcvt.s32.f32 %v1731_v22  ;;  %vm2093_vm4 = vcmp.eq.f32.partialorder %v4504_v62, inf }
 0x6d0   :  { %v2073_v56 = vsel %vm2072_vm11, %v4472_v46, %v2071_v8  ;;  %v4577_v12 = vcvt.s32.f32 %v1843_v54  ;;  %v2096_v24 = vand.u32 2147483648, %v4504_v62  ;;  %vm2095_vm1 = vcmp.eq.f32.partialorder %v4504_v62, 0.0 }
 0x6d1   :  { %v2215_v57 = vpop.eup %2214  ;;  %v2076_v36 = vsel %vm2074_vm10, %v2075_v11, %v2073_v56  ;;  %vm2030_vm0 = vcmp.eq.f32.partialorder %v1976_v35, inf  ;;  %v2033_v55 = vand.u32 2147483648, %v1976_v35  ;;  %vm2032_vm12 = vcmp.eq.f32.partialorder %v1976_v35, 0.0 }
 0x6d2   :  { %2110 = vst.msk [vmem:[%s4794_s7 + $0x60] sm:$0xff] %vm1921_vm7, %v2076_v36  ;;  %v2092_v18 = vmul.f32 %v2215_v57, %v4504_v62  ;;  %1734 = vmin.xlane.f32.xlu1 %v4569_v9  ;;  %vm2086_vm14 = vcmp.eq.f32.partialorder %v1984_v50, inf  ;;  %v2089_v54 = vand.u32 2147483648, %v1984_v50  ;;  %vm2088_vm13 = vcmp.eq.f32.partialorder %v1984_v50, 0.0 }
 0x6d3   :  { %v1772_v57 = vand.u32 65535, %v4208_v7 }
 0x6d4   :  { %v2217_v46 = vpop.eup %2216  ;;  %v2094_v14 = vsel %vm2093_vm4, %v4504_v62, %v2092_v18 }
 0x6d5   :  { %v2097_v34 = vsel %vm2095_vm1, %v2096_v24, %v2094_v14  ;;  %v2029_v22 = vmul.f32 %v2217_v46, %v1976_v35  ;;  %v1646_v24 = vand.u32 65535, %v4223_v32 }
 0x6d6   :  { %2113 = vst.msk [vmem:[%s4794_s7 + $0x78] sm:$0xff] %vm1921_vm7, %v2097_v34  ;;  %1846 = vmin.xlane.f32.xlu1 %v4577_v12  ;;  %v1774_v34 = vcvt.s32.f32 %v1772_v57 }
 0x6d7   :  { %v2031_v58 = vsel %vm2030_vm0, %v1976_v35, %v2029_v22  ;;  %v1660_v35 = vand.u32 65535, %v4181_v44  ;;  %v1758_v22 = vand.u32 65535, %v4250_v27  ;;  %v1648_v7 = vcvt.s32.f32 %v1646_v24 }
 0x6d8   :  { %v2034_v25 = vsel %vm2032_vm12, %v2033_v55, %v2031_v58  ;;  %v1800_v55 = vand.u32 65535, %v4276_v39  ;;  %v1674_v27 = vand.u32 65535, %v4306_v60 }
 0x6d9   :  { %v2219_v8 = vpop.eup %2218  ;;  %2104 = vst.msk [vmem:[%s4794_s7 + $0x30] sm:$0xff] %vm1921_vm7, %v2034_v25  ;;  %v1662_v18 = vcvt.s32.f32 %v1660_v35  ;;  %v1760_v25 = vcvt.s32.f32 %v1758_v22  ;;  %v1828_v35 = vand.u32 65535, %v4413_v41 }
 0x6da   :  { %v2085_v62 = vmul.f32 %v2219_v8, %v1984_v50 }
 0x6db   :  { %v1830_v41 = vcvt.s32.f32 %v1828_v35 }
 0x6dc   :  { %v2087_v11 = vsel %vm2086_vm14, %v1984_v50, %v2085_v62  ;;  %v1688_v50 = vand.u32 65535, %v4243_v30  ;;  %v1802_v62 = vcvt.s32.f32 %v1800_v55 }
 0x6dd   :  { %v2090_v56 = vsel %vm2088_vm13, %v2089_v54, %v2087_v11  ;;  %v1676_v54 = vcvt.s32.f32 %v1674_v27 }
 0x6de   :  { %2112 = vst.msk [vmem:[%s4794_s7 + $0x70] sm:$0xff] %vm1921_vm7, %v2090_v56  ;;  %v1690_v58 = vcvt.s32.f32 %v1688_v50  ;;  %v1786_v56 = vand.u32 65535, %v4389_v28  ;;  %v1744_v50 = vand.u32 65535, %v4467_v43 }
 0x6e0   :  { %v1788_v24 = vcvt.s32.f32 %v1786_v56 }
 0x72e   :  { %v4598_v36 = vpop.xlane.xlu0 %1664 }
 0x72f   :  { %vm1666_vm5 = vcmp.eq.f32.partialorder %v4232_v38, %v4598_v36 }
 0x730   :  { %v1667_v46 = vsel %vm1666_vm5, %v1662_v18, inf }
 0x731   :  { %1668 = vmin.xlane.f32.xlu0 %v1667_v46 }
 0x733   :  { %v4604_v14 = vpop.xlane.xlu0 %1776 }
 0x734   :  { %vm1778_vm15 = vcmp.eq.f32.partialorder %v4257_v2, %v4604_v14  ;;  %v4609_v44 = vpop.xlane.xlu1 %1650 }
 0x735   :  { %vm1652_vm6 = vcmp.eq.f32.partialorder %v4264_v52, %v4609_v44  ;;  %v1779_v32 = vsel %vm1778_vm15, %v1774_v34, inf }
 0x736   :  { %1780 = vmin.xlane.f32.xlu0 %v1779_v32  ;;  %v1653_v38 = vsel %vm1652_vm6, %v1648_v7, inf  ;;  %v1856_v7 = vand.u32 65535, %v4501_v5 }
 0x737   :  { %1654 = vmin.xlane.f32.xlu1 %v1653_v38  ;;  %v1746_v38 = vcvt.s32.f32 %v1744_v50 }
 0x738   :  { %v4619_v2 = vpop.xlane.xlu1 %1762 }
 0x739   :  { %v4614_v30 = vpop.xlane.xlu0 %1692  ;;  %vm1764_vm3 = vcmp.eq.f32.partialorder %v4295_v19, %v4619_v2  ;;  %v1716_v19 = vand.u32 65535, %v4378_v16 }
 0x73a   :  { %vm1694_vm2 = vcmp.eq.f32.partialorder %v4292_v17, %v4614_v30  ;;  %v1765_v8 = vsel %vm1764_vm3, %v1760_v25, inf }
 0x73b   :  { %v1695_v52 = vsel %vm1694_vm2, %v1690_v58, inf  ;;  %1766 = vmin.xlane.f32.xlu1 %v1765_v8  ;;  %v1858_v58 = vcvt.s32.f32 %v1856_v7 }
 0x73c   :  { %1696 = vmin.xlane.f32.xlu0 %v1695_v52 }
 0x740   :  { %v4623_v39 = vpop.xlane.xlu0 %1804 }
 0x741   :  { %vm1806_vm9 = vcmp.eq.f32.partialorder %v4336_v1, %v4623_v39  ;;  %v4627_v60 = vpop.xlane.xlu1 %1678  ;;  %v1718_v1 = vcvt.s32.f32 %v1716_v19  ;;  %v1657_v19 = vcvt.f32.s32 %v4609_v44 }
 0x742   :  { %v1807_v17 = vsel %vm1806_vm9, %v1802_v62, inf  ;;  %vm1680_vm11 = vcmp.eq.f32.partialorder %v4345_v40, %v4627_v60  ;;  %v1702_v40 = vand.u32 65535, %v4447_v13  ;;  %v1671_v62 = vcvt.f32.s32 %v4598_v36 }
 0x743   :  { %1808 = vmin.xlane.f32.xlu0 %v1807_v17  ;;  %v1681_v11 = vsel %vm1680_vm11, %v1676_v54, inf  ;;  %v1783_v17 = vcvt.f32.s32 %v4604_v14  ;;  %v1769_v36 = vcvt.f32.s32 %v4619_v2  ;;  %v1685_v2 = vcvt.f32.s32 %v4627_v60 }
 0x744   :  { %1682 = vmin.xlane.f32.xlu1 %v1681_v11  ;;  %v1704_v22 = vcvt.s32.f32 %v1702_v40  ;;  %v1672_v54 = vshll.u32 %v1671_v62, 16 }
 0x745   :  { %v1784_v35 = vshll.u32 %v1783_v17, 16 }
 0x74d   :  { %v4634_v57 = vpop.xlane.xlu0 %1720 }
 0x74e   :  { %v4636_v18 = vpop.xlane.xlu1 %1790  ;;  %vm1722_vm10 = vcmp.eq.f32.partialorder %v4449_v29, %v4634_v57 }
 0x74f   :  { %vm1792_vm4 = vcmp.eq.f32.partialorder %v4451_v63, %v4636_v18  ;;  %v1723_v46 = vsel %vm1722_vm10, %v1718_v1, inf  ;;  %v1814_v63 = vand.u32 65535, %v4493_v37  ;;  %v1699_v1 = vcvt.f32.s32 %v4614_v30 }
 0x750   :  { %v1793_v16 = vsel %vm1792_vm4, %v1788_v24, inf  ;;  %1724 = vmin.xlane.f32.xlu0 %v1723_v46  ;;  %v1658_v46 = vshll.u32 %v1657_v19, 16  ;;  %v1811_v30 = vcvt.f32.s32 %v4623_v39 }
 0x751   :  { %1794 = vmin.xlane.f32.xlu1 %v1793_v16  ;;  %v4643_v28 = vpop.xlane.xlu0 %1832  ;;  %v1700_v50 = vshll.u32 %v1699_v1, 16 }
 0x752   :  { %vm1834_vm1 = vcmp.eq.f32.partialorder %v4474_v4, %v4643_v28  ;;  %v1730_v4 = vand.u32 65535, %v4534_v10 }
 0x753   :  { %v1835_v29 = vsel %vm1834_vm1, %v1830_v41, inf }
 0x754   :  { %v4648_v34 = vpop.xlane.xlu1 %1706  ;;  %1836 = vmin.xlane.f32.xlu0 %v1835_v29  ;;  %v1732_v10 = vcvt.s32.f32 %v1730_v4 }
 0x755   :  { %vm1708_vm0 = vcmp.eq.f32.partialorder %v4496_v59, %v4648_v34  ;;  %v1816_v59 = vcvt.s32.f32 %v1814_v63 }
 0x756   :  { %v1709_v13 = vsel %vm1708_vm0, %v1704_v22, inf }
 0x757   :  { %1710 = vmin.xlane.f32.xlu1 %v1709_v13  ;;  %v1770_v13 = vshll.u32 %v1769_v36, 16 }
 0x758   :  { %v4654_v32 = vpop.xlane.xlu0 %1748 }
 0x759   :  { %vm1750_vm12 = vcmp.eq.f32.partialorder %v4525_v26, %v4654_v32  ;;  %v1842_v26 = vand.u32 65535, %v4551_v61  ;;  %v1755_v1 = vcvt.f32.s32 %v4654_v32 }
 0x75a   :  { %v1751_v43 = vsel %vm1750_vm12, %v1746_v38, inf }
 0x75b   :  { %v4659_v55 = vpop.xlane.xlu1 %1818  ;;  %1752 = vmin.xlane.f32.xlu0 %v1751_v43  ;;  %v1844_v8 = vcvt.s32.f32 %v1842_v26  ;;  %v1812_v43 = vshll.u32 %v1811_v30, 16  ;;  %v1756_v36 = vshll.u32 %v1755_v1, 16 }
 0x75c   :  { %vm1820_vm14 = vcmp.eq.f32.partialorder %v4546_v53, %v4659_v55  ;;  %v4663_v37 = vpop.xlane.xlu0 %1860 }
 0x75d   :  { %v1821_v5 = vsel %vm1820_vm14, %v1816_v59, inf  ;;  %vm1862_vm13 = vcmp.eq.f32.partialorder %v4555_v49, %v4663_v37 }
 0x75e   :  { %1822 = vmin.xlane.f32.xlu1 %v1821_v5  ;;  %v1863_v27 = vsel %vm1862_vm13, %v1858_v58, inf  ;;  %v1686_v58 = vshll.u32 %v1685_v2, 16 }
 0x75f   :  { %v4668_v25 = vpop.xlane.xlu1 %1734  ;;  %1864 = vmin.xlane.f32.xlu0 %v1863_v27 }
 0x760   :  { %vm1736_vm5 = vcmp.eq.f32.partialorder %v4569_v9, %v4668_v25 }
 0x761   :  { %v1737_v52 = vsel %vm1736_vm5, %v1732_v10, inf }
 0x762   :  { %1738 = vmin.xlane.f32.xlu1 %v1737_v52  ;;  %v1797_v52 = vcvt.f32.s32 %v4636_v18 }
 0x763   :  { %v4672_v53 = vpop.xlane.xlu1 %1846 }
 0x764   :  { %vm1848_vm15 = vcmp.eq.f32.partialorder %v4577_v12, %v4672_v53  ;;  %v1798_v62 = vshll.u32 %v1797_v52, 16 }
 0x765   :  { %v1849_v49 = vsel %vm1848_vm15, %v1844_v8, inf }
 0x766   :  { %1850 = vmin.xlane.f32.xlu1 %v1849_v49 }
 0x7be   :  { %v1669_v61 = vpop.xlane.xlu0 %1668 }
 0x7bf   :  { %v1670_v11 = vcvt.f32.s32 %v1669_v61  ;;  %v1839_v61 = vcvt.f32.s32 %v4643_v28 }
 0x7c1   :  { %v1673_v9 = vadd.s32 %v1672_v54, %v1670_v11  ;;  %v1713_v11 = vcvt.f32.s32 %v4648_v34 }
 0x7c3   :  { %v1781_v56 = vpop.xlane.xlu0 %1780  ;;  %v1906_v24 = vsel %vm1904_vm8, %v3985_v45, %v1673_v9  ;;  %v1714_v34 = vshll.u32 %v1713_v11, 16 }
 0x7c4   :  { %v1782_v12 = vcvt.f32.s32 %v1781_v56  ;;  %v1655_v40 = vpop.xlane.xlu1 %1654  ;;  %1923 = vst.msk [vmem:[%s4795_s6 + $0x8] sm:$0xff] %vm1921_vm7, %v1906_v24  ;;  %v1840_v56 = vshll.u32 %v1839_v61, 16 }
 0x7c5   :  { %v1656_v14 = vcvt.f32.s32 %v1655_v40  ;;  %v1825_v40 = vcvt.f32.s32 %v4659_v55 }
 0x7c6   :  { %v1785_v44 = vadd.s32 %v1784_v35, %v1782_v12 }
 0x7c7   :  { %v1659_v16 = vadd.s32 %v1658_v46, %v1656_v14  ;;  %v1867_v14 = vcvt.f32.s32 %v4663_v37 }
 0x7c8   :  { %v1914_v45 = vsel %vm1904_vm8, %v4004_v20, %v1785_v44  ;;  %v1767_v22 = vpop.xlane.xlu1 %1766 }
 0x7c9   :  { %v1697_v41 = vpop.xlane.xlu0 %1696  ;;  %1931 = vst.msk [vmem:[%s4795_s6 + $0x48] sm:$0xff] %vm1921_vm7, %v1914_v45  ;;  %v1905_v63 = vsel %vm1904_vm8, %v4000_v33, %v1659_v16  ;;  %v1768_v7 = vcvt.f32.s32 %v1767_v22  ;;  %v1826_v16 = vshll.u32 %v1825_v40, 16  ;;  %v1868_v45 = vshll.u32 %v1867_v14, 16 }
 0x7ca   :  { %v1698_v29 = vcvt.f32.s32 %v1697_v41  ;;  %1922 = vst.msk [vmem:[%s4795_s6] sm:$0xff] %vm1921_vm7, %v1905_v63  ;;  %v1741_v41 = vcvt.f32.s32 %v4668_v25  ;;  %v1853_v63 = vcvt.f32.s32 %v4672_v53 }
 0x7cb   :  { %v1771_v39 = vadd.s32 %v1770_v13, %v1768_v7 }
 0x7cc   :  { %v1701_v20 = vadd.s32 %v1700_v50, %v1698_v29  ;;  %v1742_v2 = vshll.u32 %v1741_v41, 16  ;;  %v1854_v53 = vshll.u32 %v1853_v63, 16 }
 0x7cd   :  { %v1913_v33 = vsel %vm1904_vm8, %v4022_v51, %v1771_v39  ;;  %v1727_v51 = vcvt.f32.s32 %v4634_v57 }
 0x7ce   :  { %v1908_v60 = vsel %vm1904_vm8, %v4026_v23, %v1701_v20  ;;  %1930 = vst.msk [vmem:[%s4795_s6 + $0x40] sm:$0xff] %vm1921_vm7, %v1913_v33 }
 0x7cf   :  { %1925 = vst.msk [vmem:[%s4795_s6 + $0x18] sm:$0xff] %vm1921_vm7, %v1908_v60  ;;  %v1728_v8 = vshll.u32 %v1727_v51, 16 }
 0x7d0   :  { %v1809_v38 = vpop.xlane.xlu0 %1808 }
 0x7d1   :  { %v1810_v4 = vcvt.f32.s32 %v1809_v38  ;;  %v1683_v59 = vpop.xlane.xlu1 %1682  ;;  %v5070_v38 = vld [vmem:[#allocation18_spill] sm:$0xff] }
 0x7d2   :  { %v1684_v5 = vcvt.f32.s32 %v1683_v59 }
 0x7d3   :  { %v1813_v27 = vadd.s32 %v1812_v43, %v1810_v4  ;;  %v5071_v4 = vld [vmem:[#allocation19_spill] sm:$0xff] }
 0x7d4   :  { %v1687_v26 = vadd.s32 %v1686_v58, %v1684_v5 }
 0x7d5   :  { %v1916_v23 = vsel %vm1904_vm8, %v4042_v6, %v1813_v27 }
 0x7d6   :  { %1933 = vst.msk [vmem:[%s4795_s6 + $0x58] sm:$0xff] %vm1921_vm7, %v1916_v23  ;;  %v1907_v10 = vsel %vm1904_vm8, %v4055_v21, %v1687_v26 }
 0x7d7   :  { %1924 = vst.msk [vmem:[%s4795_s6 + $0x10] sm:$0xff] %vm1921_vm7, %v1907_v10 }
 0x7dd   :  { %v1725_v49 = vpop.xlane.xlu0 %1724 }
 0x7de   :  { %v1795_v6 = vpop.xlane.xlu1 %1794  ;;  %v1726_v54 = vcvt.f32.s32 %v1725_v49 }
 0x7df   :  { %v1796_v17 = vcvt.f32.s32 %v1795_v6 }
 0x7e0   :  { %v1729_v21 = vadd.s32 %v1728_v8, %v1726_v54 }
 0x7e1   :  { %v1799_v19 = vadd.s32 %v1798_v62, %v1796_v17  ;;  %v1837_v9 = vpop.xlane.xlu0 %1836 }
 0x7e2   :  { %v1910_v35 = vsel %vm1904_vm8, %v4073_v15, %v1729_v21  ;;  %v1838_v18 = vcvt.f32.s32 %v1837_v9 }
 0x7e3   :  { %v1915_v57 = vsel %vm1904_vm8, %v4076_v0, %v1799_v19  ;;  %1927 = vst.msk [vmem:[%s4795_s6 + $0x28] sm:$0xff] %vm1921_vm7, %v1910_v35 }
 0x7e4   :  { %1932 = vst.msk [vmem:[%s4795_s6 + $0x50] sm:$0xff] %vm1921_vm7, %v1915_v57  ;;  %v1711_v28 = vpop.xlane.xlu1 %1710  ;;  %v1841_v24 = vadd.s32 %v1840_v56, %v1838_v18 }
 0x7e5   :  { %v1712_v15 = vcvt.f32.s32 %v1711_v28 }
 0x7e6   :  { %v1918_v0 = vsel %vm1904_vm8, %v4097_v48, %v1841_v24 }
 0x7e7   :  { %v1715_v12 = vadd.s32 %v1714_v34, %v1712_v15  ;;  %1935 = vst.msk [vmem:[%s4795_s6 + $0x68] sm:$0xff] %vm1921_vm7, %v1918_v0 }
 0x7e8   :  { %v1753_v46 = vpop.xlane.xlu0 %1752 }
 0x7e9   :  { %v1909_v32 = vsel %vm1904_vm8, %v4100_v42, %v1715_v12  ;;  %v1754_v44 = vcvt.f32.s32 %v1753_v46 }
 0x7ea   :  { %1926 = vst.msk [vmem:[%s4795_s6 + $0x20] sm:$0xff] %vm1921_vm7, %v1909_v32 }
 0x7eb   :  { %v1757_v48 = vadd.s32 %v1756_v36, %v1754_v44  ;;  %v1823_v55 = vpop.xlane.xlu1 %1822 }
 0x7ec   :  { %v1824_v50 = vcvt.f32.s32 %v1823_v55  ;;  %v1865_v30 = vpop.xlane.xlu0 %1864 }
 0x7ed   :  { %v1912_v37 = vsel %vm1904_vm8, %v4120_v3, %v1757_v48  ;;  %v1866_v29 = vcvt.f32.s32 %v1865_v30 }
 0x7ee   :  { %1929 = vst.msk [vmem:[%s4795_s6 + $0x38] sm:$0xff] %vm1921_vm7, %v1912_v37  ;;  %v1827_v42 = vadd.s32 %v1826_v16, %v1824_v50 }
 0x7ef   :  { %v1869_v22 = vadd.s32 %v1868_v45, %v1866_v29  ;;  %v1739_v13 = vpop.xlane.xlu1 %1738 }
 0x7f0   :  { %v1917_v25 = vsel %vm1904_vm8, %v4123_v31, %v1827_v42  ;;  %v1740_v7 = vcvt.f32.s32 %v1739_v13 }
 0x7f1   :  { %1934 = vst.msk [vmem:[%s4795_s6 + $0x60] sm:$0xff] %vm1921_vm7, %v1917_v25  ;;  %v1920_v3 = vsel %vm1904_vm8, %v4142_v47, %v1869_v22 }
 0x7f2   :  { %1937 = vst.msk [vmem:[%s4795_s6 + $0x78] sm:$0xff] %vm1921_vm7, %v1920_v3  ;;  %v1743_v20 = vadd.s32 %v1742_v2, %v1740_v7 }
 0x7f3   :  { %v1851_v39 = vpop.xlane.xlu1 %1850 }
 0x7f4   :  { %v1911_v31 = vsel %vm1904_vm8, %v5070_v38, %v1743_v20  ;;  %v1852_v43 = vcvt.f32.s32 %v1851_v39 }
 0x7f5   :  { %1928 = vst.msk [vmem:[%s4795_s6 + $0x30] sm:$0xff] %vm1921_vm7, %v1911_v31 }
 0x7f6   :  { %v1855_v60 = vadd.s32 %v1854_v53, %v1852_v43 }
 0x7f8   :  { %v1919_v47 = vsel %vm1904_vm8, %v5071_v4, %v1855_v60 }
 0x7f9   :  { %1936 = vst.msk [vmem:[%s4795_s6 + $0x70] sm:$0xff] %vm1921_vm7, %v1919_v47 }

</bundles_post_ra>
